<compile_context>
chip_gen: v6e
topology: v6e:2x2x1
jax: 0.10.0
libtpu: 0.0.40
codegen_flags: <defaults>
</compile_context>

<pallas_src>
import functools

import jax
import jax.numpy as jnp
from jax import lax
from jax.experimental import pallas as pl
from jax.experimental.pallas import tpu as pltpu


def _round_up(x, m):
    return (x + m - 1) // m * m


# ----------------------------------------------------------------------------
# Pallas kernel: one batch element of the fused DoubleConv forward.
# ----------------------------------------------------------------------------
def _double_conv_kernel(p_ref, w1_ref, w2_ref, gn_ref, g1_ref, b1_ref,
                        g2_ref, b2_ref, mneg_ref, mpos_ref,
                        o_ref, xpad_ref, *, h, w, cp, pad, eps):
    """Fused (conv3x3 -> GroupNorm -> ReLU) x 2 for one batch element.

    p_ref    : [1, HW, 9*Cin]  bf16 channels-last im2col patches (streamed)
    w1_ref   : [9*Cin, Cp]     bf16 conv1 weight (tap-major rows, padded cols)
    w2_ref   : [9, Cp, Cp]     bf16 conv2 weight per 3x3 tap (channel-padded)
    gn_ref   : [Cp, Cp]        f32 block-diag group-mean broadcast / (HW*cg)
    g*/b*    : [1, Cp]         f32 GroupNorm gamma/beta (zero on padded chans)
    m*_ref   : [HWp, 1]        f32 column-validity masks for the j-1 / j+1 taps
    o_ref    : [1, HW, Cp]     f32 output (lane-dense, channels-last)
    xpad_ref : [HWp, Cp]       f32 VMEM staging buffer with zero halo rows
    """
    hw = h * w
    hwp = hw + 2 * pad
    f32 = jnp.float32
    bf16 = jnp.bfloat16

    def gn_relu(y, gamma, beta):
        # y: [HW, Cp] f32.  Per-group stats via the block-diagonal matmul; the
        # padded channels have zero rows/cols in gn_ref and zero gamma/beta,
        # so they never pollute the statistics and stay exactly 0.
        ch_sum = jnp.sum(y, axis=0, keepdims=True)                  # [1, Cp]
        ch_ssq = jnp.sum(y * y, axis=0, keepdims=True)              # [1, Cp]
        mean_c = jnp.dot(ch_sum, gn_ref[...], preferred_element_type=f32)
        ex2_c = jnp.dot(ch_ssq, gn_ref[...], preferred_element_type=f32)
        var_c = jnp.maximum(ex2_c - mean_c * mean_c, 0.0)
        a = lax.rsqrt(var_c + eps) * gamma                          # [1, Cp]
        off = beta - mean_c * a
        return jnp.maximum(y * a + off, 0.0)

    # ---- block 1: conv1 as a single matmul over the im2col patches ----------
    y1 = jnp.dot(p_ref[0], w1_ref[...], preferred_element_type=f32)  # [HW, Cp]
    y1 = gn_relu(y1, g1_ref[...], b1_ref[...])

    # ---- stage block-1 activations; only the halo rows are zero-filled ------
    xpad_ref[:pad, :] = jnp.zeros((pad, cp), f32)
    xpad_ref[pad + hw:hwp, :] = jnp.zeros((pad, cp), f32)
    xpad_ref[pad:pad + hw, :] = y1

    # ---- pre-shifted, pre-masked column neighbours (built once, not per tap)
    xc = xpad_ref[...]                                    # value at k = x[k]
    xm = pltpu.roll(xc, shift=1, axis=0) * mneg_ref[...]  # value at k = x[k-1]
    xp = pltpu.roll(xc, shift=hwp - 1, axis=0) * mpos_ref[...]  # == roll by -1: x[k+1]
    shifted = (xm.astype(bf16), xc.astype(bf16), xp.astype(bf16))

    # ---- block 2: 9 aligned shifted matmuls, value (vreg) accumulator -------
    acc = None
    for t in range(9):                                    # static unroll
        oi, oj = t // 3 - 1, t % 3 - 1
        start = pad + oi * w                              # aligned slice start
        win = shifted[oj + 1][start:start + hw, :]        # [HW, Cp] bf16
        part = jnp.dot(win, w2_ref[t], preferred_element_type=f32)
        acc = part if acc is None else acc + part

    y2 = gn_relu(acc, g2_ref[...], b2_ref[...])
    o_ref[0] = y2.astype(o_ref.dtype)


# ----------------------------------------------------------------------------
# Host-side wrapper (layout glue only)
# ----------------------------------------------------------------------------
def _im2col_3x3_s1_p1(x_nhwc):
    """Channels-last im2col for a 3x3 / stride-1 / pad-1 conv -> [B, H*W, 9*C]."""
    b, h, w, c = x_nhwc.shape
    xp = jnp.pad(x_nhwc, ((0, 0), (1, 1), (1, 1), (0, 0)))
    cols = [xp[:, di:di + h, dj:dj + w, :] for di in range(3) for dj in range(3)]
    return jnp.concatenate(cols, axis=-1).reshape(b, h * w, 9 * c)


def double_conv_forward(x_nchw, params, group_dim, eps=1e-5):
    """DoubleConv forward.  x in NCHW (PyTorch layout); returns NCHW."""
    w1, g1, b1 = params["w1"], params["g1"], params["b1"]
    w2, g2, b2 = params["w2"], params["g2"], params["b2"]

    bsz, cin, h, w = x_nchw.shape
    cout = w1.shape[0]
    hw = h * w
    cg = cout // group_dim
    cp = _round_up(cout, 128)      # lane-dense channel width for MXU / stores
    k1 = 9 * cin                   # UNPADDED im2col K (no HBM blow-up)
    pad = _round_up(w, 8)          # halo rows; pad >= w keeps all tap slices in-bounds
    hwp = hw + 2 * pad

    f32, bf16 = jnp.float32, jnp.bfloat16

    # bf16 channels-last patches for conv1 (MXU-native, f32 accumulation in-kernel)
    x_nhwc = jnp.transpose(x_nchw, (0, 2, 3, 1)).astype(f32)
    patches = _im2col_3x3_s1_p1(x_nhwc).astype(bf16)               # [B, HW, 9*Cin]

    # conv weights: (tap, cin)-major rows x cout columns, channel-padded to cp
    w1m = jnp.transpose(w1.astype(f32), (2, 3, 1, 0)).reshape(k1, cout)
    w1m = jnp.pad(w1m, ((0, 0), (0, cp - cout))).astype(bf16)
    w2m = jnp.transpose(w2.astype(f32), (2, 3, 1, 0))              # [3,3,Cin=Cout,Cout]
    w2m = jnp.pad(w2m, ((0, 0), (0, 0), (0, cp - cout), (0, cp - cout)))
    w2m = w2m.reshape(9, cp, cp).astype(bf16)

    def pad_vec(v):
        return jnp.pad(v.astype(f32), (0, cp - cout)).reshape(1, cp)

    g1p, b1p, g2p, b2p = pad_vec(g1), pad_vec(b1), pad_vec(g2), pad_vec(b2)

    # block-diagonal "group mean broadcast" matrix: mean_c = ch_sum @ gnmat.
    # Padded channels belong to no group -> zero rows/cols.
    ch = jnp.arange(cp)
    grp = ch // cg
    real = ch < cout
    gnmat = ((grp[:, None] == grp[None, :]) & real[:, None] & real[None, :])
    gnmat = gnmat.astype(f32) / float(hw * cg)

    # column-validity masks, indexed by flat-HW position inside the padded buffer
    colpos = (jnp.arange(hwp) - pad) % w
    mneg = (colpos > 0).astype(f32).reshape(hwp, 1)      # tap reads column j-1
    mpos = (colpos < w - 1).astype(f32).reshape(hwp, 1)  # tap reads column j+1

    kernel = functools.partial(_double_conv_kernel, h=h, w=w, cp=cp, pad=pad, eps=eps)

    grid_spec = pltpu.PrefetchScalarGridSpec(
        num_scalar_prefetch=0,
        grid=(bsz,),
        in_specs=[
            pl.BlockSpec((1, hw, k1), lambda b: (b, 0, 0)),    # patches: streamed per batch
            pl.BlockSpec((k1, cp), lambda b: (0, 0)),          # w1: resident
            pl.BlockSpec((9, cp, cp), lambda b: (0, 0, 0)),    # w2: resident
            pl.BlockSpec((cp, cp), lambda b: (0, 0)),          # gnmat: resident
            pl.BlockSpec((1, cp), lambda b: (0, 0)),           # gamma1
            pl.BlockSpec((1, cp), lambda b: (0, 0)),           # beta1
            pl.BlockSpec((1, cp), lambda b: (0, 0)),           # gamma2
            pl.BlockSpec((1, cp), lambda b: (0, 0)),           # beta2
            pl.BlockSpec((hwp, 1), lambda b: (0, 0)),          # mneg (j-1 validity)
            pl.BlockSpec((hwp, 1), lambda b: (0, 0)),          # mpos (j+1 validity)
        ],
        out_specs=pl.BlockSpec((1, hw, cp), lambda b: (b, 0, 0)),
        scratch_shapes=[pltpu.VMEM((hwp, cp), f32)],           # padded block-1 activations
    )

    out = pl.pallas_call(
        kernel,
        out_shape=jax.ShapeDtypeStruct((bsz, hw, cp), f32),
        grid_spec=grid_spec,
        compiler_params=pltpu.CompilerParams(
            dimension_semantics=("parallel",),                 # 2 TCs on v7x
            vmem_limit_bytes=32 * 1024 * 1024),                # fits v7x's 64 MiB VMEM
    )(patches, w1m, w2m, gnmat, g1p, b1p, g2p, b2p, mneg, mpos)

    out = out[:, :, :cout].reshape(bsz, h, w, cout)
    return jnp.transpose(out, (0, 3, 1, 2))                    # NCHW, matching the module


# ----------------------------------------------------------------------------
# Pure-JAX reference (for verification)
# ----------------------------------------------------------------------------
def reference_forward(x, params, group_dim, eps=1e-5):
    def block(h_, wgt, gamma, beta):
        y = lax.conv_general_dilated(
            h_, wgt.astype(jnp.float32), window_strides=(1, 1),
            padding=((1, 1), (1, 1)),
            dimension_numbers=("NCHW", "OIHW", "NCHW"))
        b, c, hh, ww = y.shape
        yg = y.reshape(b, group_dim, c // group_dim, hh, ww)
        mean = jnp.mean(yg, axis=(2, 3, 4), keepdims=True)
        var = jnp.mean((yg - mean) ** 2, axis=(2, 3, 4), keepdims=True)
        yg = (yg - mean) * lax.rsqrt(var + eps)
        y = yg.reshape(b, c, hh, ww)
        y = y * gamma.reshape(1, c, 1, 1) + beta.reshape(1, c, 1, 1)
        return jnp.maximum(y, 0.0)

    h_ = x.astype(jnp.float32)
    h_ = block(h_, params["w1"], params["g1"], params["b1"])
    h_ = block(h_, params["w2"], params["g2"], params["b2"])
    return h_


# ----------------------------------------------------------------------------
# Main
# ----------------------------------------------------------------------------
if __name__ == "__main__":
    key = jax.random.PRNGKey(0)
    B, Cin, H, W = 2, 4, 16, 16
    Cout, G = 32, 8          # out_channels, group_dim

    ks = jax.random.split(key, 7)
    params = {
        "w1": 0.1 * jax.random.normal(ks[0], (Cout, Cin, 3, 3), jnp.float32),
        "g1": 1.0 + 0.1 * jax.random.normal(ks[1], (Cout,), jnp.float32),
        "b1": 0.1 * jax.random.normal(ks[2], (Cout,), jnp.float32),
        "w2": 0.1 * jax.random.normal(ks[3], (Cout, Cout, 3, 3), jnp.float32),
        "g2": 1.0 + 0.1 * jax.random.normal(ks[4], (Cout,), jnp.float32),
        "b2": 0.1 * jax.random.normal(ks[5], (Cout,), jnp.float32),
    }
    x = jax.random.normal(ks[6], (B, Cin, H, W), jnp.float32)

    out = jax.block_until_ready(double_conv_forward(x, params, group_dim=G))
    ref = jax.block_until_ready(reference_forward(x, params, group_dim=G))

    assert out.shape == (B, Cout, H, W), out.shape
    # bf16 MXU operands with f32 accumulation -> slightly looser tolerance than f32.
    max_err = float(jnp.max(jnp.abs(out - ref)))
    assert jnp.allclose(out, ref, atol=3e-2, rtol=3e-2), max_err
    print("KERNEL_OK")
</pallas_src>

<mosaic_0001>
module attributes {stable_mosaic.version = 11 : i64} {
  func.func @_double_conv_kernel(%arg0: i32, %arg1: memref<1x256x36xbf16, #tpu.memory_space<vmem>>, %arg2: memref<36x128xbf16, #tpu.memory_space<vmem>>, %arg3: memref<9x128x128xbf16, #tpu.memory_space<vmem>>, %arg4: memref<128x128xf32, #tpu.memory_space<vmem>>, %arg5: memref<1x128xf32, #tpu.memory_space<vmem>>, %arg6: memref<1x128xf32, #tpu.memory_space<vmem>>, %arg7: memref<1x128xf32, #tpu.memory_space<vmem>>, %arg8: memref<1x128xf32, #tpu.memory_space<vmem>>, %arg9: memref<288x1xf32, #tpu.memory_space<vmem>>, %arg10: memref<288x1xf32, #tpu.memory_space<vmem>>, %arg11: memref<1x256x128xf32, #tpu.memory_space<vmem>>, %arg12: memref<288x128xf32, #tpu.memory_space<vmem>>) attributes {dimension_semantics = [#tpu.dimension_semantics<parallel>], iteration_bounds = array<i64: 2>, scalar_prefetch = 0 : i64, scratch_operands = 1 : i64, tpu.core_type = #tpu.core_type<tc>, window_params = [{transform_indices = @transform_0, window_bounds = array<i64: 1, 256, 36>}, {pipeline_mode = #tpu.pipeline_mode<synchronous>, transform_indices = @transform_1, window_bounds = array<i64: 36, 128>}, {pipeline_mode = #tpu.pipeline_mode<synchronous>, transform_indices = @transform_2, window_bounds = array<i64: 9, 128, 128>}, {pipeline_mode = #tpu.pipeline_mode<synchronous>, transform_indices = @transform_3, window_bounds = array<i64: 128, 128>}, {pipeline_mode = #tpu.pipeline_mode<synchronous>, transform_indices = @transform_4, window_bounds = array<i64: 1, 128>}, {pipeline_mode = #tpu.pipeline_mode<synchronous>, transform_indices = @transform_5, window_bounds = array<i64: 1, 128>}, {pipeline_mode = #tpu.pipeline_mode<synchronous>, transform_indices = @transform_6, window_bounds = array<i64: 1, 128>}, {pipeline_mode = #tpu.pipeline_mode<synchronous>, transform_indices = @transform_7, window_bounds = array<i64: 1, 128>}, {pipeline_mode = #tpu.pipeline_mode<synchronous>, transform_indices = @transform_8, window_bounds = array<i64: 288, 1>}, {pipeline_mode = #tpu.pipeline_mode<synchronous>, transform_indices = @transform_9, window_bounds = array<i64: 288, 1>}, {transform_indices = @transform_10, window_bounds = array<i64: 1, 256, 128>}]} {
    %c0 = arith.constant 0 : index
    %c0_0 = arith.constant 0 : index
    %c0_1 = arith.constant 0 : index
    %0 = vector.load %arg1[%c0, %c0_0, %c0_1] : memref<1x256x36xbf16, #tpu.memory_space<vmem>>, vector<1x256x36xbf16>
    %1 = vector.shape_cast %0 : vector<1x256x36xbf16> to vector<256x36xbf16>
    %c0_2 = arith.constant 0 : index
    %c0_3 = arith.constant 0 : index
    %2 = vector.load %arg2[%c0_2, %c0_3] : memref<36x128xbf16, #tpu.memory_space<vmem>>, vector<36x128xbf16>
    %cst = arith.constant dense<0.000000e+00> : vector<256x128xf32>
    %3 = tpu.matmul %1, %2, %cst {dimension_numbers = #tpu.dot_dimension_numbers<[1], [0], [0], [1], [0, 0, 1, 1], [], []>} : vector<256x36xbf16>, vector<36x128xbf16>, vector<256x128xf32> -> vector<256x128xf32>
    %c0_4 = arith.constant 0 : index
    %c0_5 = arith.constant 0 : index
    %4 = vector.load %arg5[%c0_4, %c0_5] : memref<1x128xf32, #tpu.memory_space<vmem>>, vector<1x128xf32>
    %c0_6 = arith.constant 0 : index
    %c0_7 = arith.constant 0 : index
    %5 = vector.load %arg6[%c0_6, %c0_7] : memref<1x128xf32, #tpu.memory_space<vmem>>, vector<1x128xf32>
    %cst_8 = arith.constant dense<0.000000e+00> : vector<128xf32>
    %6 = vector.multi_reduction <add>, %3, %cst_8 [0] : vector<256x128xf32> to vector<128xf32>
    %7 = vector.shape_cast %6 : vector<128xf32> to vector<1x128xf32>
    %8 = arith.mulf %3, %3 : vector<256x128xf32>
    %cst_9 = arith.constant dense<0.000000e+00> : vector<128xf32>
    %9 = vector.multi_reduction <add>, %8, %cst_9 [0] : vector<256x128xf32> to vector<128xf32>
    %10 = vector.shape_cast %9 : vector<128xf32> to vector<1x128xf32>
    %c0_10 = arith.constant 0 : index
    %c0_11 = arith.constant 0 : index
    %11 = vector.load %arg4[%c0_10, %c0_11] : memref<128x128xf32, #tpu.memory_space<vmem>>, vector<128x128xf32>
    %cst_12 = arith.constant dense<0.000000e+00> : vector<1x128xf32>
    %12 = tpu.matmul %7, %11, %cst_12 {dimension_numbers = #tpu.dot_dimension_numbers<[1], [0], [0], [1], [0, 0, 1, 1], [], []>} : vector<1x128xf32>, vector<128x128xf32>, vector<1x128xf32> -> vector<1x128xf32>
    %c0_13 = arith.constant 0 : index
    %c0_14 = arith.constant 0 : index
    %13 = vector.load %arg4[%c0_13, %c0_14] : memref<128x128xf32, #tpu.memory_space<vmem>>, vector<128x128xf32>
    %cst_15 = arith.constant dense<0.000000e+00> : vector<1x128xf32>
    %14 = tpu.matmul %10, %13, %cst_15 {dimension_numbers = #tpu.dot_dimension_numbers<[1], [0], [0], [1], [0, 0, 1, 1], [], []>} : vector<1x128xf32>, vector<128x128xf32>, vector<1x128xf32> -> vector<1x128xf32>
    %15 = arith.mulf %12, %12 : vector<1x128xf32>
    %16 = arith.subf %14, %15 : vector<1x128xf32>
    %cst_16 = arith.constant 0.000000e+00 : f32
    %17 = vector.broadcast %cst_16 : f32 to vector<1x128xf32>
    %18 = arith.maximumf %16, %17 : vector<1x128xf32>
    %cst_17 = arith.constant 9.99999974E-6 : f32
    %19 = vector.broadcast %cst_17 : f32 to vector<1x128xf32>
    %20 = arith.addf %18, %19 : vector<1x128xf32>
    %21 = math.rsqrt %20 : vector<1x128xf32>
    %22 = arith.mulf %21, %4 : vector<1x128xf32>
    %23 = arith.mulf %12, %22 : vector<1x128xf32>
    %24 = arith.subf %5, %23 : vector<1x128xf32>
    %25 = vector.broadcast %22 : vector<1x128xf32> to vector<256x128xf32>
    %26 = arith.mulf %3, %25 : vector<256x128xf32>
    %27 = vector.broadcast %24 : vector<1x128xf32> to vector<256x128xf32>
    %28 = arith.addf %26, %27 : vector<256x128xf32>
    %cst_18 = arith.constant 0.000000e+00 : f32
    %29 = vector.broadcast %cst_18 : f32 to vector<256x128xf32>
    %30 = arith.maximumf %28, %29 : vector<256x128xf32>
    %cst_19 = arith.constant 0.000000e+00 : f32
    %31 = vector.broadcast %cst_19 : f32 to vector<16x128xf32>
    %c0_20 = arith.constant 0 : index
    %c0_21 = arith.constant 0 : index
    %32 = vector.load %arg12[%c0_20, %c0_21] : memref<288x128xf32, #tpu.memory_space<vmem>>, vector<16x128xf32>
    tpu.vector_store %arg12[%c0_20, %c0_21], %31 {strides = array<i32>} : memref<288x128xf32, #tpu.memory_space<vmem>>, vector<16x128xf32>,
    %cst_22 = arith.constant 0.000000e+00 : f32
    %33 = vector.broadcast %cst_22 : f32 to vector<16x128xf32>
    %c272 = arith.constant 272 : index
    %c0_23 = arith.constant 0 : index
    %34 = vector.load %arg12[%c272, %c0_23] : memref<288x128xf32, #tpu.memory_space<vmem>>, vector<16x128xf32>
    tpu.vector_store %arg12[%c272, %c0_23], %33 {strides = array<i32>} : memref<288x128xf32, #tpu.memory_space<vmem>>, vector<16x128xf32>,
    %c16 = arith.constant 16 : index
    %c0_24 = arith.constant 0 : index
    %35 = vector.load %arg12[%c16, %c0_24] : memref<288x128xf32, #tpu.memory_space<vmem>>, vector<256x128xf32>
    tpu.vector_store %arg12[%c16, %c0_24], %30 {strides = array<i32>} : memref<288x128xf32, #tpu.memory_space<vmem>>, vector<256x128xf32>,
    %c0_25 = arith.constant 0 : index
    %c0_26 = arith.constant 0 : index
    %36 = vector.load %arg12[%c0_25, %c0_26] : memref<288x128xf32, #tpu.memory_space<vmem>>, vector<288x128xf32>
    %c1_i32 = arith.constant 1 : i32
    %37 = tpu.dynamic_rotate %36 by %c1_i32 dim 0 : vector<288x128xf32>, i32 -> vector<288x128xf32>
    %c0_27 = arith.constant 0 : index
    %c0_28 = arith.constant 0 : index
    %38 = vector.load %arg9[%c0_27, %c0_28] : memref<288x1xf32, #tpu.memory_space<vmem>>, vector<288x1xf32>
    %39 = vector.broadcast %38 : vector<288x1xf32> to vector<288x128xf32>
    %40 = arith.mulf %37, %39 : vector<288x128xf32>
    %c287_i32 = arith.constant 287 : i32
    %41 = tpu.dynamic_rotate %36 by %c287_i32 dim 0 : vector<288x128xf32>, i32 -> vector<288x128xf32>
    %c0_29 = arith.constant 0 : index
    %c0_30 = arith.constant 0 : index
    %42 = vector.load %arg10[%c0_29, %c0_30] : memref<288x1xf32, #tpu.memory_space<vmem>>, vector<288x1xf32>
    %43 = vector.broadcast %42 : vector<288x1xf32> to vector<288x128xf32>
    %44 = arith.mulf %41, %43 : vector<288x128xf32>
    %45 = arith.truncf %40 : vector<288x128xf32> to vector<288x128xbf16>
    %46 = arith.truncf %36 : vector<288x128xf32> to vector<288x128xbf16>
    %47 = arith.truncf %44 : vector<288x128xf32> to vector<288x128xbf16>
    %48 = vector.extract_strided_slice %45 {offsets = [0, 0], sizes = [256, 128], strides = [1, 1]} : vector<288x128xbf16> to vector<256x128xbf16>
    %c0_31 = arith.constant 0 : index
    %c0_32 = arith.constant 0 : index
    %c0_33 = arith.constant 0 : index
    %49 = vector.load %arg3[%c0_31, %c0_32, %c0_33] : memref<9x128x128xbf16, #tpu.memory_space<vmem>>, vector<1x128x128xbf16>
    %50 = vector.shape_cast %49 : vector<1x128x128xbf16> to vector<128x128xbf16>
    %cst_34 = arith.constant dense<0.000000e+00> : vector<256x128xf32>
    %51 = tpu.matmul %48, %50, %cst_34 {dimension_numbers = #tpu.dot_dimension_numbers<[1], [0], [0], [1], [0, 0, 1, 1], [], []>} : vector<256x128xbf16>, vector<128x128xbf16>, vector<256x128xf32> -> vector<256x128xf32>
    %52 = vector.extract_strided_slice %46 {offsets = [0, 0], sizes = [256, 128], strides = [1, 1]} : vector<288x128xbf16> to vector<256x128xbf16>
    %c1 = arith.constant 1 : index
    %c0_35 = arith.constant 0 : index
    %c0_36 = arith.constant 0 : index
    %53 = vector.load %arg3[%c1, %c0_35, %c0_36] : memref<9x128x128xbf16, #tpu.memory_space<vmem>>, vector<1x128x128xbf16>
    %54 = vector.shape_cast %53 : vector<1x128x128xbf16> to vector<128x128xbf16>
    %cst_37 = arith.constant dense<0.000000e+00> : vector<256x128xf32>
    %55 = tpu.matmul %52, %54, %cst_37 {dimension_numbers = #tpu.dot_dimension_numbers<[1], [0], [0], [1], [0, 0, 1, 1], [], []>} : vector<256x128xbf16>, vector<128x128xbf16>, vector<256x128xf32> -> vector<256x128xf32>
    %56 = arith.addf %51, %55 : vector<256x128xf32>
    %57 = vector.extract_strided_slice %47 {offsets = [0, 0], sizes = [256, 128], strides = [1, 1]} : vector<288x128xbf16> to vector<256x128xbf16>
    %c2 = arith.constant 2 : index
    %c0_38 = arith.constant 0 : index
    %c0_39 = arith.constant 0 : index
    %58 = vector.load %arg3[%c2, %c0_38, %c0_39] : memref<9x128x128xbf16, #tpu.memory_space<vmem>>, vector<1x128x128xbf16>
    %59 = vector.shape_cast %58 : vector<1x128x128xbf16> to vector<128x128xbf16>
    %cst_40 = arith.constant dense<0.000000e+00> : vector<256x128xf32>
    %60 = tpu.matmul %57, %59, %cst_40 {dimension_numbers = #tpu.dot_dimension_numbers<[1], [0], [0], [1], [0, 0, 1, 1], [], []>} : vector<256x128xbf16>, vector<128x128xbf16>, vector<256x128xf32> -> vector<256x128xf32>
    %61 = arith.addf %56, %60 : vector<256x128xf32>
    %62 = vector.extract_strided_slice %45 {offsets = [16, 0], sizes = [256, 128], strides = [1, 1]} : vector<288x128xbf16> to vector<256x128xbf16>
    %c3 = arith.constant 3 : index
    %c0_41 = arith.constant 0 : index
    %c0_42 = arith.constant 0 : index
    %63 = vector.load %arg3[%c3, %c0_41, %c0_42] : memref<9x128x128xbf16, #tpu.memory_space<vmem>>, vector<1x128x128xbf16>
    %64 = vector.shape_cast %63 : vector<1x128x128xbf16> to vector<128x128xbf16>
    %cst_43 = arith.constant dense<0.000000e+00> : vector<256x128xf32>
    %65 = tpu.matmul %62, %64, %cst_43 {dimension_numbers = #tpu.dot_dimension_numbers<[1], [0], [0], [1], [0, 0, 1, 1], [], []>} : vector<256x128xbf16>, vector<128x128xbf16>, vector<256x128xf32> -> vector<256x128xf32>
    %66 = arith.addf %61, %65 : vector<256x128xf32>
    %67 = vector.extract_strided_slice %46 {offsets = [16, 0], sizes = [256, 128], strides = [1, 1]} : vector<288x128xbf16> to vector<256x128xbf16>
    %c4 = arith.constant 4 : index
    %c0_44 = arith.constant 0 : index
    %c0_45 = arith.constant 0 : index
    %68 = vector.load %arg3[%c4, %c0_44, %c0_45] : memref<9x128x128xbf16, #tpu.memory_space<vmem>>, vector<1x128x128xbf16>
    %69 = vector.shape_cast %68 : vector<1x128x128xbf16> to vector<128x128xbf16>
    %cst_46 = arith.constant dense<0.000000e+00> : vector<256x128xf32>
    %70 = tpu.matmul %67, %69, %cst_46 {dimension_numbers = #tpu.dot_dimension_numbers<[1], [0], [0], [1], [0, 0, 1, 1], [], []>} : vector<256x128xbf16>, vector<128x128xbf16>, vector<256x128xf32> -> vector<256x128xf32>
    %71 = arith.addf %66, %70 : vector<256x128xf32>
    %72 = vector.extract_strided_slice %47 {offsets = [16, 0], sizes = [256, 128], strides = [1, 1]} : vector<288x128xbf16> to vector<256x128xbf16>
    %c5 = arith.constant 5 : index
    %c0_47 = arith.constant 0 : index
    %c0_48 = arith.constant 0 : index
    %73 = vector.load %arg3[%c5, %c0_47, %c0_48] : memref<9x128x128xbf16, #tpu.memory_space<vmem>>, vector<1x128x128xbf16>
    %74 = vector.shape_cast %73 : vector<1x128x128xbf16> to vector<128x128xbf16>
    %cst_49 = arith.constant dense<0.000000e+00> : vector<256x128xf32>
    %75 = tpu.matmul %72, %74, %cst_49 {dimension_numbers = #tpu.dot_dimension_numbers<[1], [0], [0], [1], [0, 0, 1, 1], [], []>} : vector<256x128xbf16>, vector<128x128xbf16>, vector<256x128xf32> -> vector<256x128xf32>
    %76 = arith.addf %71, %75 : vector<256x128xf32>
    %77 = vector.extract_strided_slice %45 {offsets = [32, 0], sizes = [256, 128], strides = [1, 1]} : vector<288x128xbf16> to vector<256x128xbf16>
    %c6 = arith.constant 6 : index
    %c0_50 = arith.constant 0 : index
    %c0_51 = arith.constant 0 : index
    %78 = vector.load %arg3[%c6, %c0_50, %c0_51] : memref<9x128x128xbf16, #tpu.memory_space<vmem>>, vector<1x128x128xbf16>
    %79 = vector.shape_cast %78 : vector<1x128x128xbf16> to vector<128x128xbf16>
    %cst_52 = arith.constant dense<0.000000e+00> : vector<256x128xf32>
    %80 = tpu.matmul %77, %79, %cst_52 {dimension_numbers = #tpu.dot_dimension_numbers<[1], [0], [0], [1], [0, 0, 1, 1], [], []>} : vector<256x128xbf16>, vector<128x128xbf16>, vector<256x128xf32> -> vector<256x128xf32>
    %81 = arith.addf %76, %80 : vector<256x128xf32>
    %82 = vector.extract_strided_slice %46 {offsets = [32, 0], sizes = [256, 128], strides = [1, 1]} : vector<288x128xbf16> to vector<256x128xbf16>
    %c7 = arith.constant 7 : index
    %c0_53 = arith.constant 0 : index
    %c0_54 = arith.constant 0 : index
    %83 = vector.load %arg3[%c7, %c0_53, %c0_54] : memref<9x128x128xbf16, #tpu.memory_space<vmem>>, vector<1x128x128xbf16>
    %84 = vector.shape_cast %83 : vector<1x128x128xbf16> to vector<128x128xbf16>
    %cst_55 = arith.constant dense<0.000000e+00> : vector<256x128xf32>
    %85 = tpu.matmul %82, %84, %cst_55 {dimension_numbers = #tpu.dot_dimension_numbers<[1], [0], [0], [1], [0, 0, 1, 1], [], []>} : vector<256x128xbf16>, vector<128x128xbf16>, vector<256x128xf32> -> vector<256x128xf32>
    %86 = arith.addf %81, %85 : vector<256x128xf32>
    %87 = vector.extract_strided_slice %47 {offsets = [32, 0], sizes = [256, 128], strides = [1, 1]} : vector<288x128xbf16> to vector<256x128xbf16>
    %c8 = arith.constant 8 : index
    %c0_56 = arith.constant 0 : index
    %c0_57 = arith.constant 0 : index
    %88 = vector.load %arg3[%c8, %c0_56, %c0_57] : memref<9x128x128xbf16, #tpu.memory_space<vmem>>, vector<1x128x128xbf16>
    %89 = vector.shape_cast %88 : vector<1x128x128xbf16> to vector<128x128xbf16>
    %cst_58 = arith.constant dense<0.000000e+00> : vector<256x128xf32>
    %90 = tpu.matmul %87, %89, %cst_58 {dimension_numbers = #tpu.dot_dimension_numbers<[1], [0], [0], [1], [0, 0, 1, 1], [], []>} : vector<256x128xbf16>, vector<128x128xbf16>, vector<256x128xf32> -> vector<256x128xf32>
    %91 = arith.addf %86, %90 : vector<256x128xf32>
    %c0_59 = arith.constant 0 : index
    %c0_60 = arith.constant 0 : index
    %92 = vector.load %arg7[%c0_59, %c0_60] : memref<1x128xf32, #tpu.memory_space<vmem>>, vector<1x128xf32>
    %c0_61 = arith.constant 0 : index
    %c0_62 = arith.constant 0 : index
    %93 = vector.load %arg8[%c0_61, %c0_62] : memref<1x128xf32, #tpu.memory_space<vmem>>, vector<1x128xf32>
    %cst_63 = arith.constant dense<0.000000e+00> : vector<128xf32>
    %94 = vector.multi_reduction <add>, %91, %cst_63 [0] : vector<256x128xf32> to vector<128xf32>
    %95 = vector.shape_cast %94 : vector<128xf32> to vector<1x128xf32>
    %96 = arith.mulf %91, %91 : vector<256x128xf32>
    %cst_64 = arith.constant dense<0.000000e+00> : vector<128xf32>
    %97 = vector.multi_reduction <add>, %96, %cst_64 [0] : vector<256x128xf32> to vector<128xf32>
    %98 = vector.shape_cast %97 : vector<128xf32> to vector<1x128xf32>
    %c0_65 = arith.constant 0 : index
    %c0_66 = arith.constant 0 : index
    %99 = vector.load %arg4[%c0_65, %c0_66] : memref<128x128xf32, #tpu.memory_space<vmem>>, vector<128x128xf32>
    %cst_67 = arith.constant dense<0.000000e+00> : vector<1x128xf32>
    %100 = tpu.matmul %95, %99, %cst_67 {dimension_numbers = #tpu.dot_dimension_numbers<[1], [0], [0], [1], [0, 0, 1, 1], [], []>} : vector<1x128xf32>, vector<128x128xf32>, vector<1x128xf32> -> vector<1x128xf32>
    %c0_68 = arith.constant 0 : index
    %c0_69 = arith.constant 0 : index
    %101 = vector.load %arg4[%c0_68, %c0_69] : memref<128x128xf32, #tpu.memory_space<vmem>>, vector<128x128xf32>
    %cst_70 = arith.constant dense<0.000000e+00> : vector<1x128xf32>
    %102 = tpu.matmul %98, %101, %cst_70 {dimension_numbers = #tpu.dot_dimension_numbers<[1], [0], [0], [1], [0, 0, 1, 1], [], []>} : vector<1x128xf32>, vector<128x128xf32>, vector<1x128xf32> -> vector<1x128xf32>
    %103 = arith.mulf %100, %100 : vector<1x128xf32>
    %104 = arith.subf %102, %103 : vector<1x128xf32>
    %cst_71 = arith.constant 0.000000e+00 : f32
    %105 = vector.broadcast %cst_71 : f32 to vector<1x128xf32>
    %106 = arith.maximumf %104, %105 : vector<1x128xf32>
    %cst_72 = arith.constant 9.99999974E-6 : f32
    %107 = vector.broadcast %cst_72 : f32 to vector<1x128xf32>
    %108 = arith.addf %106, %107 : vector<1x128xf32>
    %109 = math.rsqrt %108 : vector<1x128xf32>
    %110 = arith.mulf %109, %92 : vector<1x128xf32>
    %111 = arith.mulf %100, %110 : vector<1x128xf32>
    %112 = arith.subf %93, %111 : vector<1x128xf32>
    %113 = vector.broadcast %110 : vector<1x128xf32> to vector<256x128xf32>
    %114 = arith.mulf %91, %113 : vector<256x128xf32>
    %115 = vector.broadcast %112 : vector<1x128xf32> to vector<256x128xf32>
    %116 = arith.addf %114, %115 : vector<256x128xf32>
    %cst_73 = arith.constant 0.000000e+00 : f32
    %117 = vector.broadcast %cst_73 : f32 to vector<256x128xf32>
    %118 = arith.maximumf %116, %117 : vector<256x128xf32>
    %c0_74 = arith.constant 0 : index
    %c0_75 = arith.constant 0 : index
    %c0_76 = arith.constant 0 : index
    %119 = vector.load %arg11[%c0_74, %c0_75, %c0_76] : memref<1x256x128xf32, #tpu.memory_space<vmem>>, vector<1x256x128xf32>
    %120 = vector.shape_cast %119 : vector<1x256x128xf32> to vector<256x128xf32>
    %121 = vector.shape_cast %118 : vector<256x128xf32> to vector<1x256x128xf32>
    tpu.vector_store %arg11[%c0_74, %c0_75, %c0_76], %121 {strides = array<i32>} : memref<1x256x128xf32, #tpu.memory_space<vmem>>, vector<1x256x128xf32>,
    return
  }
  func.func @transform_0(%arg0: i32) -> (i32, i32, i32) {
    %c0_i32 = arith.constant 0 : i32
    %c0_i32_0 = arith.constant 0 : i32
    %c0_i32_1 = arith.constant 0 : i32
    return %arg0, %c0_i32, %c0_i32_0 : i32, i32, i32
  }
  func.func @transform_1(%arg0: i32) -> (i32, i32) {
    %c0_i32 = arith.constant 0 : i32
    %c0_i32_0 = arith.constant 0 : i32
    %c0_i32_1 = arith.constant 0 : i32
    return %c0_i32, %c0_i32_0 : i32, i32
  }
  func.func @transform_2(%arg0: i32) -> (i32, i32, i32) {
    %c0_i32 = arith.constant 0 : i32
    %c0_i32_0 = arith.constant 0 : i32
    %c0_i32_1 = arith.constant 0 : i32
    %c0_i32_2 = arith.constant 0 : i32
    return %c0_i32, %c0_i32_0, %c0_i32_1 : i32, i32, i32
  }
  func.func @transform_3(%arg0: i32) -> (i32, i32) {
    %c0_i32 = arith.constant 0 : i32
    %c0_i32_0 = arith.constant 0 : i32
    %c0_i32_1 = arith.constant 0 : i32
    return %c0_i32, %c0_i32_0 : i32, i32
  }
  func.func @transform_4(%arg0: i32) -> (i32, i32) {
    %c0_i32 = arith.constant 0 : i32
    %c0_i32_0 = arith.constant 0 : i32
    %c0_i32_1 = arith.constant 0 : i32
    return %c0_i32, %c0_i32_0 : i32, i32
  }
  func.func @transform_5(%arg0: i32) -> (i32, i32) {
    %c0_i32 = arith.constant 0 : i32
    %c0_i32_0 = arith.constant 0 : i32
    %c0_i32_1 = arith.constant 0 : i32
    return %c0_i32, %c0_i32_0 : i32, i32
  }
  func.func @transform_6(%arg0: i32) -> (i32, i32) {
    %c0_i32 = arith.constant 0 : i32
    %c0_i32_0 = arith.constant 0 : i32
    %c0_i32_1 = arith.constant 0 : i32
    return %c0_i32, %c0_i32_0 : i32, i32
  }
  func.func @transform_7(%arg0: i32) -> (i32, i32) {
    %c0_i32 = arith.constant 0 : i32
    %c0_i32_0 = arith.constant 0 : i32
    %c0_i32_1 = arith.constant 0 : i32
    return %c0_i32, %c0_i32_0 : i32, i32
  }
  func.func @transform_8(%arg0: i32) -> (i32, i32) {
    %c0_i32 = arith.constant 0 : i32
    %c0_i32_0 = arith.constant 0 : i32
    %c0_i32_1 = arith.constant 0 : i32
    return %c0_i32, %c0_i32_0 : i32, i32
  }
  func.func @transform_9(%arg0: i32) -> (i32, i32) {
    %c0_i32 = arith.constant 0 : i32
    %c0_i32_0 = arith.constant 0 : i32
    %c0_i32_1 = arith.constant 0 : i32
    return %c0_i32, %c0_i32_0 : i32, i32
  }
  func.func @transform_10(%arg0: i32) -> (i32, i32, i32) {
    %c0_i32 = arith.constant 0 : i32
    %c0_i32_0 = arith.constant 0 : i32
    %c0_i32_1 = arith.constant 0 : i32
    return %arg0, %c0_i32, %c0_i32_0 : i32, i32, i32
  }
}

</mosaic_0001>

<bundles_post_ra>
// kernel: tpu_custom_call.1
= control target key start
LH: loop header
LB: loop body
LE: loop exit
PB: predicated region body
PF: predicated region fallthrough
CT: control target
= control target key end

     0   :  { %15 = vsyncpa [#allocation4], 0  ;;  %s8806_s0 = inlined_call_operand.vmem [shape: bf16[2,256,36], index: 0, kind: input, shape index: {}]   ;;  %s8807_s1 = inlined_call_operand.vmem [shape: bf16[36,128], index: 1, kind: input, shape index: {}]   ;;  %s8808_s2 = inlined_call_operand.vmem [shape: bf16[9,128,128], index: 2, kind: input, shape index: {}]   ;;  %s8809_s3 = inlined_call_operand.vmem [shape: f32[128,128], index: 3, kind: input, shape index: {}]   ;;  %s8810_s4 = inlined_call_operand.vmem [shape: f32[1,128], index: 4, kind: input, shape index: {}]   ;;  %s8811_s5 = inlined_call_operand.vmem [shape: f32[1,128], index: 5, kind: input, shape index: {}]   ;;  %s8812_s6 = inlined_call_operand.vmem [shape: f32[1,128], index: 6, kind: input, shape index: {}]   ;;  %s8813_s7 = inlined_call_operand.vmem [shape: f32[1,128], index: 7, kind: input, shape index: {}]   ;;  %s8814_s8 = inlined_call_operand.vmem [shape: f32[288,1], index: 8, kind: input, shape index: {}]   ;;  %s8815_s9 = inlined_call_operand.vmem [shape: f32[288,1], index: 9, kind: input, shape index: {}]   ;;  %s8816_s10 = inlined_call_operand.hbm [shape: f32[2,256,128], index: 10, kind: output, shape index: {}]  }
   0x1   :  { %17 = vsyncpa [#allocation4 + $0x1], 0  ;;  %s6033_s13 = smov 0   ;;  %s6035_s14 = smov 0  }
   0x2   :  { %s6037_s15 = smov 0   ;;  %s6039_s16 = smov 0  }
   0x3 LB: > { %s6054_s17 = sadd.s32 4294967295, %s5969_s16   ;;  %s4604_s18 = sadd.s32 4294967294, %s5969_s16   ;;  %s5969_s16 = sphi %s6039_s16, %s9229_s16   ;;  %s5965_s15 = sphi %s6037_s15, %s9228_s15   ;;  %s5961_s14 = sphi %s6035_s14, %s9227_s14   ;;  %s5957_s13 = sphi %s6033_s13, %s9226_s13  }
   0x4   : > { %s6058_s19 = sadd.s32 1, %s5969_s16   ;;  %s245_s20 = sadd.s32 1, %s5965_s15 }
   0x5   : > { %s242_s21 = ssub.s32 %s5969_s16, %s6058_s19  ;;  %p255_p0 = scmp.ne.s32.totalorder %s5965_s15, %s5961_s14 }
   0x6   : > { %p243_p1 = scmp.eq.s32.totalorder %s242_s21, 0  ;;  %p256_p2 = scmp.eq.s32.totalorder %s6054_s17, 1 }
   0x7   : > { %p261_p3 = scmp.ne.s32.totalorder %s5961_s14, %s5957_s13  ;;  %p262_p4 = scmp.eq.s32.totalorder %s4604_s18, 1 }
   0x8   : > { %s6069_s22 = scalar_select %p243_p1, %s5965_s15, %s245_s20  }
   0x9   : > { %p6071_p5 = por %p256_p2, %p255_p0  ;;  %p6075_p6 = por %p262_p4, %p261_p3 }
   0xa   : > { %p4607_p7 = scmp.ge.s32.totalorder %s5969_s16, 1  ;;  %p315_p8 = scmp.lt.s32.totalorder %s5969_s16, 3 }
   0xc   : > { %p316_p9 = pnand %p4607_p7, %p315_p8 }
   0xe   : > { %319 = sbr.rel (%p316_p9) target bundleno = 1446 (0x5a6), region = 60 }
  0x13   : > { %v5814_v0 = vld [vmem:[%s8807_s1 + $0x10] ss:$0 sps:$4 sm:$0x33]   ;;  %vm540_vm0 = vcmask 1041408   ;;  %v5815_v1 = vld [vmem:[%s8807_s1 + $0x8] sm:$0xff]   ;;  %p353_p10 = scmp.lt.s32.totalorder %s6054_s17, 1 }
  0x14   : > { %5766 = vmatprep.subr.msk.bf16.mxu0 %vm540_vm0, %v5814_v0  ;;  %v542_v2 = vsel %vm540_vm0, %v5814_v0, 0  ;;  %v5816_v3 = vld [vmem:[%s8807_s1] sm:$0xff]   ;;  %vm491_vm1 = vcmask 293888   ;;  %v8818_v20 = vmov 0.0   ;;  %v6133_v21 = vld [vmem:[%s8809_s3 + $0x78] sm:$0xff]  ;;  %v6140_v22 = vld [vmem:[%s8809_s3 + $0x70] sm:$0xff] }
  0x15   : > { %5157 = vmatpush3.bf16.msra.mxu0 %v542_v2  ;;  %s354_s11 = scalar_select %p353_p10, %s6054_s17, 1  ;;  %5194 = vmatprep.subr.mxu1 %v8818_v20  ;;  %v6147_v23 = vld [vmem:[%s8809_s3 + $0x68] sm:$0xff]  ;;  %v6154_v24 = vld [vmem:[%s8809_s3 + $0x60] sm:$0xff]  ;;  %v6161_v25 = vld [vmem:[%s8809_s3 + $0x58] sm:$0xff]  ;;  %v5972_v30 = vmov 0   ;;  %vm5973_vm2 = vmmov 0  }
  0x16   : > { %5158 = vmatprep.subr.bf16.mxu0 %v5815_v1  ;;  %5195 = vmatpush3.msra.mxu1 %v6133_v21  ;;  %v6168_v26 = vld [vmem:[%s8809_s3 + $0x50] sm:$0xff]  ;;  %v6175_v27 = vld [vmem:[%s8809_s3 + $0x48] sm:$0xff]  ;;  %v6182_v28 = vld [vmem:[%s8809_s3 + $0x40] sm:$0xff]  ;;  %s350_s18 = sand.u32 1, %s5961_s14   ;;  %s4852_s25 = sshll.u32 %s6054_s17, 12 }
  0x17   : > { %s4851_s12 = sshll.u32 %s354_s11, 7  ;;  %5196 = vmatprep.subr.mxu1 %v8818_v20  ;;  %v6189_v29 = vld [vmem:[%s8809_s3 + $0x38] sm:$0xff]  ;;  %5813 = vset.pattern.permute.xlu1 %v5972_v30  ;;  %v1232_v31 = vld [vmem:[%s8814_s8 + $0x10] sm:$0xff]  ;;  %v1230_v32 = vld [vmem:[%s8814_s8] sm:$0xff]  ;;  %s4608_s20 = sshll.u32 %s350_s18, 8 }
  0x18   : > { %s6095_s21 = scalar_lea.vmem %s8806_s0, %s4851_s12  ;;  %5197 = vmatpush3.msra.mxu1 %v6140_v22  ;;  %5812 = vset.pattern.permute.xlu0 %v5972_v30  ;;  %v6201_v33 = vld [vmem:[%s8809_s3 + $0x30] sm:$0xff]  ;;  %v6208_v34 = vld [vmem:[%s8809_s3 + $0x28] sm:$0xff]  ;;  %v1233_v35 = vld [vmem:[%s8814_s8 + $0x18] sm:$0xff]  ;;  %s8748_s28 = scalar_lea.hbm %s8816_s10, %s4852_s25 }
  0x19   : > { %5159 = vmatpush3.bf16.msra.mxu0 %v5815_v1  ;;  %v5817_v4 = vld [vmem:[%s6095_s21] sm:$0xff]   ;;  %v5818_v5 = vld [vmem:[%s6095_s21 + $0x8] sm:$0xff]   ;;  %v5819_v6 = vld [vmem:[%s6095_s21 + $0x10] sm:$0xff]   ;;  %5198 = vmatprep.subr.mxu1 %v8818_v20  ;;  %s8766_s29 = scalar_lea.sflag [#allocation4], %s350_s18  ;;  %s5975_s11 = smov [#allocation3]  }
  0x1a   : > { %5160 = vmatprep.subr.bf16.mxu0 %v5816_v3  ;;  %5162 = vmatprep.mubr.msk.bf16.mxu0 %vm491_vm1, %v5817_v4  ;;  %v5820_v7 = vld [vmem:[%s6095_s21 + $0x18] sm:$0xff]   ;;  %v5821_v8 = vld [vmem:[%s6095_s21 + $0x20] sm:$0xff]   ;;  %v5822_v9 = vld [vmem:[%s6095_s21 + $0x28] sm:$0xff]   ;;  %s5913_s12 = sshll.u32 %s5975_s11, 4  ;;  %s5914_s12 = int_to_ptr.vmem [resolvable:$false] %s5913_s12 }
  0x1b   : > { %v5823_v10 = vld [vmem:[%s6095_s21 + $0x30] sm:$0xff]   ;;  %v5824_v11 = vld [vmem:[%s6095_s21 + $0x38] sm:$0xff]   ;;  %v5825_v12 = vld [vmem:[%s6095_s21 + $0x40] sm:$0xff]   ;;  %5199 = vmatpush3.msra.mxu1 %v6147_v23  ;;  %1278 = vperm.xlu1 %5813, %v1232_v31  }
  0x1c   : > { %v5826_v13 = vld [vmem:[%s6095_s21 + $0x48] sm:$0xff]   ;;  %v5827_v14 = vld [vmem:[%s6095_s21 + $0x50] sm:$0xff]   ;;  %v5828_v15 = vld [vmem:[%s6095_s21 + $0x58] sm:$0xff]   ;;  %5200 = vmatprep.subr.mxu1 %v8818_v20  ;;  %1268 = vperm.xlu0 %5812, %v1230_v32  }
  0x1d   : > { %5161 = vmatpush3.bf16.msra.mxu0 %v5816_v3  ;;  %v5829_v16 = vld [vmem:[%s6095_s21 + $0x60] sm:$0xff]   ;;  %v5830_v17 = vld [vmem:[%s6095_s21 + $0x68] sm:$0xff]   ;;  %v5831_v18 = vld [vmem:[%s6095_s21 + $0x70] sm:$0xff]   ;;  %5201 = vmatpush3.msra.mxu1 %v6154_v24 }
  0x1e   : > { %v5832_v19 = vld [vmem:[%s6095_s21 + $0x78] sm:$0xff]   ;;  %5202 = vmatprep.subr.mxu1 %v8818_v20  ;;  %v1231_v36 = vld [vmem:[%s8814_s8 + $0x8] sm:$0xff]  ;;  %v6220_v37 = vld [vmem:[%s8809_s3 + $0x20] sm:$0xff]  ;;  %5226 = vmatprep.mubr.msk.f32.mxu1 %vm5973_vm2, %v8818_v20  ;;  %s8707_s21 = scalar_lea.vmem [#allocation3], %s4608_s20  ;;  %s5915_s20 = scalar_lea.vmem %s5914_s12, 8192 }
  0x1f   : > { %5203 = vmatpush3.msra.mxu1 %v6161_v25  ;;  %1283 = vperm.xlu1 %5813, %v1233_v35   ;;  %v6229_v38 = vld [vmem:[%s8809_s3 + $0x18] sm:$0xff]  ;;  %v1556_v39 = vld [vmem:[%s8815_s9 + $0x8] sm:$0xff]  ;;  %v1555_v40 = vld [vmem:[%s8815_s9] sm:$0xff]  ;;  %s4542_s26 = sshll.u32 %s8707_s21, 4  ;;  %s8750_s26 = int_to_ptr.vmem [resolvable:$true] %s4542_s26 }
  0x20   : > { %5163 = vmatmul.mubr.msk.bf16.vlgmr.msra.gmra.mxu0 %vm491_vm1, %v5818_v5  ;;  %5204 = vmatprep.subr.mxu1 %v8818_v20  ;;  %v6242_v41 = vld [vmem:[%s8809_s3 + $0x10] sm:$0xff]  ;;  %v6249_v42 = vld [vmem:[%s8809_s3 + $0x8] sm:$0xff]  ;;  %v1558_v43 = vld [vmem:[%s8815_s9 + $0x18] sm:$0xff]  ;;  %s5909_s30 = scalar_lea.vmem %s8750_s26, 4096  ;;  %p5916_p0 = scmp.lt.s32.totalorder %s8750_s26, %s5914_s12 }
  0x21   : > { %5166 = vmatprep.mubr.msk.bf16.mxu0 %vm491_vm1, %v5819_v6  ;;  %5205 = vmatpush3.msra.mxu1 %v6168_v26  ;;  %v1557_v44 = vld [vmem:[%s8815_s9 + $0x10] sm:$0xff]  ;;  %v6262_v45 = vld [vmem:[%s8809_s3] sm:$0xff]  ;;  %v1235_v46 = vld [vmem:[%s8814_s8 + $0x28] sm:$0xff]  ;;  %p5910_p11 = scmp.ne.s32.totalorder %s8750_s26, %s5909_s30  ;;  %p5917_p1 = scmp.lt.s32.totalorder %s5915_s20, %s5909_s30 }
  0x22   : > { %5206 = vmatprep.subr.mxu1 %v8818_v20  ;;  %1273 = vperm.xlu0 %5812, %v1231_v36   ;;  %v1234_v47 = vld [vmem:[%s8814_s8 + $0x20] sm:$0xff]  ;;  %v1237_v48 = vld [vmem:[%s8814_s8 + $0x38] sm:$0xff]  ;;  %v1236_v49 = vld [vmem:[%s8814_s8 + $0x30] sm:$0xff] }
  0x23   : > { %5207 = vmatpush3.msra.mxu1 %v6175_v27  ;;  %1598 = vperm.xlu1 %5813, %v1556_v39   ;;  %v1560_v50 = vld [vmem:[%s8815_s9 + $0x28] sm:$0xff]  ;;  %v1559_v51 = vld [vmem:[%s8815_s9 + $0x20] sm:$0xff]  ;;  %v1562_v52 = vld [vmem:[%s8815_s9 + $0x38] sm:$0xff]  ;;  %p5911_p12 = pnand %p5910_p11, %p6071_p5  ;;  %p5918_p2 = por %p5917_p1, %p5916_p0 }
  0x24   : > { %5208 = vmatprep.subr.mxu1 %v8818_v20  ;;  %v1561_v53 = vld [vmem:[%s8815_s9 + $0x30] sm:$0xff]  ;;  %v1239_v54 = vld [vmem:[%s8814_s8 + $0x48] sm:$0xff]  ;;  %v1238_v55 = vld [vmem:[%s8814_s8 + $0x40] sm:$0xff] }
  0x25   : > { %5209 = vmatpush3.msra.mxu1 %v6182_v28  ;;  %v1241_v56 = vld [vmem:[%s8814_s8 + $0x58] sm:$0xff]  ;;  %v1240_v57 = vld [vmem:[%s8814_s8 + $0x50] sm:$0xff]  ;;  %v1564_v58 = vld [vmem:[%s8815_s9 + $0x48] sm:$0xff]  ;;  %p5912_p13 = pneg %p5911_p12 }
  0x26   : > { %5210 = vmatprep.subr.mxu1 %v8818_v20  ;;  %1593 = vperm.xlu0 %5812, %v1555_v40   ;;  %v1563_v59 = vld [vmem:[%s8815_s9 + $0x40] sm:$0xff]  ;;  %v1566_v60 = vld [vmem:[%s8815_s9 + $0x58] sm:$0xff]  ;;  %v1565_v61 = vld [vmem:[%s8815_s9 + $0x50] sm:$0xff] }
  0x27   : > { %5211 = vmatpush3.msra.mxu1 %v6189_v29  ;;  %1608 = vperm.xlu1 %5813, %v1558_v43   ;;  %v1243_v62 = vld [vmem:[%s8814_s8 + $0x68] sm:$0xff]  ;;  %v1242_v63 = vld [vmem:[%s8814_s8 + $0x60] sm:$0xff]  ;;  %v1245_v0 = vld [vmem:[%s8814_s8 + $0x78] sm:$0xff]  ;;  %p5919_p3 = pnand %p5918_p2, %p5912_p13 }
  0x28   : > { %5167 = vmatmul.mubr.msk.bf16.gmra.mxu0 %vm491_vm1, %v5820_v7  ;;  %5212 = vmatprep.subr.mxu1 %v8818_v20  ;;  %v1244_v1 = vld [vmem:[%s8814_s8 + $0x70] sm:$0xff]  ;;  %v1568_v2 = vld [vmem:[%s8815_s9 + $0x68] sm:$0xff]  ;;  %v1567_v3 = vld [vmem:[%s8815_s9 + $0x60] sm:$0xff] }
  0x29   : > { %5170 = vmatprep.mubr.msk.bf16.mxu0 %vm491_vm1, %v5821_v8  ;;  %5213 = vmatpush3.msra.mxu1 %v6201_v33  ;;  %v1570_v4 = vld [vmem:[%s8815_s9 + $0x78] sm:$0xff]  ;;  %v1569_v5 = vld [vmem:[%s8815_s9 + $0x70] sm:$0xff]  ;;  %v1247_v7 = vld [vmem:[%s8814_s8 + $0x88] sm:$0xff] }
  0x2a   : > { %5214 = vmatprep.subr.mxu1 %v8818_v20  ;;  %1603 = vperm.xlu0 %5812, %v1557_v44   ;;  %v1246_v8 = vld [vmem:[%s8814_s8 + $0x80] sm:$0xff]  ;;  %v1572_v31 = vld [vmem:[%s8815_s9 + $0x88] sm:$0xff] }
  0x2b   : > { %5215 = vmatpush3.msra.mxu1 %v6208_v34  ;;  %1293 = vperm.xlu1 %5813, %v1235_v46   ;;  %v1571_v32 = vld [vmem:[%s8815_s9 + $0x80] sm:$0xff] }
  0x2c   : > { %5216 = vmatprep.subr.mxu1 %v8818_v20 }
  0x2d   : > { %5217 = vmatpush3.msra.mxu1 %v6220_v37 }
  0x2e   : > { %5218 = vmatprep.subr.mxu1 %v8818_v20  ;;  %1288 = vperm.xlu0 %5812, %v1234_v47  }
  0x2f   : > { %5219 = vmatpush3.msra.mxu1 %v6229_v38  ;;  %1303 = vperm.xlu1 %5813, %v1237_v48   ;;  %v1574_v48 = vld [vmem:[%s8815_s9 + $0x98] sm:$0xff] }
  0x30   : > { %5171 = vmatmul.mubr.msk.bf16.gmra.mxu0 %vm491_vm1, %v5822_v9  ;;  %5220 = vmatprep.subr.mxu1 %v8818_v20 }
  0x31   : > { %5174 = vmatprep.mubr.msk.bf16.mxu0 %vm491_vm1, %v5823_v10  ;;  %5221 = vmatpush3.msra.mxu1 %v6242_v41 }
  0x32   : > { %5222 = vmatprep.subr.mxu1 %v8818_v20  ;;  %1298 = vperm.xlu0 %5812, %v1236_v49   ;;  %v1573_v49 = vld [vmem:[%s8815_s9 + $0x90] sm:$0xff] }
  0x33   : > { %5223 = vmatpush3.msra.mxu1 %v6249_v42  ;;  %1618 = vperm.xlu1 %5813, %v1560_v50  }
  0x34   : > { %5224 = vmatprep.subr.mxu1 %v8818_v20 }
  0x35   : > { %5225 = vmatpush3.msra.mxu1 %v6262_v45 }
  0x36   : > { %5229 = vmatprep.subr.mxu1 %v8818_v20  ;;  %1613 = vperm.xlu0 %5812, %v1559_v51  }
  0x37   : > { %1628 = vperm.xlu1 %5813, %v1562_v52  }
  0x38   : > { %5175 = vmatmul.mubr.msk.bf16.gmra.mxu0 %vm491_vm1, %v5824_v11  ;;  %v1249_v11 = vld [vmem:[%s8814_s8 + $0x98] sm:$0xff] }
  0x39   : > { %5178 = vmatprep.mubr.msk.bf16.mxu0 %vm491_vm1, %v5825_v12  ;;  %v1248_v12 = vld [vmem:[%s8814_s8 + $0x90] sm:$0xff] }
  0x3a   : > { %1623 = vperm.xlu0 %5812, %v1561_v53  }
  0x3b   : > { %1313 = vperm.xlu1 %5813, %v1239_v54  }
  0x3e   : > { %1308 = vperm.xlu0 %5812, %v1238_v55  }
  0x3f   : > { %1323 = vperm.xlu1 %5813, %v1241_v56  }
  0x40   : > { %5179 = vmatmul.mubr.msk.bf16.gmra.mxu0 %vm491_vm1, %v5826_v13 }
  0x41   : > { %5182 = vmatprep.mubr.msk.bf16.mxu0 %vm491_vm1, %v5827_v14 }
  0x42   : > { %1318 = vperm.xlu0 %5812, %v1240_v57  }
  0x43   : > { %1638 = vperm.xlu1 %5813, %v1564_v58   ;;  %v1251_v58 = vld [vmem:[%s8814_s8 + $0xa8] sm:$0xff] }
  0x46   : > { %1633 = vperm.xlu0 %5812, %v1563_v59   ;;  %v1250_v59 = vld [vmem:[%s8814_s8 + $0xa0] sm:$0xff] }
  0x47   : > { %1648 = vperm.xlu1 %5813, %v1566_v60  }
  0x48   : > { %5183 = vmatmul.mubr.msk.bf16.gmra.mxu0 %vm491_vm1, %v5828_v15 }
  0x49   : > { %5186 = vmatprep.mubr.msk.bf16.mxu0 %vm491_vm1, %v5829_v16 }
  0x4a   : > { %1643 = vperm.xlu0 %5812, %v1565_v61  }
  0x4b   : > { %1333 = vperm.xlu1 %5813, %v1243_v62  }
  0x4e   : > { %1328 = vperm.xlu0 %5812, %v1242_v63  }
  0x4f   : > { %1343 = vperm.xlu1 %5813, %v1245_v0  }
  0x50   : > { %5187 = vmatmul.mubr.msk.bf16.gmra.mxu0 %vm491_vm1, %v5830_v17 }
  0x51   : > { %5190 = vmatprep.mubr.msk.bf16.mxu0 %vm491_vm1, %v5831_v18 }
  0x52   : > { %1338 = vperm.xlu0 %5812, %v1244_v1  }
  0x53   : > { %1658 = vperm.xlu1 %5813, %v1568_v2  }
  0x56   : > { %1653 = vperm.xlu0 %5812, %v1567_v3  }
  0x57   : > { %1668 = vperm.xlu1 %5813, %v1570_v4   ;;  %v1253_v4 = vld [vmem:[%s8814_s8 + $0xb8] sm:$0xff] }
  0x58   : > { %5191 = vmatmul.mubr.msk.bf16.gmra.mxu0 %vm491_vm1, %v5832_v19 }
  0x5a   : > { %1663 = vperm.xlu0 %5812, %v1569_v5   ;;  %v1252_v5 = vld [vmem:[%s8814_s8 + $0xb0] sm:$0xff] }
  0x5b   : > { %1353 = vperm.xlu1 %5813, %v1247_v7  }
  0x5e   : > { %1348 = vperm.xlu0 %5812, %v1246_v8  }
  0x5f   : > { %1363 = vperm.xlu1 %5813, %v1249_v11  }
  0x62   : > { %1358 = vperm.xlu0 %5812, %v1248_v12  }
  0x63   : > { %1678 = vperm.xlu1 %5813, %v1572_v31  }
  0x66   : > { %1673 = vperm.xlu0 %5812, %v1571_v32  }
  0x67   : > { %1688 = vperm.xlu1 %5813, %v1574_v48   ;;  %v1578_v48 = vld [vmem:[%s8815_s9 + $0xb8] sm:$0xff] }
  0x6a   : > { %1683 = vperm.xlu0 %5812, %v1573_v49   ;;  %v1577_v49 = vld [vmem:[%s8815_s9 + $0xb0] sm:$0xff] }
  0x6b   : > { %1373 = vperm.xlu1 %5813, %v1251_v58  }
  0x6e   : > { %1368 = vperm.xlu0 %5812, %v1250_v59  }
  0x6f   : > { %1383 = vperm.xlu1 %5813, %v1253_v4  }
  0x72   : > { %1378 = vperm.xlu0 %5812, %v1252_v5  }
  0xe0   : > { %v6340_v6 = vpop.f32.mrf.mxu0 }
  0xe1   : > { %v746_v18 = vmul.f32 %v6340_v6, %v6340_v6 }
  0xe2   : > { %v6348_v9 = vpop.f32.mrf.mxu0 }
  0xe3   : > { %v744_v14 = vmul.f32 %v6348_v9, %v6348_v9 }
  0xe4   : > { %v6350_v10 = vpop.f32.mrf.mxu0 }
  0xe5   : > { %v747_v36 = vmul.f32 %v6350_v10, %v6350_v10 }
  0xe6   : > { %v6358_v13 = vpop.f32.mrf.mxu0 }
  0xe7   : > { %v707_v15 = vadd.f32 %v6358_v13, %v6348_v9  ;;  %v745_v16 = vmul.f32 %v6358_v13, %v6358_v13 }
  0xe8   : > { %v6366_v17 = vpop.f32.mrf.mxu0 }
  0xe9   : > { %v776_v19 = vadd.f32 %v745_v16, %v744_v14  ;;  %v708_v30 = vadd.f32 %v6340_v6, %v707_v15  ;;  %v750_v55 = vmul.f32 %v6366_v17, %v6366_v17 }
  0xea   : > { %v6377_v35 = vpop.f32.mrf.mxu0 }
  0xeb   : > { %v709_v39 = vadd.f32 %v6350_v10, %v708_v30  ;;  %v777_v40 = vadd.f32 %v776_v19, %v746_v18  ;;  %v748_v46 = vmul.f32 %v6377_v35, %v6377_v35  ;;  %v1576_v19 = vld [vmem:[%s8815_s9 + $0xa8] sm:$0xff]  ;;  %v1575_v30 = vld [vmem:[%s8815_s9 + $0xa0] sm:$0xff] }
  0xec   : > { %v6382_v43 = vpop.f32.mrf.mxu0  ;;  %1698 = vperm.xlu1 %5813, %v1576_v19   ;;  %1693 = vperm.xlu0 %5812, %v1575_v30  }
  0xed   : > { %v710_v44 = vadd.f32 %v709_v39, %v6377_v35  ;;  %v778_v47 = vadd.f32 %v777_v40, %v747_v36  ;;  %v751_v61 = vmul.f32 %v6382_v43, %v6382_v43 }
  0xee   : > { %v6393_v50 = vpop.f32.mrf.mxu0 }
  0xef   : > { %v779_v51 = vadd.f32 %v778_v47, %v748_v46  ;;  %v711_v52 = vadd.f32 %v710_v44, %v6393_v50  ;;  %v749_v53 = vmul.f32 %v6393_v50, %v6393_v50 }
  0xf0   : > { %v6398_v54 = vpop.f32.mrf.mxu0  ;;  %1708 = vperm.xlu1 %5813, %v1578_v48   ;;  %1703 = vperm.xlu0 %5812, %v1577_v49  }
  0xf1   : > { %v780_v56 = vadd.f32 %v779_v51, %v749_v53  ;;  %v712_v57 = vadd.f32 %v6366_v17, %v711_v52  ;;  %v754_v15 = vmul.f32 %v6398_v54, %v6398_v54 }
  0xf2   : > { %v6409_v60 = vpop.f32.mrf.mxu0 }
  0xf3   : > { %v713_v62 = vadd.f32 %v6382_v43, %v712_v57  ;;  %v781_v63 = vadd.f32 %v780_v56, %v750_v55  ;;  %v752_v2 = vmul.f32 %v6409_v60, %v6409_v60 }
  0xf4   : > { %v6414_v0 = vpop.f32.mrf.mxu0 }
  0xf5   : > { %v714_v1 = vadd.f32 %v713_v62, %v6409_v60  ;;  %v782_v3 = vadd.f32 %v781_v63, %v751_v61  ;;  %v755_v32 = vmul.f32 %v6414_v0, %v6414_v0  ;;  %v1255_v61 = vld [vmem:[%s8814_s8 + $0xc8] sm:$0xff]  ;;  %v1254_v62 = vld [vmem:[%s8814_s8 + $0xc0] sm:$0xff] }
  0xf6   : > { %v6425_v7 = vpop.f32.mrf.mxu0  ;;  %1393 = vperm.xlu1 %5813, %v1255_v61   ;;  %1388 = vperm.xlu0 %5812, %v1254_v62   ;;  %v1582_v61 = vld [vmem:[%s8815_s9 + $0xd8] sm:$0xff]  ;;  %v1581_v62 = vld [vmem:[%s8815_s9 + $0xd0] sm:$0xff] }
  0xf7   : > { %v783_v8 = vadd.f32 %v782_v3, %v752_v2  ;;  %v715_v11 = vadd.f32 %v714_v1, %v6425_v7  ;;  %v753_v12 = vmul.f32 %v6425_v7, %v6425_v7 }
  0xf8   : > { %v6430_v14 = vpop.f32.mrf.mxu0 }
  0xf9   : > { %v784_v16 = vadd.f32 %v783_v8, %v753_v12  ;;  %v716_v18 = vadd.f32 %v6398_v54, %v715_v11  ;;  %v758_v57 = vmul.f32 %v6430_v14, %v6430_v14  ;;  %v1257_v12 = vld [vmem:[%s8814_s8 + $0xd8] sm:$0xff] }
  0xfa   : > { %v6441_v31 = vpop.f32.mrf.mxu0  ;;  %1403 = vperm.xlu1 %5813, %v1257_v12  }
  0xfb   : > { %v717_v36 = vadd.f32 %v6414_v0, %v716_v18  ;;  %v785_v39 = vadd.f32 %v784_v16, %v754_v15  ;;  %v756_v46 = vmul.f32 %v6441_v31, %v6441_v31  ;;  %v1256_v15 = vld [vmem:[%s8814_s8 + $0xd0] sm:$0xff] }
  0xfc   : > { %v6446_v40 = vpop.f32.mrf.mxu0  ;;  %1398 = vperm.xlu0 %5812, %v1256_v15  }
  0xfd   : > { %v718_v44 = vadd.f32 %v717_v36, %v6441_v31  ;;  %v786_v47 = vadd.f32 %v785_v39, %v755_v32  ;;  %v759_v1 = vmul.f32 %v6446_v40, %v6446_v40 }
  0xfe   : > { %v6457_v51 = vpop.f32.mrf.mxu0 }
  0xff   : > { %v787_v52 = vadd.f32 %v786_v47, %v756_v46  ;;  %v719_v53 = vadd.f32 %v718_v44, %v6457_v51  ;;  %v757_v55 = vmul.f32 %v6457_v51, %v6457_v51  ;;  %v1580_v46 = vld [vmem:[%s8815_s9 + $0xc8] sm:$0xff]  ;;  %v1579_v47 = vld [vmem:[%s8815_s9 + $0xc0] sm:$0xff] }
 0x100   : > { %v6462_v56 = vpop.f32.mrf.mxu0  ;;  %1718 = vperm.xlu1 %5813, %v1580_v46   ;;  %1713 = vperm.xlu0 %5812, %v1579_v47  }
 0x101   : > { %v788_v58 = vadd.f32 %v787_v52, %v757_v55  ;;  %v720_v59 = vadd.f32 %v6430_v14, %v719_v53  ;;  %v762_v36 = vmul.f32 %v6462_v56, %v6462_v56 }
 0x102   : > { %v6473_v63 = vpop.f32.mrf.mxu0 }
 0x103   : > { %v721_v2 = vadd.f32 %v6446_v40, %v720_v59  ;;  %v789_v3 = vadd.f32 %v788_v58, %v758_v57  ;;  %v760_v8 = vmul.f32 %v6473_v63, %v6473_v63 }
 0x104   : > { %v6478_v4 = vpop.f32.mrf.mxu0  ;;  %1728 = vperm.xlu1 %5813, %v1582_v61   ;;  %1723 = vperm.xlu0 %5812, %v1581_v62  }
 0x105   : > { %v722_v5 = vadd.f32 %v721_v2, %v6473_v63  ;;  %v790_v11 = vadd.f32 %v789_v3, %v759_v1  ;;  %v763_v49 = vmul.f32 %v6478_v4, %v6478_v4 }
 0x106   : > { %v6489_v16 = vpop.f32.mrf.mxu0 }
 0x107   : > { %v791_v18 = vadd.f32 %v790_v11, %v760_v8  ;;  %v723_v19 = vadd.f32 %v722_v5, %v6489_v16  ;;  %v761_v30 = vmul.f32 %v6489_v16, %v6489_v16 }
 0x108   : > { %v6494_v32 = vpop.f32.mrf.mxu0 }
 0x109   : > { %v792_v39 = vadd.f32 %v791_v18, %v761_v30  ;;  %v724_v44 = vadd.f32 %v6462_v56, %v723_v19  ;;  %v766_v11 = vmul.f32 %v6494_v32, %v6494_v32  ;;  %v1259_v18 = vld [vmem:[%s8814_s8 + $0xe8] sm:$0xff]  ;;  %v1258_v19 = vld [vmem:[%s8814_s8 + $0xe0] sm:$0xff] }
 0x10a   : > { %v6505_v48 = vpop.f32.mrf.mxu0  ;;  %1413 = vperm.xlu1 %5813, %v1259_v18   ;;  %1408 = vperm.xlu0 %5812, %v1258_v19  }
 0x10b   : > { %v725_v52 = vadd.f32 %v6478_v4, %v724_v44  ;;  %v793_v53 = vadd.f32 %v792_v39, %v762_v36  ;;  %v764_v58 = vmul.f32 %v6505_v48, %v6505_v48 }
 0x10c   : > { %v6510_v55 = vpop.f32.mrf.mxu0 }
 0x10d   : > { %v726_v57 = vadd.f32 %v725_v52, %v6505_v48  ;;  %v794_v59 = vadd.f32 %v793_v53, %v763_v49  ;;  %v767_v46 = vmul.f32 %v6510_v55, %v6510_v55  ;;  %v1261_v49 = vld [vmem:[%s8814_s8 + $0xf8] sm:$0xff]  ;;  %v1260_v52 = vld [vmem:[%s8814_s8 + $0xf0] sm:$0xff] }
 0x10e   : > { %v6521_v1 = vpop.f32.mrf.mxu0  ;;  %1423 = vperm.xlu1 %5813, %v1261_v49   ;;  %1418 = vperm.xlu0 %5812, %v1260_v52  }
 0x10f   : > { %v795_v2 = vadd.f32 %v794_v59, %v764_v58  ;;  %v727_v3 = vadd.f32 %v726_v57, %v6521_v1  ;;  %v765_v5 = vmul.f32 %v6521_v1, %v6521_v1 }
 0x110   : > { %v6526_v8 = vpop.f32.mrf.mxu0 }
 0x111   : > { %v796_v12 = vadd.f32 %v795_v2, %v765_v5  ;;  %v728_v15 = vadd.f32 %v6494_v32, %v727_v3  ;;  %v1584_v2 = vld [vmem:[%s8815_s9 + $0xe8] sm:$0xff]  ;;  %v1583_v3 = vld [vmem:[%s8815_s9 + $0xe0] sm:$0xff]  ;;  %v770_v52 = vmul.f32 %v6526_v8, %v6526_v8 }
 0x112   : > { %v6537_v30 = vpop.f32.mrf.mxu0  ;;  %1738 = vperm.xlu1 %5813, %v1584_v2   ;;  %1733 = vperm.xlu0 %5812, %v1583_v3  }
 0x113   : > { %v729_v36 = vadd.f32 %v6510_v55, %v728_v15  ;;  %v797_v39 = vadd.f32 %v796_v12, %v766_v11  ;;  %v768_v61 = vmul.f32 %v6537_v30, %v6537_v30 }
 0x114   : > { %v6540_v44 = vpop.f32.mrf.mxu0 }
 0x115   : > { %v730_v47 = vadd.f32 %v729_v36, %v6537_v30  ;;  %v798_v57 = vadd.f32 %v797_v39, %v767_v46  ;;  %v1586_v36 = vld [vmem:[%s8815_s9 + $0xf8] sm:$0xff]  ;;  %v1585_v39 = vld [vmem:[%s8815_s9 + $0xf0] sm:$0xff]  ;;  %v771_v3 = vmul.f32 %v6540_v44, %v6540_v44 }
 0x116   : > { %v6551_v53 = vpop.f32.mrf.mxu0  ;;  %1748 = vperm.xlu1 %5813, %v1586_v36   ;;  %1743 = vperm.xlu0 %5812, %v1585_v39  }
 0x117   : > { %v731_v58 = vadd.f32 %v730_v47, %v6551_v53  ;;  %v799_v11 = vadd.f32 %v798_v57, %v768_v61  ;;  %v769_v12 = vmul.f32 %v6551_v53, %v6551_v53  ;;  %v1262_v61 = vld [vmem:[%s8814_s8 + $0x100] sm:$0xff] }
 0x118   : > { %v6554_v59 = vpop.f32.mrf.mxu0 }
 0x119   : > { %v732_v62 = vadd.f32 %v6526_v8, %v731_v58  ;;  %v800_v47 = vadd.f32 %v799_v11, %v769_v12  ;;  %v1263_v58 = vld [vmem:[%s8814_s8 + $0x108] sm:$0xff] }
 0x11a   : > { %v6565_v5 = vpop.f32.mrf.mxu0  ;;  %1433 = vperm.xlu1 %5813, %v1263_v58   ;;  %1428 = vperm.xlu0 %5812, %v1262_v61   ;;  %v1588_v12 = vld [vmem:[%s8815_s9 + $0x108] sm:$0xff] }
 0x11b   : > { %v733_v15 = vadd.f32 %v6540_v44, %v732_v62  ;;  %v801_v62 = vadd.f32 %v800_v47, %v770_v52  ;;  %v772_v39 = vmul.f32 %v6565_v5, %v6565_v5  ;;  %v1264_v52 = vld [vmem:[%s8814_s8 + $0x110] sm:$0xff] }
 0x11c   : > { %v6570_v18 = vpop.f32.mrf.mxu0 }
 0x11d   : > { %v734_v19 = vadd.f32 %v733_v15, %v6565_v5  ;;  %v1587_v15 = vld [vmem:[%s8815_s9 + $0x100] sm:$0xff] }
 0x11e   : > { %v6579_v46 = vpop.f32.mrf.mxu0  ;;  %1758 = vperm.xlu1 %5813, %v1588_v12   ;;  %1753 = vperm.xlu0 %5812, %v1587_v15   ;;  %v774_v15 = vmul.f32 %v6554_v59, %v6554_v59 }
 0x11f   : > { %v735_v49 = vadd.f32 %v734_v19, %v6579_v46  ;;  %v802_v19 = vadd.f32 %v801_v62, %v771_v3  ;;  %v773_v58 = vmul.f32 %v6579_v46, %v6579_v46  ;;  %v1589_v3 = vld [vmem:[%s8815_s9 + $0x110] sm:$0xff] }
 0x121   : > { %v736_v57 = vadd.f32 %v6554_v59, %v735_v49  ;;  %v1265_v49 = vld [vmem:[%s8814_s8 + $0x118] sm:$0xff] }
 0x122   : > { %1443 = vperm.xlu1 %5813, %v1265_v49   ;;  %1438 = vperm.xlu0 %5812, %v1264_v52  }
 0x123   : > { %v737_v2 = vadd.f32 %v6570_v18, %v736_v57  ;;  %v803_v57 = vadd.f32 %v802_v19, %v772_v39 }
 0x125   : > { %v738_v11 = vrot.slane %v737_v2, 4 }
 0x126   : > { %1763 = vperm.xlu0 %5812, %v1589_v3  }
 0x127   : > { %v739_v36 = vadd.f32 %v738_v11, %v737_v2  ;;  %v1590_v2 = vld [vmem:[%s8815_s9 + $0x118] sm:$0xff]  ;;  %v804_v11 = vadd.f32 %v803_v57, %v773_v58 }
 0x128   : > { %1768 = vperm.xlu1 %5813, %v1590_v2  }
 0x129   : > { %v740_v47 = vrot.slane %v739_v36, 2  ;;  %v805_v19 = vadd.f32 %v804_v11, %v774_v15 }
 0x12b   : > { %v741_v61 = vadd.f32 %v740_v47, %v739_v36  ;;  %v775_v36 = vmul.f32 %v6570_v18, %v6570_v18  ;;  %v6670_v47 = vpop.permute.xlu1 %1278 }
 0x12d   : > { %v742_v62 = vrot.slane %v741_v61, 1  ;;  %v806_v39 = vadd.f32 %v805_v19, %v775_v36  ;;  %v5838_v19 = vld [vmem:[%s8808_s2 + $0x38] sm:$0xff]  }
 0x12f   : > { %v743_v12 = vadd.f32 %v742_v62, %v741_v61  ;;  %v6672_v49 = vpop.permute.xlu1 %1283 }
 0x131   : > { %5227 = vmatmul.mubr.f32.vlgmr.msra.gmra.mxu1 %v743_v12 }
 0x132   : > { %5230 = vmatpush3.msra.mxu1 %v6133_v21  ;;  %5261 = vmatprep.mubr.msk.f32.mxu1 %vm5973_vm2, %v8818_v20  ;;  %v807_v21 = vrot.slane %v806_v39, 4 }
 0x133   : > { %5231 = vmatprep.subr.mxu1 %v8818_v20  ;;  %v6674_v52 = vpop.permute.xlu1 %1598 }
 0x134   : > { %5232 = vmatpush3.msra.mxu1 %v6140_v22  ;;  %v808_v22 = vadd.f32 %v807_v21, %v806_v39  ;;  %v5840_v21 = vld [vmem:[%s8808_s2 + $0x30] sm:$0xff]  }
 0x135   : > { %5233 = vmatprep.subr.mxu1 %v8818_v20 }
 0x136   : > { %5234 = vmatpush3.msra.mxu1 %v6147_v23  ;;  %v809_v23 = vrot.slane %v808_v22, 2 }
 0x137   : > { %5235 = vmatprep.subr.mxu1 %v8818_v20  ;;  %v6678_v58 = vpop.permute.xlu1 %1608 }
 0x138   : > { %5236 = vmatpush3.msra.mxu1 %v6154_v24  ;;  %v1269_v24 = vpop.permute.xlu0 %1268 }
 0x139   : > { %5237 = vmatprep.subr.mxu1 %v8818_v20 }
 0x13a   : > { %5238 = vmatpush3.msra.mxu1 %v6161_v25  ;;  %v6644_v25 = vrot.slane %v8818_v20, 7 }
 0x13b   : > { %5239 = vmatprep.subr.mxu1 %v8818_v20  ;;  %v6682_v62 = vpop.permute.xlu1 %1293 }
 0x13c   : > { %5240 = vmatpush3.msra.mxu1 %v6168_v26  ;;  %8911 = vst [vmem:[#allocation6_spill] sm:$0xff] %v6644_v25  ;;  %v810_v26 = vadd.f32 %v809_v23, %v808_v22  ;;  %v5837_v22 = vld [vmem:[%s8808_s2 + $0x58] sm:$0xff]  }
 0x13d   : > { %5241 = vmatprep.subr.mxu1 %v8818_v20 }
 0x13e   : > { %5242 = vmatpush3.msra.mxu1 %v6175_v27  ;;  %v1274_v27 = vpop.permute.xlu0 %1273 }
 0x13f   : > { %5243 = vmatprep.subr.mxu1 %v8818_v20  ;;  %v6686_v3 = vpop.permute.xlu1 %1303 }
 0x140   : > { %5244 = vmatpush3.msra.mxu1 %v6182_v28  ;;  %v1446_v28 = vmul.f32 %v1269_v24, %v6644_v25  ;;  %v5841_v24 = vld [vmem:[%s8808_s2 + $0x28] sm:$0xff]  }
 0x141   : > { %5245 = vmatprep.subr.mxu1 %v8818_v20 }
 0x142   : > { %5246 = vmatpush3.msra.mxu1 %v6189_v29  ;;  %v1447_v29 = vmul.f32 %v1274_v27, %v6644_v25  ;;  %v6676_v57 = vpop.permute.xlu0 %1593 }
 0x143   : > { %5247 = vmatprep.subr.mxu1 %v8818_v20  ;;  %v6690_v12 = vpop.permute.xlu1 %1618 }
 0x144   : > { %5248 = vmatpush3.msra.mxu1 %v6201_v33  ;;  %v811_v33 = vrot.slane %v810_v26, 1  ;;  %8912 = vst [vmem:[#allocation7_spill] sm:$0xff] %v6690_v12 }
 0x145   : > { %5249 = vmatprep.subr.mxu1 %v8818_v20 }
 0x146   : > { %5250 = vmatpush3.msra.mxu1 %v6208_v34  ;;  %v1807_v34 = vpack.c.bf16 %v1447_v29, %v1446_v28  ;;  %v6680_v61 = vpop.permute.xlu0 %1603  ;;  %v5839_v28 = vld [vmem:[%s8808_s2 + $0x50] sm:$0xff]   ;;  %v5843_v29 = vld [vmem:[%s8808_s2 + $0x20] sm:$0xff]  }
 0x147   : > { %5251 = vmatprep.subr.mxu1 %v8818_v20  ;;  %v6697_v36 = vpop.permute.xlu1 %1628 }
 0x148   : > { %5252 = vmatpush3.msra.mxu1 %v6220_v37  ;;  %v812_v37 = vadd.f32 %v811_v33, %v810_v26  ;;  %8913 = vst [vmem:[#allocation8_spill] sm:$0xff] %v6697_v36 }
 0x149   : > { %5253 = vmatprep.subr.mxu1 %v8818_v20 }
 0x14a   : > { %5254 = vmatpush3.msra.mxu1 %v6229_v38  ;;  %v5833_v38 = vld [vmem:[%s8808_s2 + $0x78] sm:$0xff]   ;;  %v6684_v2 = vpop.permute.xlu0 %1288 }
 0x14b   : > { %5255 = vmatprep.subr.mxu1 %v8818_v20  ;;  %5264 = vmatprep.subr.bf16.mxu0 %v5833_v38  ;;  %v6707_v23 = vpop.permute.xlu1 %1313 }
 0x14c   : > { %5256 = vmatpush3.msra.mxu1 %v6242_v41  ;;  %v5834_v41 = vld [vmem:[%s8808_s2 + $0x70] sm:$0xff]   ;;  %5265 = vmatpush3.bf16.msra.mxu0 %v5833_v38 }
 0x14d   : > { %5257 = vmatprep.subr.mxu1 %v8818_v20  ;;  %5266 = vmatprep.subr.bf16.mxu0 %v5834_v41 }
 0x14e   : > { %5258 = vmatpush3.msra.mxu1 %v6249_v42  ;;  %v5835_v42 = vld [vmem:[%s8808_s2 + $0x68] sm:$0xff]   ;;  %v6688_v11 = vpop.permute.xlu0 %1298 }
 0x14f   : > { %5259 = vmatprep.subr.mxu1 %v8818_v20  ;;  %v6714_v27 = vpop.permute.xlu1 %1323 }
 0x150   : > { %5260 = vmatpush3.msra.mxu1 %v6262_v45  ;;  %5267 = vmatpush3.bf16.msra.mxu0 %v5834_v41  ;;  %v5836_v45 = vld [vmem:[%s8808_s2 + $0x60] sm:$0xff]   ;;  %8915 = vst [vmem:[#allocation10_spill] sm:$0xff] %v6714_v27  ;;  %v5842_v41 = vld [vmem:[%s8808_s2 + $0x48] sm:$0xff]  }
 0x151   : > { %5262 = vmatmul.mubr.f32.vlgmr.msra.gmra.mxu1 %v812_v37  ;;  %5268 = vmatprep.subr.bf16.mxu0 %v5835_v42 }
 0x152   : > { %5328 = vmatprep.mubr.bf16.mxu1 %v1807_v34  ;;  %v6692_v15 = vpop.permute.xlu0 %1613  ;;  %5312 = vmatprep.subr.bf16.mxu1 %v5838_v19  ;;  %v5844_v34 = vld [vmem:[%s8808_s2 + $0x18] sm:$0xff]  }
 0x153   : > { %5313 = vmatpush3.bf16.msra.mxu1 %v5838_v19  ;;  %v6727_v37 = vpop.permute.xlu1 %1638 }
 0x154   : > { %5269 = vmatpush3.bf16.msra.mxu0 %v5835_v42  ;;  %5314 = vmatprep.subr.bf16.mxu1 %v5840_v21  ;;  %8917 = vst [vmem:[#allocation12_spill] sm:$0xff] %v6727_v37 }
 0x155   : > { %5270 = vmatprep.subr.bf16.mxu0 %v5836_v45 }
 0x156   : > { %v6699_v39 = vpop.permute.xlu0 %1623 }
 0x157   : > { %8914 = vst [vmem:[#allocation9_spill] sm:$0xff] %v6699_v39  ;;  %5315 = vmatpush3.bf16.msra.mxu1 %v5840_v21  ;;  %v5845_v21 = vld [vmem:[%s8808_s2 + $0x40] sm:$0xff]  }
 0x158   : > { %5271 = vmatpush3.bf16.msra.mxu0 %v5836_v45  ;;  %5316 = vmatprep.subr.bf16.mxu1 %v5841_v24  ;;  %v5846_v45 = vld [vmem:[%s8808_s2 + $0x10] sm:$0xff]  }
 0x159   : > { %5272 = vmatprep.subr.bf16.mxu0 %v5837_v22 }
 0x15a   : > { %v6712_v26 = vpop.permute.xlu0 %1308 }
 0x15b   : > { %5317 = vmatpush3.bf16.msra.mxu1 %v5841_v24  ;;  %v5847_v24 = vld [vmem:[%s8808_s2 + $0x8] sm:$0xff]  }
 0x15c   : > { %5273 = vmatpush3.bf16.msra.mxu0 %v5837_v22  ;;  %5318 = vmatprep.subr.bf16.mxu1 %v5843_v29  ;;  %v6740_v22 = vpop.permute.xlu1 %1648 }
 0x15d   : > { %5274 = vmatprep.subr.bf16.mxu0 %v5839_v28  ;;  %8919 = vst [vmem:[#allocation14_spill] sm:$0xff] %v6740_v22 }
 0x15e   : > { %v6722_v33 = vpop.permute.xlu0 %1318 }
 0x15f   : > { %8916 = vst [vmem:[#allocation11_spill] sm:$0xff] %v6722_v33  ;;  %5319 = vmatpush3.bf16.msra.mxu1 %v5843_v29  ;;  %v8817_v29 = vmov 0.0|0.0  }
 0x160   : > { %5275 = vmatpush3.bf16.msra.mxu0 %v5839_v28  ;;  %5320 = vmatprep.subr.bf16.mxu1 %v5844_v34 }
 0x161   : > { %5276 = vmatprep.subr.bf16.mxu0 %v5842_v41  ;;  %5280 = vmatprep.mubr.bf16.mxu0 %v8817_v29 }
 0x162   : > { %v6729_v38 = vpop.permute.xlu0 %1633 }
 0x163   : > { %8918 = vst [vmem:[#allocation13_spill] sm:$0xff] %v6729_v38  ;;  %5321 = vmatpush3.bf16.msra.mxu1 %v5844_v34  ;;  %v6748_v34 = vpop.permute.xlu1 %1333 }
 0x164   : > { %5277 = vmatpush3.bf16.msra.mxu0 %v5842_v41  ;;  %5322 = vmatprep.subr.bf16.mxu1 %v5846_v45  ;;  %8921 = vst [vmem:[#allocation16_spill] sm:$0xff] %v6748_v34 }
 0x165   : > { %5278 = vmatprep.subr.bf16.mxu0 %v5845_v21 }
 0x166   : > { %v6745_v28 = vpop.permute.xlu0 %1643 }
 0x167   : > { %5323 = vmatpush3.bf16.msra.mxu1 %v5846_v45  ;;  %8920 = vst [vmem:[#allocation15_spill] sm:$0xff] %v6745_v28  ;;  %v5849_v45 = vld [vmem:[%s8808_s2] sm:$0xff]  }
 0x168   : > { %5279 = vmatpush3.bf16.msra.mxu0 %v5845_v21  ;;  %5324 = vmatprep.subr.bf16.mxu1 %v5847_v24  ;;  %v6761_v21 = vpop.permute.xlu1 %1343 }
 0x169   : > { %8924 = vst [vmem:[#allocation19_spill] sm:$0xff] %v6761_v21 }
 0x16a   : > { %v6750_v41 = vpop.permute.xlu0 %1328 }
 0x16b   : > { %5325 = vmatpush3.bf16.msra.mxu1 %v5847_v24  ;;  %8922 = vst [vmem:[#allocation17_spill] sm:$0xff] %v6750_v41 }
 0x16c   : > { %5326 = vmatprep.subr.bf16.mxu1 %v5849_v45  ;;  %v6765_v29 = vpop.permute.xlu1 %1658 }
 0x16d   : > { %8926 = vst [vmem:[#allocation21_spill] sm:$0xff] %v6765_v29 }
 0x16e   : > { %v6763_v24 = vpop.permute.xlu0 %1338 }
 0x16f   : > { %5327 = vmatpush3.bf16.msra.mxu1 %v5849_v45  ;;  %8925 = vst [vmem:[#allocation20_spill] sm:$0xff] %v6763_v24  ;;  %v6782_v24 = vld [vmem:[%s8808_s2 + $0xf8] sm:$0xff]  }
 0x170   : > { %v6769_v34 = vpop.permute.xlu1 %1668  ;;  %8933 = vst [vmem:[#allocation28_spill] sm:$0xff] %v6782_v24  ;;  %5408 = vmatprep.subr.bf16.mxu1 %v6782_v24 }
 0x171   : > { %8928 = vst [vmem:[#allocation23_spill] sm:$0xff] %v6769_v34 }
 0x172   : > { %v6767_v20 = vpop.permute.xlu0 %1653 }
 0x173   : > { %8927 = vst [vmem:[#allocation22_spill] sm:$0xff] %v6767_v20 }
 0x174   : > { %v6773_v28 = vpop.permute.xlu1 %1353 }
 0x175   : > { %8930 = vst [vmem:[#allocation25_spill] sm:$0xff] %v6773_v28  ;;  %v977_v28 = vlaneseq }
 0x176   : > { %v6771_v41 = vpop.permute.xlu0 %1663 }
 0x177   : > { %8929 = vst [vmem:[#allocation24_spill] sm:$0xff] %v6771_v41  ;;  %v6802_v24 = vshrl.u32 %v977_v28, 7 }
 0x178   : > { %v6777_v38 = vpop.permute.xlu1 %1363 }
 0x179   : > { %8932 = vst [vmem:[#allocation27_spill] sm:$0xff] %v6777_v38  ;;  %v705_v38 = vld [vmem:[%s8810_s4] sm:$0x1]  ;;  %vm1193_vm3 = vcmp.lt.s32.totalorder %v6802_v24, 1  ;;  %vm1518_vm4 = vcmp.lt.s32.totalorder %v6802_v24, 7 }
 0x1f1   : > { %v895_v42 = vpop.f32.mrf.mxu1 }
 0x1f2   : > { %v969_v27 = vmul.f32 %v895_v42, %v895_v42 }
 0x1f3   : > { %v5228_v19 = vpop.f32.mrf.mxu1 }
 0x1f4   : > { %v6758_v19 = vld [vmem:[%s8808_s2 + $0xb8] sm:$0xff]  }
 0x1f5   : > { %8923 = vst [vmem:[#allocation18_spill] sm:$0xff] %v6758_v19  ;;  %5360 = vmatprep.subr.bf16.mxu0 %v6758_v19  ;;  %v6775_v19 = vpop.permute.xlu0 %1348 }
 0x1f6   : > { %8931 = vst [vmem:[#allocation26_spill] sm:$0xff] %v6775_v19 }
 0x1f9   : > { %v6784_v34 = vpop.permute.xlu0 %1358 }
 0x1fa   : > { %8934 = vst [vmem:[#allocation29_spill] sm:$0xff] %v6784_v34 }
 0x211   : > { %v965_v33 = vpop.f32.mrf.mxu1 }
 0x212   : > { %v970_v22 = vsub.f32 %v965_v33, %v969_v27  ;;  %v6787_v27 = vpop.permute.xlu1 %1678  ;;  %v6789_v33 = vpop.permute.xlu0 %1673 }
 0x213   : > { %v5263_v37 = vpop.f32.mrf.mxu1  ;;  %8935 = vst [vmem:[#allocation30_spill] sm:$0xff] %v6787_v27  ;;  %8936 = vst [vmem:[#allocation31_spill] sm:$0xff] %v6789_v33 }
 0x214   : > { %v971_v45 = vmax.f32 %v970_v22, 0.0 }
 0x216   : > { %v972_v21 = vadd.f32 1e-05, %v971_v45  ;;  %v6791_v37 = vpop.permute.xlu1 %1688  ;;  %v6793_v22 = vpop.permute.xlu0 %1683 }
 0x217   : > { %8937 = vst [vmem:[#allocation32_spill] sm:$0xff] %v6791_v37  ;;  %8938 = vst [vmem:[#allocation33_spill] sm:$0xff] %v6793_v22  ;;  %v706_v37 = vld [vmem:[%s8811_s5] sm:$0x1]  ;;  %v6810_v22 = vsub.s32 0, %v6802_v24 }
 0x218   : > { %5905 = vrsqrt.f32 %v972_v21 }
 0x219   : > { %8942 = vst [vmem:[#allocation37_spill] sm:$0xff] %v6810_v22 }
 0x21a   : > { %v6798_v19 = vpop.permute.xlu1 %1373  ;;  %v6800_v21 = vpop.permute.xlu0 %1368 }
 0x21b   : > { %8939 = vst [vmem:[#allocation34_spill] sm:$0xff] %v6798_v19  ;;  %8940 = vst [vmem:[#allocation35_spill] sm:$0xff] %v6800_v21 }
 0x21e   : > { %v6807_v33 = vpop.permute.xlu1 %1383  ;;  %v6812_v41 = vpop.permute.xlu0 %1378 }
 0x21f   : > { %8941 = vst [vmem:[#allocation36_spill] sm:$0xff] %v6807_v33  ;;  %8943 = vst [vmem:[#allocation38_spill] sm:$0xff] %v6812_v41 }
 0x222   : > { %v6823_v21 = vpop.permute.xlu0 %1693 }
 0x223   : > { %8947 = vst [vmem:[#allocation41_spill] sm:$0xff] %v6823_v21 }
 0x225   : > { %v5906_v45 = vpop.eup %5905 }
 0x226   : > { %v974_v34 = vmul.f32 %v5906_v45, %v705_v38  ;;  %v6815_v38 = vpop.permute.xlu1 %1698 }
 0x227   : > { %8944 = vst [vmem:[#allocation39_spill] sm:$0xff] %v6815_v38 }
 0x228   : > { %v975_v27 = vmul.f32 %v974_v34, %v895_v42  ;;  %v980_v19 = vrot.slane %v974_v34, %v6810_v22  ;;  %v8945_v42 = vmov 0.0  }
 0x229   : > { %v6821_v45 = vrot.slane %v8945_v42, 1 }
 0x22a   : > { %v976_v29 = vsub.f32 %v706_v37, %v975_v27  ;;  %v1011_v33 = vmul.f32 %v6554_v59, %v980_v19  ;;  %v1012_v20 = vmul.f32 %v6570_v18, %v980_v19  ;;  %v982_v37 = vmul.f32 %v980_v19, %v6358_v13 }
 0x22b   : > { %8946 = vst [vmem:[#allocation40_spill] sm:$0xff] %v6821_v45  ;;  %v6835_v34 = vmul.f32 %v6676_v57, %v6821_v45  ;;  %v983_v59 = vmul.f32 %v6340_v6, %v980_v19  ;;  %v984_v18 = vmul.f32 %v6350_v10, %v980_v19  ;;  %v986_v42 = vmul.f32 %v980_v19, %v6393_v50 }
 0x22c   : > { %v6818_v28 = vrot.slane %v976_v29, %v6810_v22  ;;  %v981_v29 = vmul.f32 %v980_v19, %v6348_v9  ;;  %v6839_v22 = vpop.permute.xlu1 %1708  ;;  %v987_v41 = vmul.f32 %v6366_v17, %v980_v19  ;;  %v988_v57 = vmul.f32 %v6382_v43, %v980_v19 }
 0x22d   : > { %8948 = vst [vmem:[#allocation42_spill] sm:$0xff] %v6835_v34  ;;  %8949 = vst [vmem:[#allocation43_spill] sm:$0xff] %v6839_v22  ;;  %v989_v9 = vmul.f32 %v980_v19, %v6409_v60  ;;  %v1010_v13 = vmul.f32 %v980_v19, %v6579_v46  ;;  %v990_v34 = vmul.f32 %v980_v19, %v6425_v7 }
 0x22e   : > { %v6828_v36 = vadd.f32 %v6818_v28, %v1011_v33  ;;  %v6831_v27 = vadd.f32 %v6818_v28, %v1012_v20  ;;  %v985_v33 = vmul.f32 %v980_v19, %v6377_v35  ;;  %v6845_v20 = vpop.permute.xlu0 %1703  ;;  %v991_v6 = vmul.f32 %v6398_v54, %v980_v19 }
 0x22f   : > { %8950 = vst [vmem:[#allocation44_spill] sm:$0xff] %v6845_v20  ;;  %v992_v10 = vmul.f32 %v6414_v0, %v980_v19  ;;  %v993_v35 = vmul.f32 %v980_v19, %v6441_v31  ;;  %v994_v50 = vmul.f32 %v980_v19, %v6457_v51  ;;  %v995_v22 = vmul.f32 %v6430_v14, %v980_v19 }
 0x230   : > { %v1009_v17 = vmul.f32 %v980_v19, %v6565_v5  ;;  %v1048_v43 = vadd.f32 %v6818_v28, %v1010_v13  ;;  %v996_v60 = vmul.f32 %v6446_v40, %v980_v19  ;;  %v997_v46 = vmul.f32 %v980_v19, %v6473_v63  ;;  %v6867_v20 = vpop.permute.xlu1 %1393 }
 0x231   : > { %v998_v7 = vmul.f32 %v980_v19, %v6489_v16  ;;  %v999_v54 = vmul.f32 %v6462_v56, %v980_v19  ;;  %v1000_v0 = vmul.f32 %v6478_v4, %v980_v19  ;;  %v1001_v31 = vmul.f32 %v980_v19, %v6505_v48  ;;  %8951 = vst [vmem:[#allocation45_spill] sm:$0xff] %v6867_v20 }
 0x232   : > { %v1002_v51 = vmul.f32 %v980_v19, %v6521_v1  ;;  %v1047_v14 = vadd.f32 %v6818_v28, %v1009_v17  ;;  %v1003_v5 = vmul.f32 %v6494_v32, %v980_v19  ;;  %v1004_v40 = vmul.f32 %v6510_v55, %v980_v19  ;;  %v6873_v13 = vpop.permute.xlu0 %1388 }
 0x233   : > { %v1005_v63 = vmul.f32 %v980_v19, %v6537_v30  ;;  %v1006_v16 = vmul.f32 %v980_v19, %v6551_v53  ;;  %8952 = vst [vmem:[#allocation46_spill] sm:$0xff] %v6873_v13  ;;  %v1007_v56 = vmul.f32 %v6526_v8, %v980_v19  ;;  %v1008_v4 = vmul.f32 %v6540_v44, %v980_v19 }
 0x234   : > { %v6877_v48 = vmax.f32 %v1048_v43, 0.0  ;;  %v1019_v1 = vadd.f32 %v6818_v28, %v981_v29  ;;  %v1020_v17 = vadd.f32 %v6818_v28, %v982_v37  ;;  %v1021_v32 = vadd.f32 %v6818_v28, %v983_v59 }
 0x235   : > { %v1022_v55 = vadd.f32 %v6818_v28, %v984_v18  ;;  %v1023_v30 = vadd.f32 %v6818_v28, %v985_v33  ;;  %v6884_v20 = vmax.f32 %v1047_v14, 0.0  ;;  %v1024_v53 = vadd.f32 %v6818_v28, %v986_v42  ;;  %v6897_v14 = vpop.permute.xlu1 %1403 }
 0x236   : > { %8953 = vst [vmem:[#allocation47_spill] sm:$0xff] %v6877_v48  ;;  %v1025_v8 = vadd.f32 %v6818_v28, %v987_v41  ;;  %v1026_v44 = vadd.f32 %v6818_v28, %v988_v57  ;;  %v1027_v19 = vadd.f32 %v6818_v28, %v989_v9  ;;  %v1028_v29 = vadd.f32 %v6818_v28, %v990_v34 }
 0x237   : > { %8954 = vst [vmem:[#allocation48_spill] sm:$0xff] %v6884_v20  ;;  %v1029_v37 = vadd.f32 %v6818_v28, %v991_v6  ;;  %v1030_v59 = vadd.f32 %v6818_v28, %v992_v10  ;;  %v1031_v33 = vadd.f32 %v6818_v28, %v993_v35  ;;  %v1032_v43 = vadd.f32 %v6818_v28, %v994_v50  ;;  %v6903_v6 = vpop.permute.xlu0 %1398 }
 0x238   : > { %v1033_v42 = vadd.f32 %v6818_v28, %v995_v22  ;;  %8955 = vst [vmem:[#allocation49_spill] sm:$0xff] %v6897_v14  ;;  %v1034_v41 = vadd.f32 %v6818_v28, %v996_v60  ;;  %v1035_v57 = vadd.f32 %v6818_v28, %v997_v46  ;;  %v1036_v34 = vadd.f32 %v6818_v28, %v998_v7 }
 0x239   : > { %v1046_v9 = vadd.f32 %v6818_v28, %v1008_v4  ;;  %8956 = vst [vmem:[#allocation50_spill] sm:$0xff] %v6903_v6  ;;  %v1037_v10 = vadd.f32 %v6818_v28, %v999_v54  ;;  %v1038_v35 = vadd.f32 %v6818_v28, %v1000_v0  ;;  %v1039_v50 = vadd.f32 %v6818_v28, %v1001_v31 }
 0x23a   : > { %v1040_v22 = vadd.f32 %v6818_v28, %v1002_v51  ;;  %v1041_v18 = vadd.f32 %v6818_v28, %v1003_v5  ;;  %v1042_v60 = vadd.f32 %v6818_v28, %v1004_v40  ;;  %v1043_v46 = vadd.f32 %v6818_v28, %v1005_v63 }
 0x23b   : > { %v1044_v7 = vadd.f32 %v6818_v28, %v1006_v16  ;;  %v1045_v4 = vadd.f32 %v6818_v28, %v1007_v56  ;;  %v6914_v14 = vmax.f32 %v1019_v1, 0.0  ;;  %v6916_v6 = vmax.f32 %v1020_v17, 0.0  ;;  %v6936_v56 = vpop.permute.xlu1 %1718 }
 0x23c   : > { %v6918_v54 = vmax.f32 %v1021_v32, 0.0  ;;  %v6920_v0 = vmax.f32 %v1046_v9, 0.0  ;;  %v6922_v31 = vmax.f32 %v1022_v55, 0.0  ;;  %v6924_v51 = vmax.f32 %v1023_v30, 0.0  ;;  %8965 = vst [vmem:[#allocation59_spill] sm:$0xff] %v6936_v56  ;;  %v6946_v30 = vpop.permute.xlu0 %1713 }
 0x23d   : > { %v6926_v5 = vmax.f32 %v1024_v53, 0.0  ;;  %v6928_v40 = vmax.f32 %v1025_v8, 0.0  ;;  %v6930_v63 = vmax.f32 %v1026_v44, 0.0  ;;  %v6932_v16 = vmax.f32 %v1027_v19, 0.0  ;;  %8970 = vst [vmem:[#allocation64_spill] sm:$0xff] %v6946_v30 }
 0x23e   : > { %8957 = vst [vmem:[#allocation51_spill] sm:$0xff] %v6918_v54  ;;  %8958 = vst [vmem:[#allocation52_spill] sm:$0xff] %v6920_v0  ;;  %v6934_v28 = vmax.f32 %v1028_v29, 0.0  ;;  %v6938_v1 = vmax.f32 %v1029_v37, 0.0  ;;  %v6940_v17 = vmax.f32 %v1030_v59, 0.0  ;;  %v6942_v32 = vmax.f32 %v1031_v33, 0.0 }
 0x23f   : > { %8959 = vst [vmem:[#allocation53_spill] sm:$0xff] %v6922_v31  ;;  %8960 = vst [vmem:[#allocation54_spill] sm:$0xff] %v6924_v51  ;;  %v6944_v55 = vmax.f32 %v1032_v43, 0.0  ;;  %v6948_v53 = vmax.f32 %v1033_v42, 0.0  ;;  %v6950_v8 = vmax.f32 %v1034_v41, 0.0  ;;  %v6952_v44 = vmax.f32 %v1035_v57, 0.0 }
 0x240   : > { %8961 = vst [vmem:[#allocation55_spill] sm:$0xff] %v6926_v5  ;;  %8962 = vst [vmem:[#allocation56_spill] sm:$0xff] %v6928_v40  ;;  %v6954_v19 = vmax.f32 %v1036_v34, 0.0  ;;  %v6956_v29 = vmax.f32 %v1037_v10, 0.0  ;;  %v6958_v37 = vmax.f32 %v1038_v35, 0.0  ;;  %v6960_v59 = vmax.f32 %v1039_v50, 0.0  ;;  %v6993_v13 = vpop.permute.xlu0 %1723 }
 0x241   : > { %8963 = vst [vmem:[#allocation57_spill] sm:$0xff] %v6930_v63  ;;  %8964 = vst [vmem:[#allocation58_spill] sm:$0xff] %v6932_v16  ;;  %v6962_v33 = vmax.f32 %v1040_v22, 0.0  ;;  %v6964_v43 = vmax.f32 %v1041_v18, 0.0  ;;  %v6966_v9 = vmax.f32 %v1042_v60, 0.0  ;;  %v6968_v42 = vmax.f32 %v1043_v46, 0.0  ;;  %v6987_v46 = vpop.permute.xlu1 %1728 }
 0x242   : > { %8966 = vst [vmem:[#allocation60_spill] sm:$0xff] %v6938_v1  ;;  %8967 = vst [vmem:[#allocation61_spill] sm:$0xff] %v6940_v17  ;;  %v6970_v41 = vmax.f32 %v1044_v7, 0.0  ;;  %v6973_v57 = vmax.f32 %v1045_v4, 0.0  ;;  %v6976_v34 = vmax.f32 %v6828_v36, 0.0  ;;  %v6979_v10 = vmax.f32 %v6831_v27, 0.0 }
 0x243   : > { %8968 = vst [vmem:[#allocation62_spill] sm:$0xff] %v6942_v32  ;;  %8969 = vst [vmem:[#allocation63_spill] sm:$0xff] %v6944_v55  ;;  %v1157_v35 = vrot.slane %v6914_v14, 7  ;;  %v1158_v18 = vrot.slane %v6916_v6, 7  ;;  %v1159_v50 = vrot.slane %v6918_v54, 7  ;;  %v1160_v22 = vrot.slane %v6922_v31, 7 }
 0x244   : > { %8971 = vst [vmem:[#allocation65_spill] sm:$0xff] %v6948_v53  ;;  %8972 = vst [vmem:[#allocation66_spill] sm:$0xff] %v6950_v8  ;;  %v1487_v0 = vrot.slane %v6922_v31, 1  ;;  %v1488_v48 = vrot.slane %v6924_v51, 1  ;;  %v1490_v60 = vrot.slane %v6928_v40, 1  ;;  %v1492_v20 = vrot.slane %v6932_v16, 1  ;;  %v7021_v21 = vpop.permute.xlu0 %1408 }
 0x245   : > { %8973 = vst [vmem:[#allocation67_spill] sm:$0xff] %v6952_v44  ;;  %8974 = vst [vmem:[#allocation68_spill] sm:$0xff] %v6954_v19  ;;  %v1493_v36 = vrot.slane %v6934_v28, 1  ;;  %v1494_v7 = vrot.slane %v6938_v1, 1  ;;  %v1495_v27 = vrot.slane %v6940_v17, 1  ;;  %v1496_v4 = vrot.slane %v6942_v32, 1 }
 0x246   : > { %8975 = vst [vmem:[#allocation69_spill] sm:$0xff] %v6956_v29  ;;  %8976 = vst [vmem:[#allocation70_spill] sm:$0xff] %v6958_v37  ;;  %v1497_v31 = vrot.slane %v6944_v55, 1  ;;  %v1499_v56 = vrot.slane %v6950_v8, 1  ;;  %v1500_v30 = vrot.slane %v6952_v44, 1  ;;  %v1506_v38 = vrot.slane %v6964_v43, 1 }
 0x247   : > { %8977 = vst [vmem:[#allocation71_spill] sm:$0xff] %v6960_v59  ;;  %8978 = vst [vmem:[#allocation72_spill] sm:$0xff] %v6962_v33  ;;  %v1507_v39 = vrot.slane %v6966_v9, 1  ;;  %v1508_v12 = vrot.slane %v6968_v42, 1  ;;  %v1509_v32 = vrot.slane %v6970_v41, 1  ;;  %v1504_v8 = vrot.slane %v6960_v59, 1 }
 0x248   : > { %8979 = vst [vmem:[#allocation73_spill] sm:$0xff] %v6964_v43  ;;  %8980 = vst [vmem:[#allocation74_spill] sm:$0xff] %v6966_v9  ;;  %v1505_v44 = vrot.slane %v6962_v33, 1  ;;  %v1501_v43 = vrot.slane %v6954_v19, 1  ;;  %v8990_v9 = vrot.slane %v6938_v1, 7  ;;  %v8992_v55 = vrot.slane %v6930_v63, 7 }
 0x249   : > { %8981 = vst [vmem:[#allocation75_spill] sm:$0xff] %v6968_v42  ;;  %8982 = vst [vmem:[#allocation76_spill] sm:$0xff] %v6970_v41  ;;  %v8993_v41 = vrot.slane %v6928_v40, 7  ;;  %v8994_v59 = vrot.slane %v6924_v51, 7  ;;  %v1225_v19 = vsel %vm1193_vm3, %v1158_v18, %v1159_v50  ;;  %v9004_v1 = vrot.slane %v6916_v6, 1 }
 0x24a   : > { %8983 = vst [vmem:[#allocation77_spill] sm:$0xff] %v6976_v34  ;;  %8984 = vst [vmem:[#allocation78_spill] sm:$0xff] %v6979_v10  ;;  %v1489_v10 = vrot.slane %v6926_v5, 1  ;;  %v1491_v34 = vrot.slane %v6930_v63, 1 }
 0x24b   : > { %8985 = vst [vmem:[#allocation79_spill] sm:$0xff] %v6987_v46  ;;  %8986 = vst [vmem:[#allocation80_spill] sm:$0xff] %v6993_v13  ;;  %v7015_v46 = vpop.permute.xlu1 %1413  ;;  %v1498_v13 = vrot.slane %v6948_v53, 1  ;;  %v1503_v53 = vrot.slane %v6958_v37, 1  ;;  %v1220_v37 = vsel %vm1193_vm3, %v8993_v41, %v8992_v55  ;;  %v1223_v33 = vsel %vm1193_vm3, %v1160_v22, %v8994_v59 }
 0x24c   : > { %8987 = vst [vmem:[#allocation81_spill] sm:$0xff] %v7015_v46  ;;  %8988 = vst [vmem:[#allocation82_spill] sm:$0xff] %v7021_v21  ;;  %v1502_v46 = vrot.slane %v6956_v29, 1  ;;  %v8989_v21 = vrot.slane %v6940_v17, 7  ;;  %v1224_v29 = vsel %vm1193_vm3, %v1159_v50, %v1160_v22  ;;  %v8995_v55 = vrot.slane %v6973_v57, 1 }
 0x24d   : > { %v7067_v59 = vsel %vm1518_vm4, %v1508_v12, %v1509_v32  ;;  %v7071_v50 = vsel %vm1518_vm4, %v1507_v39, %v1508_v12  ;;  %v8999_v17 = vrot.slane %v6928_v40, 7  ;;  %v9006_v40 = vrot.slane %v6914_v14, 1 }
 0x24e   : > { %v7038_v42 = vsel %vm1193_vm3, %v8990_v9, %v8989_v21  ;;  %v1226_v21 = vsel %vm1193_vm3, %v1157_v35, %v1158_v18  ;;  %v1227_v9 = vsel %vm1193_vm3, %v6644_v25, %v1157_v35  ;;  %v7063_v41 = vsel %vm1518_vm4, %v1509_v32, %v8995_v55  ;;  %v7091_v25 = vpop.permute.xlu0 %1418 }
 0x24f   : > { %8991 = vst [vmem:[#allocation83_spill] sm:$0xff] %v7038_v42  ;;  %v7075_v18 = vsel %vm1518_vm4, %v1506_v38, %v1507_v39  ;;  %v7077_v22 = vpop.permute.xlu1 %1423  ;;  %v7081_v35 = vsel %vm1518_vm4, %v1505_v44, %v1506_v38  ;;  %v7085_v55 = vsel %vm1518_vm4, %v1504_v8, %v1505_v44  ;;  %v1532_v32 = vsel %vm1518_vm4, %v1503_v53, %v1504_v8 }
 0x250   : > { %8996 = vst [vmem:[#allocation84_spill] sm:$0xff] %v7077_v22  ;;  %v1533_v12 = vsel %vm1518_vm4, %v1502_v46, %v1503_v53  ;;  %8997 = vst [vmem:[#allocation85_spill] sm:$0xff] %v7091_v25  ;;  %v1534_v39 = vsel %vm1518_vm4, %v1501_v43, %v1502_v46  ;;  %v1535_v22 = vsel %vm1518_vm4, %v1500_v30, %v1501_v43  ;;  %v9002_v42 = vrot.slane %v6924_v51, 7 }
 0x251   : > { %v1536_v38 = vsel %vm1518_vm4, %v1499_v56, %v1500_v30  ;;  %v1537_v44 = vsel %vm1518_vm4, %v1498_v13, %v1499_v56  ;;  %v1538_v8 = vsel %vm1518_vm4, %v1497_v31, %v1498_v13  ;;  %v1539_v53 = vsel %vm1518_vm4, %v1496_v4, %v1497_v31 }
 0x252   : > { %v1540_v25 = vsel %vm1518_vm4, %v1495_v27, %v1496_v4  ;;  %v1541_v46 = vsel %vm1518_vm4, %v1494_v7, %v1495_v27  ;;  %v1542_v43 = vsel %vm1518_vm4, %v1493_v36, %v1494_v7  ;;  %v1543_v30 = vsel %vm1518_vm4, %v1492_v20, %v1493_v36 }
 0x253   : > { %v1544_v56 = vsel %vm1518_vm4, %v1491_v34, %v1492_v20  ;;  %v1545_v13 = vsel %vm1518_vm4, %v1490_v60, %v1491_v34  ;;  %v1546_v31 = vsel %vm1518_vm4, %v1489_v10, %v1490_v60  ;;  %v1547_v4 = vsel %vm1518_vm4, %v1488_v48, %v1489_v10 }
 0x254   : > { %v1548_v27 = vsel %vm1518_vm4, %v1487_v0, %v1488_v48  ;;  %v8998_v7 = vrot.slane %v6918_v54, 1  ;;  %v9000_v20 = vrot.slane %v6926_v5, 7  ;;  %v9008_v5 = vrot.slane %v6932_v16, 7  ;;  %v7173_v54 = vpop.permute.xlu1 %1738 }
 0x255   : > { %v9010_v51 = vrot.slane %v6930_v63, 7  ;;  %v1451_v16 = vmul.f32 %v6682_v62, %v1224_v29  ;;  %v1452_v63 = vmul.f32 %v6688_v11, %v1223_v33  ;;  %v9012_v11 = vld [vmem:[#allocation7_spill] sm:$0xff]  ;;  %v9013_v29 = vld [vmem:[#allocation9_spill] sm:$0xff] }
 0x256   : > { %v1549_v36 = vsel %vm1518_vm4, %v8998_v7, %v1487_v0  ;;  %v1221_v34 = vsel %vm1193_vm3, %v9000_v20, %v8999_v17  ;;  %v9001_v60 = vmov %v9000_v20  ;;  %v9003_v48 = vmov %v8998_v7 }
 0x257   : > { %v1222_v10 = vsel %vm1193_vm3, %v9002_v42, %v9001_v60  ;;  %v1550_v0 = vsel %vm1518_vm4, %v9004_v1, %v9003_v48  ;;  %v9005_v7 = vmov %v9004_v1  ;;  %v9007_v20 = vrot.slane %v6934_v28, 7 }
 0x258   : > { %v1551_v17 = vsel %vm1518_vm4, %v9006_v40, %v9005_v7  ;;  %v9009_v60 = vmov %v9008_v5  ;;  %v1448_v48 = vmul.f32 %v6670_v47, %v1227_v9  ;;  %v1552_v7 = vsel %vm1518_vm4, %v6821_v45, %v9006_v40 }
 0x259   : > { %v7157_v42 = vsel %vm1193_vm3, %v9008_v5, %v9007_v20  ;;  %v7165_v1 = vsel %vm1193_vm3, %v9010_v51, %v9009_v60  ;;  %v1449_v5 = vmul.f32 %v6672_v49, %v1226_v21  ;;  %v1450_v20 = vmul.f32 %v6684_v2, %v1225_v19  ;;  %v7179_v51 = vpop.permute.xlu0 %1733 }
 0x25a   : > { %v1453_v47 = vmul.f32 %v6686_v3, %v1222_v10  ;;  %v7183_v9 = vmul.f32 %v6712_v26, %v1221_v34  ;;  %v7186_v60 = vmul.f32 %v6707_v23, %v1220_v37  ;;  %v1775_v40 = vmul.f32 %v6692_v15, %v1549_v36  ;;  %v9014_v3 = vld [vmem:[#allocation8_spill] sm:$0xff]  ;;  %v9015_v26 = vld [vmem:[#allocation13_spill] sm:$0xff]  ;;  %v9017_v37 = vld [vmem:[#allocation15_spill] sm:$0xff] }
 0x25b   : > { %v7190_v49 = vmul.f32 %v6674_v52, %v1552_v7  ;;  %v1773_v2 = vmul.f32 %v6680_v61, %v1551_v17  ;;  %v1774_v62 = vmul.f32 %v6678_v58, %v1550_v0  ;;  %v1776_v19 = vmul.f32 %v9012_v11, %v1548_v27  ;;  %v9016_v10 = vld [vmem:[#allocation12_spill] sm:$0xff]  ;;  %v9018_v15 = vld [vmem:[#allocation14_spill] sm:$0xff]  ;;  %v9022_v0 = vld [vmem:[#allocation23_spill] sm:$0xff] }
 0x25c   : > { %9011 = vst [vmem:[#allocation86_spill] sm:$0xff] %v7186_v60  ;;  %v1777_v33 = vmul.f32 %v9013_v29, %v1547_v4  ;;  %v1778_v21 = vmul.f32 %v9014_v3, %v1546_v31  ;;  %v1779_v34 = vmul.f32 %v9015_v26, %v1545_v13  ;;  %v1780_v23 = vmul.f32 %v9016_v10, %v1544_v56  ;;  %v9019_v52 = vld [vmem:[#allocation22_spill] sm:$0xff]  ;;  %v9020_v60 = vld [vmem:[#allocation21_spill] sm:$0xff]  ;;  %v9021_v17 = vld [vmem:[#allocation24_spill] sm:$0xff]  ;;  %v7209_v31 = vpop.permute.xlu1 %1748 }
 0x25d   : > { %v1781_v45 = vmul.f32 %v9017_v37, %v1543_v30  ;;  %v1782_v36 = vmul.f32 %v9018_v15, %v1542_v43  ;;  %v1783_v7 = vmul.f32 %v9019_v52, %v1541_v46  ;;  %v1784_v61 = vmul.f32 %v9020_v60, %v1540_v25  ;;  %9023 = vst [vmem:[#allocation7_spill] sm:$0xff] %v7209_v31  ;;  %v9024_v13 = vld [vmem:[#allocation31_spill] sm:$0xff]  ;;  %v9025_v29 = vld [vmem:[#allocation30_spill] sm:$0xff]  ;;  %v9026_v3 = vld [vmem:[#allocation33_spill] sm:$0xff]  ;;  %v7215_v10 = vpop.permute.xlu0 %1743 }
 0x25e   : > { %v1785_v58 = vmul.f32 %v9021_v17, %v1539_v53  ;;  %v1786_v27 = vmul.f32 %v9022_v0, %v1538_v8  ;;  %v7205_v11 = vpack.c.bf16 %v1449_v5, %v1448_v48  ;;  %v7207_v4 = vpack.c.bf16 %v1451_v16, %v1450_v20  ;;  %v9027_v26 = vld [vmem:[#allocation32_spill] sm:$0xff]  ;;  %9028 = vst [vmem:[#allocation9_spill] sm:$0xff] %v7215_v10  ;;  %v9029_v8 = vld [vmem:[#allocation41_spill] sm:$0xff]  ;;  %v9030_v16 = vld [vmem:[#allocation39_spill] sm:$0xff] }
 0x25f   : > { %v1787_v56 = vmul.f32 %v9024_v13, %v1537_v44  ;;  %v1788_v30 = vmul.f32 %v9025_v29, %v1536_v38  ;;  %v1789_v43 = vmul.f32 %v9026_v3, %v1535_v22  ;;  %v1790_v46 = vmul.f32 %v9027_v26, %v1534_v39  ;;  %v5856_v25 = vld [vmem:[%s8808_s2 + $0xf0] sm:$0xff]   ;;  %v9032_v44 = vld [vmem:[#allocation43_spill] sm:$0xff]  ;;  %v9087_v17 = vld [vmem:[#allocation26_spill] sm:$0xff] }
 0x260   : > { %v1791_v53 = vmul.f32 %v9029_v8, %v1533_v12  ;;  %v1792_v48 = vmul.f32 %v9030_v16, %v1532_v32  ;;  %v9031_v5 = vld [vmem:[#allocation44_spill] sm:$0xff]  ;;  %v1794_v38 = vmul.f32 %v9032_v44, %v7081_v35  ;;  %5329 = vmatmul.mubr.bf16.vlgmr.msra.gmra.mxu1 %v7205_v11  ;;  %v9034_v60 = vld [vmem:[#allocation59_spill] sm:$0xff]  ;;  %v7238_v35 = vpack.c.bf16 %v1774_v62, %v1773_v2 }
 0x261   : > { %v1793_v20 = vmul.f32 %v9031_v5, %v7085_v55  ;;  %v9033_v22 = vld [vmem:[#allocation64_spill] sm:$0xff]  ;;  %v1796_v37 = vmul.f32 %v9034_v60, %v7071_v50  ;;  %v9036_v12 = vld [vmem:[#allocation79_spill] sm:$0xff]  ;;  %5332 = vmatprep.mubr.bf16.mxu1 %v7207_v4  ;;  %v9037_v55 = vld [vmem:[#allocation42_spill] sm:$0xff]  ;;  %v7240_v0 = vpack.c.bf16 %v1776_v19, %v1775_v40  ;;  %v7242_v13 = vpack.c.bf16 %v1778_v21, %v1777_v33  ;;  %v1434_v21 = vpop.permute.xlu1 %1433 }
 0x262   : > { %v1795_v39 = vmul.f32 %v9033_v22, %v7075_v18  ;;  %v9035_v15 = vld [vmem:[#allocation80_spill] sm:$0xff]  ;;  %v1798_v32 = vmul.f32 %v9036_v12, %v7063_v41  ;;  %v7245_v50 = vpack.c.bf16 %v1780_v23, %v1779_v34  ;;  %v7247_v29 = vpack.c.bf16 %v1782_v36, %v1781_v45  ;;  %v5857_v2 = vld [vmem:[%s8808_s2 + $0xe8] sm:$0xff]  }
 0x263   : > { %v1797_v52 = vmul.f32 %v9035_v15, %v7067_v59  ;;  %v9038_v18 = vld [vmem:[#allocation28_spill] sm:$0xff]  ;;  %v7249_v59 = vpack.c.bf16 %v1784_v61, %v1783_v7  ;;  %v7251_v41 = vpack.c.bf16 %v1786_v27, %v1785_v58  ;;  %v7256_v62 = vpack.c.bf16 %v1788_v30, %v1787_v56  ;;  %v1429_v58 = vpop.permute.xlu0 %1428  ;;  %v9042_v56 = vld [vmem:[#allocation77_spill] sm:$0xff]  ;;  %v9049_v44 = vld [vmem:[#allocation11_spill] sm:$0xff] }
 0x264   : > { %5409 = vmatpush3.bf16.msra.mxu1 %v9038_v18  ;;  %v7258_v40 = vpack.c.bf16 %v1790_v46, %v1789_v43  ;;  %v7260_v19 = vpack.c.bf16 %v1792_v48, %v1791_v53  ;;  %v7262_v33 = vpack.c.bf16 %v1794_v38, %v1793_v20  ;;  %v7264_v45 = vpack.c.bf16 %v1796_v37, %v1795_v39  ;;  %v9040_v23 = vld [vmem:[#allocation52_spill] sm:$0xff]  ;;  %v9043_v43 = vld [vmem:[#allocation78_spill] sm:$0xff] }
 0x265   : > { %5410 = vmatprep.subr.bf16.mxu1 %v5856_v25  ;;  %v7266_v34 = vpack.c.bf16 %v1798_v32, %v1797_v52  ;;  %v1511_v36 = vrot.slane %v9040_v23, 1  ;;  %v9041_v7 = vld [vmem:[#allocation48_spill] sm:$0xff]  ;;  %v7270_v27 = vpack.c.bf16 %v1453_v47, %v1452_v63  ;;  %v8876_v30 = vrot.slane %v9042_v56, 1  ;;  %v9051_v60 = vld [vmem:[#allocation86_spill] sm:$0xff]  ;;  %v9052_v52 = vld [vmem:[#allocation47_spill] sm:$0xff]  ;;  %v1759_v32 = vpop.permute.xlu1 %1758 }
 0x266   : > { %v8875_v61 = vrot.slane %v9041_v7, 1  ;;  %v1187_v3 = vrot.slane %v9042_v56, 7  ;;  %v8874_v26 = vrot.slane %v9043_v43, 7  ;;  %v9044_v8 = vrot.slane %v6973_v57, 1  ;;  %v9046_v16 = vld [vmem:[#allocation60_spill] sm:$0xff] }
 0x267   : > { %9039 = vst [vmem:[#allocation8_spill] sm:$0xff] %v7266_v34  ;;  %v1515_v63 = vrot.slane %v9043_v43, 1  ;;  %v7286_v47 = vpack.c.bf16 %v6916_v6, %v6914_v14  ;;  %v9047_v48 = vrot.slane %v9046_v16, 7  ;;  %v9048_v5 = vrot.slane %v6934_v28, 7  ;;  %v9050_v6 = vld [vmem:[#allocation10_spill] sm:$0xff]  ;;  %v9055_v18 = vld [vmem:[#allocation40_spill] sm:$0xff] }
 0x268   : > { %5411 = vmatpush3.bf16.msra.mxu1 %v5856_v25  ;;  %v1524_v46 = vsel %vm1518_vm4, %v1511_v36, %v8875_v61  ;;  %v1525_v53 = vsel %vm1518_vm4, %v9044_v8, %v1511_v36  ;;  %v5850_v25 = vld [vmem:[%s8808_s2 + $0xb0] sm:$0xff]   ;;  %v1456_v38 = vmul.f32 %v9049_v44, %v7165_v1  ;;  %v1457_v39 = vmul.f32 %v9050_v6, %v7157_v42  ;;  %v9056_v36 = vld [vmem:[#allocation18_spill] sm:$0xff]  ;;  %v9086_v61 = vld [vmem:[#allocation19_spill] sm:$0xff] }
 0x269   : > { %9045 = vst [vmem:[#allocation13_spill] sm:$0xff] %v7286_v47  ;;  %5412 = vmatprep.subr.bf16.mxu1 %v5857_v2  ;;  %v1217_v20 = vsel %vm1193_vm3, %v9048_v5, %v9047_v48  ;;  %v1800_v22 = vmul.f32 %v7173_v54, %v1524_v46  ;;  %v1799_v14 = vmul.f32 %v7179_v51, %v1525_v53  ;;  %v9053_v1 = vrot.slane %v9052_v52, 7  ;;  %v9057_v46 = vld [vmem:[#allocation17_spill] sm:$0xff]  ;;  %v9058_v53 = vld [vmem:[#allocation83_spill] sm:$0xff]  ;;  %v9059_v48 = vld [vmem:[#allocation16_spill] sm:$0xff] }
 0x26a   : > { %5333 = vmatmul.mubr.bf16.gmra.mxu1 %v7270_v27  ;;  %v7306_v37 = vpack.c.bf16 %v9051_v60, %v7183_v9  ;;  %v1196_v15 = vsel %vm1193_vm3, %v1187_v3, %v8874_v26  ;;  %5281 = vmatmul.mubr.bf16.vlgmr.msra.gmra.mxu0 %v7286_v47  ;;  %v1520_v9 = vsel %vm1518_vm4, %v1515_v63, %v9055_v18  ;;  %v9061_v60 = vld [vmem:[#allocation51_spill] sm:$0xff]  ;;  %v9090_v47 = vld [vmem:[#allocation70_spill] sm:$0xff] }
 0x26b   : > { %v1197_v54 = vsel %vm1193_vm3, %v9053_v1, %v1187_v3  ;;  %v7317_v51 = vpack.c.bf16 %v1800_v22, %v1799_v14  ;;  %v1479_v12 = vmul.f32 %v1434_v21, %v1196_v15  ;;  %5361 = vmatpush3.bf16.msra.mxu0 %v9056_v36  ;;  %v1458_v8 = vmul.f32 %v9057_v46, %v1217_v20  ;;  %v1754_v3 = vpop.permute.xlu0 %1753  ;;  %v9060_v22 = vld [vmem:[#allocation66_spill] sm:$0xff]  ;;  %v9062_v15 = vld [vmem:[#allocation53_spill] sm:$0xff] }
 0x26c   : > { %v1478_v42 = vmul.f32 %v1429_v58, %v1197_v54  ;;  %v1459_v5 = vmul.f32 %v9059_v48, %v9058_v53  ;;  %v1804_v44 = vmul.f32 %v1759_v32, %v1520_v9  ;;  %v1521_v21 = vsel %vm1518_vm4, %v8876_v30, %v1515_v63  ;;  %5362 = vmatprep.subr.bf16.mxu0 %v5850_v25  ;;  %v5851_v58 = vld [vmem:[%s8808_s2 + $0xa8] sm:$0xff]   ;;  %v5859_v63 = vld [vmem:[%s8808_s2 + $0xe0] sm:$0xff]   ;;  %v9070_v48 = vld [vmem:[#allocation61_spill] sm:$0xff] }
 0x26d   : > { %9054 = vst [vmem:[#allocation12_spill] sm:$0xff] %v7317_v51  ;;  %v1172_v14 = vrot.slane %v9060_v22, 7  ;;  %v1803_v20 = vmul.f32 %v1754_v3, %v1521_v21  ;;  %v7338_v1 = vpack.c.bf16 %v9062_v15, %v9061_v60  ;;  %5336 = vmatprep.mubr.bf16.mxu1 %v7306_v37  ;;  %5413 = vmatpush3.bf16.msra.mxu1 %v5857_v2  ;;  %v9067_v9 = vld [vmem:[#allocation62_spill] sm:$0xff]  ;;  %v9071_v3 = vrot.slane %v9070_v48, 7 }
 0x26e   : > { %v7334_v6 = vpack.c.bf16 %v1479_v12, %v1478_v42  ;;  %v7344_v54 = vpack.c.bf16 %v1457_v39, %v1456_v38  ;;  %v9065_v12 = vld [vmem:[#allocation63_spill] sm:$0xff]  ;;  %v9068_v36 = vrot.slane %v9067_v9, 7  ;;  %v7361_v38 = vpack.c.bf16 %v1459_v5, %v1458_v8  ;;  %v9072_v39 = vld [vmem:[#allocation54_spill] sm:$0xff]  ;;  %v9079_v5 = vld [vmem:[#allocation56_spill] sm:$0xff]  ;;  %5414 = vmatprep.subr.bf16.mxu1 %v5859_v63 }
 0x26f   : > { %9063 = vst [vmem:[#allocation15_spill] sm:$0xff] %v7338_v1  ;;  %v7346_v32 = vpack.c.bf16 %v1804_v44, %v1803_v20  ;;  %5284 = vmatprep.mubr.bf16.mxu0 %v7338_v1  ;;  %5363 = vmatpush3.bf16.msra.mxu0 %v5850_v25  ;;  %v9066_v42 = vrot.slane %v9065_v12, 7  ;;  %v9073_v44 = vld [vmem:[#allocation55_spill] sm:$0xff]  ;;  %v5852_v25 = vld [vmem:[%s8808_s2 + $0xa0] sm:$0xff]   ;;  %v9075_v20 = vld [vmem:[#allocation65_spill] sm:$0xff]  ;;  %v1176_v10 = vrot.slane %v9090_v47, 7 }
 0x270   : > { %v9069_v53 = vmov %v9068_v36  ;;  %v7365_v21 = vpack.c.bf16 %v9073_v44, %v9072_v39  ;;  %5364 = vmatprep.subr.bf16.mxu0 %v5851_v58  ;;  %v9076_v60 = vrot.slane %v9075_v20, 7  ;;  %v5860_v39 = vld [vmem:[%s8808_s2 + $0xd8] sm:$0xff]   ;;  %v7392_v44 = vpack.c.bf16 %v9043_v43, %v9042_v56  ;;  %v9100_v51 = vld [vmem:[#allocation74_spill] sm:$0xff] }
 0x271   : > { %9064 = vst [vmem:[#allocation14_spill] sm:$0xff] %v7346_v32  ;;  %v1214_v46 = vsel %vm1193_vm3, %v9068_v36, %v9066_v42  ;;  %v1215_v2 = vsel %vm1193_vm3, %v9071_v3, %v9069_v53  ;;  %v9078_v36 = vrot.slane %v9065_v12, 7  ;;  %v9080_v53 = vld [vmem:[#allocation57_spill] sm:$0xff]  ;;  %5415 = vmatpush3.bf16.msra.mxu1 %v5859_v63  ;;  %v9091_v63 = vld [vmem:[#allocation58_spill] sm:$0xff]  ;;  %v1180_v34 = vrot.slane %v9100_v51, 7 }
 0x272   : > { %9074 = vst [vmem:[#allocation22_spill] sm:$0xff] %v7365_v21  ;;  %v1212_v15 = vsel %vm1193_vm3, %v9076_v60, %v1172_v14  ;;  %v9077_v42 = vmov %v9076_v60  ;;  %v7382_v3 = vpack.c.bf16 %v9080_v53, %v9079_v5  ;;  %5337 = vmatmul.mubr.bf16.gmra.mxu1 %v7344_v54  ;;  %5285 = vmatmul.mubr.bf16.gmra.mxu0 %v7365_v21  ;;  %9082 = vst [vmem:[#allocation24_spill] sm:$0xff] %v7392_v44  ;;  %v9083_v60 = vld [vmem:[#allocation67_spill] sm:$0xff]  ;;  %v9085_v53 = vld [vmem:[#allocation20_spill] sm:$0xff] }
 0x273   : > { %v1213_v8 = vsel %vm1193_vm3, %v9078_v36, %v9077_v42  ;;  %5340 = vmatprep.mubr.bf16.mxu1 %v7361_v38  ;;  %v1173_v42 = vrot.slane %v9083_v60, 7  ;;  %v9084_v36 = vld [vmem:[#allocation68_spill] sm:$0xff]  ;;  %v1460_v26 = vmul.f32 %v9085_v53, %v1215_v2  ;;  %v1461_v30 = vmul.f32 %v9086_v61, %v1214_v46  ;;  %5365 = vmatpush3.bf16.msra.mxu0 %v5851_v58  ;;  %v9088_v32 = vld [vmem:[#allocation25_spill] sm:$0xff]  ;;  %v9098_v53 = vld [vmem:[#allocation34_spill] sm:$0xff] }
 0x274   : > { %9081 = vst [vmem:[#allocation21_spill] sm:$0xff] %v7382_v3  ;;  %v1174_v5 = vrot.slane %v9084_v36, 7  ;;  %5288 = vmatprep.mubr.bf16.mxu0 %v7382_v3  ;;  %v1462_v18 = vmul.f32 %v9087_v17, %v1213_v8  ;;  %v1463_v21 = vmul.f32 %v9088_v32, %v1212_v15  ;;  %5366 = vmatprep.subr.bf16.mxu0 %v5852_v25  ;;  %v5853_v43 = vld [vmem:[%s8808_s2 + $0x98] sm:$0xff]   ;;  %v5862_v61 = vld [vmem:[%s8808_s2 + $0xd0] sm:$0xff]  }
 0x275   : > { %v9089_v44 = vld [vmem:[#allocation69_spill] sm:$0xff]  ;;  %5416 = vmatprep.subr.bf16.mxu1 %v5860_v39  ;;  %v7411_v58 = vpack.c.bf16 %v1461_v30, %v1460_v26  ;;  %v1211_v32 = vsel %vm1193_vm3, %v1172_v14, %v1173_v42  ;;  %v7419_v2 = vpack.c.bf16 %v6934_v28, %v9091_v63  ;;  %v5855_v15 = vld [vmem:[%s8808_s2 + $0x90] sm:$0xff]   ;;  %v5863_v28 = vld [vmem:[%s8808_s2 + $0xc8] sm:$0xff]  }
 0x276   : > { %v1175_v1 = vrot.slane %v9089_v44, 7  ;;  %v1210_v17 = vsel %vm1193_vm3, %v1173_v42, %v1174_v5  ;;  %v7415_v46 = vpack.c.bf16 %v1463_v21, %v1462_v18  ;;  %5417 = vmatpush3.bf16.msra.mxu1 %v5860_v39  ;;  %v7430_v18 = vpack.c.bf16 %v9070_v48, %v9046_v16  ;;  %v9093_v14 = vld [vmem:[#allocation71_spill] sm:$0xff]  ;;  %v9099_v3 = vld [vmem:[#allocation73_spill] sm:$0xff] }
 0x277   : > { %5367 = vmatpush3.bf16.msra.mxu0 %v5852_v25  ;;  %9092 = vst [vmem:[#allocation23_spill] sm:$0xff] %v7419_v2  ;;  %5418 = vmatprep.subr.bf16.mxu1 %v5862_v61  ;;  %v1177_v21 = vrot.slane %v9093_v14, 7  ;;  %v9094_v25 = vld [vmem:[#allocation72_spill] sm:$0xff]  ;;  %v9096_v42 = vld [vmem:[#allocation27_spill] sm:$0xff]  ;;  %v1179_v31 = vrot.slane %v9099_v3, 7 }
 0x278   : > { %5368 = vmatprep.subr.bf16.mxu0 %v5853_v43  ;;  %v1208_v30 = vsel %vm1193_vm3, %v1175_v1, %v1176_v10  ;;  %v1209_v26 = vsel %vm1193_vm3, %v1174_v5, %v1175_v1  ;;  %v1178_v8 = vrot.slane %v9094_v25, 7  ;;  %v9095_v1 = vld [vmem:[#allocation29_spill] sm:$0xff]  ;;  %v1465_v16 = vmul.f32 %v9096_v42, %v1210_v17  ;;  %v9097_v48 = vld [vmem:[#allocation35_spill] sm:$0xff]  ;;  %v5865_v17 = vld [vmem:[%s8808_s2 + $0xc0] sm:$0xff]  }
 0x279   : > { %v1464_v39 = vmul.f32 %v9095_v1, %v1211_v32  ;;  %v1466_v5 = vmul.f32 %v9097_v48, %v1209_v26  ;;  %v1467_v63 = vmul.f32 %v9098_v53, %v1208_v30  ;;  %v1207_v30 = vsel %vm1193_vm3, %v1176_v10, %v1177_v21  ;;  %v5861_v1 = vld [vmem:[%s8808_s2 + $0x80] sm:$0xff]  }
 0x27a   : > { %5341 = vmatmul.mubr.bf16.gmra.mxu1 %v7411_v58  ;;  %5289 = vmatmul.mubr.bf16.gmra.mxu0 %v7419_v2  ;;  %v5858_v2 = vld [vmem:[%s8808_s2 + $0x88] sm:$0xff]   ;;  %v7474_v10 = vpack.c.bf16 %v9060_v22, %v9075_v20  ;;  %v9104_v20 = vld [vmem:[#allocation76_spill] sm:$0xff] }
 0x27b   : > { %5344 = vmatprep.mubr.bf16.mxu1 %v7415_v46  ;;  %5292 = vmatprep.mubr.bf16.mxu0 %v7430_v18  ;;  %v7455_v32 = vpack.c.bf16 %v1465_v16, %v1464_v39  ;;  %v7459_v26 = vpack.c.bf16 %v1467_v63, %v1466_v5  ;;  %v1204_v39 = vsel %vm1193_vm3, %v1179_v31, %v1180_v34  ;;  %v9105_v16 = vld [vmem:[#allocation46_spill] sm:$0xff]  ;;  %v9106_v5 = vld [vmem:[#allocation45_spill] sm:$0xff] }
 0x27c   : > { %5369 = vmatpush3.bf16.msra.mxu0 %v5853_v43  ;;  %5419 = vmatpush3.bf16.msra.mxu1 %v5862_v61  ;;  %v1206_v43 = vsel %vm1193_vm3, %v1177_v21, %v1178_v8  ;;  %v7463_v61 = vpack.c.bf16 %v9065_v12, %v9067_v9  ;;  %v5870_v12 = vld [vmem:[%s8808_s2 + $0x178] sm:$0xff]   ;;  %v9101_v9 = vld [vmem:[#allocation38_spill] sm:$0xff]  ;;  %v9102_v21 = vld [vmem:[#allocation36_spill] sm:$0xff]  ;;  %v1471_v53 = vmul.f32 %v9106_v5, %v1204_v39 }
 0x27d   : > { %5370 = vmatprep.subr.bf16.mxu0 %v5855_v15  ;;  %5420 = vmatprep.subr.bf16.mxu1 %v5863_v28  ;;  %v1469_v42 = vmul.f32 %v9102_v21, %v1206_v43  ;;  %v5864_v63 = vld [vmem:[%s8808_s2 + $0x138] sm:$0xff]   ;;  %v1183_v43 = vrot.slane %v6973_v57, 7  ;;  %v7504_v21 = vpack.c.bf16 %v9084_v36, %v9083_v60 }
 0x27e   : > { %v9108_v36 = vld [vmem:[#allocation49_spill] sm:$0xff] }
 0x280   : > { %5371 = vmatpush3.bf16.msra.mxu0 %v5855_v15  ;;  %5421 = vmatpush3.bf16.msra.mxu1 %v5863_v28  ;;  %v1205_v15 = vsel %vm1193_vm3, %v1178_v8, %v1179_v31  ;;  %v1468_v28 = vmul.f32 %v9101_v9, %v1207_v30  ;;  %v9103_v31 = vld [vmem:[#allocation75_spill] sm:$0xff]  ;;  %v1182_v8 = vrot.slane %v9104_v20, 7  ;;  %v1184_v30 = vrot.slane %v9040_v23, 7 }
 0x281   : > { %5372 = vmatprep.subr.bf16.mxu0 %v5858_v2  ;;  %5422 = vmatprep.subr.bf16.mxu1 %v5865_v17  ;;  %v1181_v22 = vrot.slane %v9103_v31, 7  ;;  %v1470_v48 = vmul.f32 %v9105_v16, %v1205_v15  ;;  %v9109_v16 = vld [vmem:[#allocation82_spill] sm:$0xff] }
 0x282   : > { %5345 = vmatmul.mubr.bf16.gmra.mxu1 %v7455_v32  ;;  %5293 = vmatmul.mubr.bf16.gmra.mxu0 %v7463_v61 }
 0x283   : > { %5348 = vmatprep.mubr.bf16.mxu1 %v7459_v26  ;;  %5296 = vmatprep.mubr.bf16.mxu0 %v7474_v10  ;;  %v1202_v9 = vsel %vm1193_vm3, %v1181_v22, %v1182_v8  ;;  %v1203_v39 = vsel %vm1193_vm3, %v1180_v34, %v1181_v22  ;;  %v7500_v15 = vpack.c.bf16 %v1471_v53, %v1470_v48  ;;  %v9107_v34 = vld [vmem:[#allocation50_spill] sm:$0xff]  ;;  %v1185_v22 = vrot.slane %v9041_v7, 7  ;;  %v9110_v48 = vld [vmem:[#allocation81_spill] sm:$0xff] }
 0x284   : > { %5373 = vmatpush3.bf16.msra.mxu0 %v5858_v2  ;;  %5423 = vmatpush3.bf16.msra.mxu1 %v5865_v17  ;;  %v7494_v2 = vpack.c.bf16 %v1469_v42, %v1468_v28  ;;  %v1200_v17 = vsel %vm1193_vm3, %v1183_v43, %v1184_v30  ;;  %v1201_v28 = vsel %vm1193_vm3, %v1182_v8, %v1183_v43 }
 0x285   : > { %5374 = vmatprep.subr.bf16.mxu0 %v5861_v1  ;;  %5504 = vmatprep.subr.bf16.mxu1 %v5870_v12  ;;  %v1472_v60 = vmul.f32 %v9107_v34, %v1203_v39  ;;  %v1473_v42 = vmul.f32 %v9108_v36, %v1202_v9  ;;  %v1474_v8 = vmul.f32 %v9109_v16, %v1201_v28  ;;  %v5881_v16 = vld [vmem:[%s8808_s2 + $0x140] sm:$0xff]  }
 0x286   : > { %v1475_v5 = vmul.f32 %v9110_v48, %v1200_v17  ;;  %v1199_v43 = vsel %vm1193_vm3, %v1184_v30, %v1185_v22  ;;  %v7535_v9 = vpack.c.bf16 %v9094_v25, %v9093_v14  ;;  %v7539_v28 = vpack.c.bf16 %v9100_v51, %v9099_v3  ;;  %v9112_v17 = vld [vmem:[#allocation84_spill] sm:$0xff]  ;;  %v5886_v48 = vld [vmem:[%s8808_s2 + $0x1f8] sm:$0xff]  }
 0x287   : > { %v7551_v14 = vpack.c.bf16 %v9104_v20, %v9103_v31  ;;  %v7555_v51 = vpack.c.bf16 %v9040_v23, %v6973_v57  ;;  %v7563_v3 = vpack.c.bf16 %v9052_v52, %v9041_v7  ;;  %v5872_v25 = vld [vmem:[%s8808_s2 + $0x170] sm:$0xff]   ;;  %v9114_v57 = vpack.c.bf16 %v7190_v49, %v9037_v55  ;;  %v5875_v31 = vld [vmem:[%s8808_s2 + $0x160] sm:$0xff]   ;;  %v5867_v49 = vld [vmem:[%s8808_s2 + $0x128] sm:$0xff]  }
 0x288   : > { %5375 = vmatpush3.bf16.msra.mxu0 %v5861_v1  ;;  %v7512_v1 = vpack.c.bf16 %v9090_v47, %v9089_v44  ;;  %v7523_v47 = vpack.c.bf16 %v1473_v42, %v1472_v60  ;;  %v9111_v44 = vrot.slane %v9052_v52, 7  ;;  %v7531_v39 = vpack.c.bf16 %v1475_v5, %v1474_v8  ;;  %v9113_v60 = vld [vmem:[#allocation85_spill] sm:$0xff]  ;;  %v5866_v23 = vld [vmem:[%s8808_s2 + $0x130] sm:$0xff]   ;;  %v5879_v42 = vld [vmem:[%s8808_s2 + $0x148] sm:$0xff]  }
 0x289   : > { %5456 = vmatprep.subr.bf16.mxu0 %v5864_v63  ;;  %v1476_v30 = vmul.f32 %v9113_v60, %v1199_v43  ;;  %v5876_v55 = vld [vmem:[%s8808_s2 + $0x158] sm:$0xff]   ;;  %v5878_v20 = vld [vmem:[%s8808_s2 + $0x150] sm:$0xff]   ;;  %v5874_v8 = vld [vmem:[%s8808_s2 + $0x108] sm:$0xff]   ;;  %v9115_v43 = vrot.slane %v9042_v56, 1 }
 0x28a   : > { %5349 = vmatmul.mubr.bf16.gmra.mxu1 %v7494_v2  ;;  %5297 = vmatmul.mubr.bf16.gmra.mxu0 %v7504_v21  ;;  %v1198_v53 = vsel %vm1193_vm3, %v1185_v22, %v9111_v44  ;;  %v5871_v22 = vld [vmem:[%s8808_s2 + $0x110] sm:$0xff]   ;;  %v5877_v5 = vld [vmem:[%s8808_s2 + $0x100] sm:$0xff]   ;;  %v5880_v44 = vld [vmem:[%s8808_s2 + $0x1b8] sm:$0xff]  }
 0x28b   : > { %5352 = vmatprep.mubr.bf16.mxu1 %v7500_v15  ;;  %5300 = vmatprep.mubr.bf16.mxu0 %v7512_v1  ;;  %v1477_v34 = vmul.f32 %v9112_v17, %v1198_v53  ;;  %v1513_v53 = vrot.slane %v9052_v52, 1 }
 0x28d   : > { %v7547_v36 = vpack.c.bf16 %v1477_v34, %v1476_v30  ;;  %v1522_v17 = vsel %vm1518_vm4, %v1513_v53, %v9115_v43  ;;  %v9116_v34 = vrot.slane %v9041_v7, 1  ;;  %v9117_v30 = vld [vmem:[#allocation8_spill] sm:$0xff]  ;;  %v5897_v43 = vld [vmem:[%s8808_s2 + $0x1c0] sm:$0xff]  }
 0x28e   : > { %v5888_v7 = vld [vmem:[%s8808_s2 + $0x1f0] sm:$0xff]  }
 0x28f   : > { %v1523_v60 = vsel %vm1518_vm4, %v9116_v34, %v1513_v53  ;;  %v5887_v53 = vld [vmem:[%s8808_s2 + $0x190] sm:$0xff]   ;;  %v5893_v34 = vld [vmem:[%s8808_s2 + $0x180] sm:$0xff]  }
 0x292   : > { %5353 = vmatmul.mubr.bf16.gmra.mxu1 %v7523_v47  ;;  %5301 = vmatmul.mubr.bf16.gmra.mxu0 %v7535_v9 }
 0x293   : > { %5356 = vmatprep.mubr.bf16.mxu1 %v7531_v39  ;;  %5304 = vmatprep.mubr.bf16.mxu0 %v7539_v28 }
 0x29a   : > { %5357 = vmatmul.mubr.bf16.gmra.mxu1 %v7547_v36  ;;  %5305 = vmatmul.mubr.bf16.gmra.mxu0 %v7551_v14 }
 0x29b   : > { %5424 = vmatprep.mubr.bf16.mxu1 %v7205_v11  ;;  %5308 = vmatprep.mubr.bf16.mxu0 %v7555_v51  ;;  %v5873_v11 = vld [vmem:[%s8808_s2 + $0x168] sm:$0xff]  }
 0x2a2   : > { %5425 = vmatmul.mubr.bf16.vlgmr.msra.gmra.mxu1 %v7207_v4  ;;  %5309 = vmatmul.mubr.bf16.gmra.mxu0 %v7563_v3 }
 0x2a3   : > { %5428 = vmatprep.mubr.bf16.mxu1 %v7270_v27  ;;  %5376 = vmatprep.mubr.bf16.mxu0 %v9114_v57  ;;  %v9119_v57 = vld [vmem:[#allocation7_spill] sm:$0xff] }
 0x2a4   : > { %5505 = vmatpush3.bf16.msra.mxu1 %v5870_v12  ;;  %v5868_v12 = vld [vmem:[%s8808_s2 + $0x120] sm:$0xff]   ;;  %v1802_v52 = vmul.f32 %v9119_v57, %v1522_v17  ;;  %v5890_v17 = vld [vmem:[%s8808_s2 + $0x188] sm:$0xff]   ;;  %v5896_v57 = vld [vmem:[%s8808_s2 + $0x238] sm:$0xff]  }
 0x2a5   : > { %5506 = vmatprep.subr.bf16.mxu1 %v5872_v25 }
 0x2a8   : > { %5507 = vmatpush3.bf16.msra.mxu1 %v5872_v25  ;;  %v9118_v25 = vld [vmem:[#allocation12_spill] sm:$0xff] }
 0x2a9   : > { %5508 = vmatprep.subr.bf16.mxu1 %v5873_v11 }
 0x2aa   : > { %5429 = vmatmul.mubr.bf16.gmra.mxu1 %v7306_v37  ;;  %5377 = vmatmul.mubr.bf16.vlgmr.msra.gmra.mxu0 %v7238_v35 }
 0x2ab   : > { %5432 = vmatprep.mubr.bf16.mxu1 %v7344_v54  ;;  %5457 = vmatpush3.bf16.msra.mxu0 %v5864_v63  ;;  %v5869_v63 = vld [vmem:[%s8808_s2 + $0x118] sm:$0xff]  }
 0x2ac   : > { %5380 = vmatprep.mubr.bf16.mxu0 %v7240_v0  ;;  %5458 = vmatprep.subr.bf16.mxu0 %v5866_v23 }
 0x2ad   : > { %5509 = vmatpush3.bf16.msra.mxu1 %v5873_v11  ;;  %v9120_v11 = vld [vmem:[#allocation9_spill] sm:$0xff] }
 0x2ae   : > { %5510 = vmatprep.subr.bf16.mxu1 %v5875_v31  ;;  %v1801_v56 = vmul.f32 %v9120_v11, %v1523_v60  ;;  %v9126_v60 = vmov 0.0  }
 0x2af   : > { %5459 = vmatpush3.bf16.msra.mxu0 %v5866_v23 }
 0x2b0   : > { %5460 = vmatprep.subr.bf16.mxu0 %v5867_v49  ;;  %v7658_v23 = vpack.c.bf16 %v1802_v52, %v1801_v56  ;;  %v9127_v52 = vld [vmem:[#allocation14_spill] sm:$0xff]  ;;  %v9128_v56 = vld [vmem:[#allocation24_spill] sm:$0xff] }
 0x2b1   : > { %5511 = vmatpush3.bf16.msra.mxu1 %v5875_v31  ;;  %v9121_v31 = vld [vmem:[#allocation13_spill] sm:$0xff] }
 0x2b2   : > { %5433 = vmatmul.mubr.bf16.gmra.mxu1 %v7361_v38  ;;  %5512 = vmatprep.subr.bf16.mxu1 %v5876_v55 }
 0x2b3   : > { %5381 = vmatmul.mubr.bf16.gmra.mxu0 %v7242_v13  ;;  %5436 = vmatprep.mubr.bf16.mxu1 %v7411_v58 }
 0x2b4   : > { %5384 = vmatprep.mubr.bf16.mxu0 %v7245_v50  ;;  %5461 = vmatpush3.bf16.msra.mxu0 %v5867_v49  ;;  %v5882_v49 = vld [vmem:[%s8808_s2 + $0x1b0] sm:$0xff]  }
 0x2b5   : > { %5462 = vmatprep.subr.bf16.mxu0 %v5868_v12  ;;  %5513 = vmatpush3.bf16.msra.mxu1 %v5876_v55  ;;  %v5891_v55 = vld [vmem:[%s8808_s2 + $0x1e0] sm:$0xff]  }
 0x2b6   : > { %5514 = vmatprep.subr.bf16.mxu1 %v5878_v20 }
 0x2b8   : > { %5463 = vmatpush3.bf16.msra.mxu0 %v5868_v12  ;;  %v9122_v12 = vld [vmem:[#allocation15_spill] sm:$0xff] }
 0x2b9   : > { %5464 = vmatprep.subr.bf16.mxu0 %v5869_v63  ;;  %5515 = vmatpush3.bf16.msra.mxu1 %v5878_v20  ;;  %v9123_v20 = vld [vmem:[#allocation22_spill] sm:$0xff] }
 0x2ba   : > { %5437 = vmatmul.mubr.bf16.gmra.mxu1 %v7415_v46  ;;  %5516 = vmatprep.subr.bf16.mxu1 %v5879_v42 }
 0x2bb   : > { %5385 = vmatmul.mubr.bf16.gmra.mxu0 %v7247_v29  ;;  %5440 = vmatprep.mubr.bf16.mxu1 %v7455_v32 }
 0x2bc   : > { %5388 = vmatprep.mubr.bf16.mxu0 %v7249_v59  ;;  %5465 = vmatpush3.bf16.msra.mxu0 %v5869_v63  ;;  %v5883_v63 = vld [vmem:[%s8808_s2 + $0x1a8] sm:$0xff]  }
 0x2bd   : > { %5466 = vmatprep.subr.bf16.mxu0 %v5871_v22  ;;  %5517 = vmatpush3.bf16.msra.mxu1 %v5879_v42  ;;  %v5892_v42 = vld [vmem:[%s8808_s2 + $0x1d8] sm:$0xff]  }
 0x2be   : > { %5518 = vmatprep.subr.bf16.mxu1 %v5881_v16 }
 0x2c0   : > { %5467 = vmatpush3.bf16.msra.mxu0 %v5871_v22  ;;  %v5884_v22 = vld [vmem:[%s8808_s2 + $0x1a0] sm:$0xff]  }
 0x2c1   : > { %5468 = vmatprep.subr.bf16.mxu0 %v5874_v8  ;;  %5519 = vmatpush3.bf16.msra.mxu1 %v5881_v16  ;;  %v5894_v16 = vld [vmem:[%s8808_s2 + $0x1d0] sm:$0xff]  }
 0x2c2   : > { %5441 = vmatmul.mubr.bf16.gmra.mxu1 %v7459_v26  ;;  %5600 = vmatprep.subr.bf16.mxu1 %v5886_v48 }
 0x2c3   : > { %5389 = vmatmul.mubr.bf16.gmra.mxu0 %v7251_v41  ;;  %5444 = vmatprep.mubr.bf16.mxu1 %v7494_v2 }
 0x2c4   : > { %5392 = vmatprep.mubr.bf16.mxu0 %v7256_v62  ;;  %5469 = vmatpush3.bf16.msra.mxu0 %v5874_v8  ;;  %v9124_v8 = vld [vmem:[#allocation21_spill] sm:$0xff] }
 0x2c5   : > { %5470 = vmatprep.subr.bf16.mxu0 %v5877_v5 }
 0x2c8   : > { %5471 = vmatpush3.bf16.msra.mxu0 %v5877_v5  ;;  %v5885_v5 = vld [vmem:[%s8808_s2 + $0x198] sm:$0xff]  }
 0x2c9   : > { %5552 = vmatprep.subr.bf16.mxu0 %v5880_v44 }
 0x2ca   : > { %5445 = vmatmul.mubr.bf16.gmra.mxu1 %v7500_v15 }
 0x2cb   : > { %5393 = vmatmul.mubr.bf16.gmra.mxu0 %v7258_v40  ;;  %5448 = vmatprep.mubr.bf16.mxu1 %v7523_v47 }
 0x2cc   : > { %5396 = vmatprep.mubr.bf16.mxu0 %v7260_v19 }
 0x2d2   : > { %5449 = vmatmul.mubr.bf16.gmra.mxu1 %v7531_v39 }
 0x2d3   : > { %5397 = vmatmul.mubr.bf16.gmra.mxu0 %v7262_v33  ;;  %5452 = vmatprep.mubr.bf16.mxu1 %v7547_v36 }
 0x2d4   : > { %5400 = vmatprep.mubr.bf16.mxu0 %v7264_v45 }
 0x2da   : > { %5453 = vmatmul.mubr.bf16.gmra.mxu1 %v7334_v6 }
 0x2db   : > { %5401 = vmatmul.mubr.bf16.gmra.mxu0 %v9117_v30  ;;  %5520 = vmatprep.mubr.bf16.mxu1 %v7238_v35  ;;  %v5889_v35 = vld [vmem:[%s8808_s2 + $0x1e8] sm:$0xff]  }
 0x2dc   : > { %5404 = vmatprep.mubr.bf16.mxu0 %v9118_v25 }
 0x2e2   : > { %5521 = vmatmul.mubr.bf16.vlgmr.msra.gmra.mxu1 %v7240_v0 }
 0x2e3   : > { %5405 = vmatmul.mubr.bf16.gmra.mxu0 %v7658_v23  ;;  %5524 = vmatprep.mubr.bf16.mxu1 %v7242_v13 }
 0x2e4   : > { %5472 = vmatprep.mubr.bf16.mxu0 %v9121_v31  ;;  %5601 = vmatpush3.bf16.msra.mxu1 %v5886_v48  ;;  %v9125_v48 = vld [vmem:[#allocation23_spill] sm:$0xff] }
 0x2e5   : > { %5602 = vmatprep.subr.bf16.mxu1 %v5888_v7 }
 0x2e8   : > { %5603 = vmatpush3.bf16.msra.mxu1 %v5888_v7 }
 0x2e9   : > { %5604 = vmatprep.subr.bf16.mxu1 %v5889_v35 }
 0x2ea   : > { %5525 = vmatmul.mubr.bf16.gmra.mxu1 %v7245_v50 }
 0x2eb   : > { %5473 = vmatmul.mubr.bf16.vlgmr.msra.gmra.mxu0 %v9122_v12  ;;  %5528 = vmatprep.mubr.bf16.mxu1 %v7247_v29 }
 0x2ec   : > { %5553 = vmatpush3.bf16.msra.mxu0 %v5880_v44  ;;  %5476 = vmatprep.mubr.bf16.mxu0 %v9123_v20  ;;  %v5895_v44 = vld [vmem:[%s8808_s2 + $0x1c8] sm:$0xff]  }
 0x2ed   : > { %5554 = vmatprep.subr.bf16.mxu0 %v5882_v49  ;;  %5605 = vmatpush3.bf16.msra.mxu1 %v5889_v35 }
 0x2ee   : > { %5606 = vmatprep.subr.bf16.mxu1 %v5891_v55 }
 0x2f0   : > { %5555 = vmatpush3.bf16.msra.mxu0 %v5882_v49  ;;  %v5898_v49 = vld [vmem:[%s8808_s2 + $0x230] sm:$0xff]  }
 0x2f1   : > { %5556 = vmatprep.subr.bf16.mxu0 %v5883_v63  ;;  %5607 = vmatpush3.bf16.msra.mxu1 %v5891_v55 }
 0x2f2   : > { %5529 = vmatmul.mubr.bf16.gmra.mxu1 %v7249_v59  ;;  %5608 = vmatprep.subr.bf16.mxu1 %v5892_v42 }
 0x2f3   : > { %5477 = vmatmul.mubr.bf16.gmra.mxu0 %v9124_v8  ;;  %5532 = vmatprep.mubr.bf16.mxu1 %v7251_v41 }
 0x2f4   : > { %5480 = vmatprep.mubr.bf16.mxu0 %v9125_v48  ;;  %5557 = vmatpush3.bf16.msra.mxu0 %v5883_v63 }
 0x2f5   : > { %5558 = vmatprep.subr.bf16.mxu0 %v5884_v22  ;;  %5609 = vmatpush3.bf16.msra.mxu1 %v5892_v42  ;;  %v5899_v42 = vld [vmem:[%s8808_s2 + $0x228] sm:$0xff]  }
 0x2f6   : > { %5610 = vmatprep.subr.bf16.mxu1 %v5894_v16 }
 0x2f8   : > { %5559 = vmatpush3.bf16.msra.mxu0 %v5884_v22 }
 0x2f9   : > { %5560 = vmatprep.subr.bf16.mxu0 %v5885_v5  ;;  %5611 = vmatpush3.bf16.msra.mxu1 %v5894_v16 }
 0x2fa   : > { %5533 = vmatmul.mubr.bf16.gmra.mxu1 %v7256_v62  ;;  %5612 = vmatprep.subr.bf16.mxu1 %v5895_v44 }
 0x2fb   : > { %5481 = vmatmul.mubr.bf16.gmra.mxu0 %v7430_v18  ;;  %5536 = vmatprep.mubr.bf16.mxu1 %v7258_v40 }
 0x2fc   : > { %5484 = vmatprep.mubr.bf16.mxu0 %v7463_v61  ;;  %5561 = vmatpush3.bf16.msra.mxu0 %v5885_v5 }
 0x2fd   : > { %5562 = vmatprep.subr.bf16.mxu0 %v5887_v53  ;;  %5613 = vmatpush3.bf16.msra.mxu1 %v5895_v44 }
 0x2fe   : > { %5614 = vmatprep.subr.bf16.mxu1 %v5897_v43 }
 0x300   : > { %5563 = vmatpush3.bf16.msra.mxu0 %v5887_v53 }
 0x301   : > { %5564 = vmatprep.subr.bf16.mxu0 %v5890_v17  ;;  %5615 = vmatpush3.bf16.msra.mxu1 %v5897_v43 }
 0x302   : > { %5537 = vmatmul.mubr.bf16.gmra.mxu1 %v7260_v19  ;;  %5696 = vmatprep.subr.mxu1 %v9126_v60 }
 0x303   : > { %5485 = vmatmul.mubr.bf16.gmra.mxu0 %v7474_v10  ;;  %5540 = vmatprep.mubr.bf16.mxu1 %v7262_v33 }
 0x304   : > { %5488 = vmatprep.mubr.bf16.mxu0 %v7504_v21  ;;  %5565 = vmatpush3.bf16.msra.mxu0 %v5890_v17 }
 0x305   : > { %5566 = vmatprep.subr.bf16.mxu0 %v5893_v34 }
 0x308   : > { %5567 = vmatpush3.bf16.msra.mxu0 %v5893_v34 }
 0x309   : > { %5648 = vmatprep.subr.bf16.mxu0 %v5896_v57 }
 0x30a   : > { %5541 = vmatmul.mubr.bf16.gmra.mxu1 %v7264_v45 }
 0x30b   : > { %5489 = vmatmul.mubr.bf16.gmra.mxu0 %v7512_v1  ;;  %5544 = vmatprep.mubr.bf16.mxu1 %v9117_v30 }
 0x30c   : > { %5492 = vmatprep.mubr.bf16.mxu0 %v7535_v9 }
 0x312   : > { %5545 = vmatmul.mubr.bf16.gmra.mxu1 %v9118_v25 }
 0x313   : > { %5493 = vmatmul.mubr.bf16.gmra.mxu0 %v7539_v28  ;;  %5548 = vmatprep.mubr.bf16.mxu1 %v7658_v23 }
 0x314   : > { %5496 = vmatprep.mubr.bf16.mxu0 %v7551_v14 }
 0x31a   : > { %5549 = vmatmul.mubr.bf16.gmra.mxu1 %v9127_v52 }
 0x31b   : > { %5497 = vmatmul.mubr.bf16.gmra.mxu0 %v7555_v51  ;;  %5616 = vmatprep.mubr.bf16.mxu1 %v9122_v12 }
 0x31c   : > { %5500 = vmatprep.mubr.bf16.mxu0 %v7563_v3 }
 0x320   : > { %v5330_v11 = vpop.f32.mrf.mxu1 }
 0x322   : > { %5617 = vmatmul.mubr.bf16.vlgmr.msra.gmra.mxu1 %v9123_v20  ;;  %v2185_v7 = vpop.f32.mrf.mxu1 }
 0x323   : > { %5501 = vmatmul.mubr.bf16.gmra.mxu0 %v9128_v56  ;;  %5620 = vmatprep.mubr.bf16.mxu1 %v9124_v8 }
 0x324   : > { %5568 = vmatprep.mubr.bf16.mxu0 %v7207_v4  ;;  %v5331_v31 = vpop.f32.mrf.mxu1 }
 0x326   : > { %v2188_v35 = vpop.f32.mrf.mxu1 }
 0x32a   : > { %v5334_v55 = vpop.f32.mrf.mxu1  ;;  %5621 = vmatmul.mubr.bf16.gmra.mxu1 %v9125_v48  ;;  %v5282_v12 = vpop.f32.mrf.mxu0 }
 0x32b   : > { %5569 = vmatmul.mubr.bf16.vlgmr.msra.gmra.mxu0 %v7270_v27  ;;  %5624 = vmatprep.mubr.bf16.mxu1 %v7430_v18  ;;  %v7749_v20 = vadd.f32 %v5330_v11, %v5282_v12 }
 0x32c   : > { %5649 = vmatpush3.bf16.msra.mxu0 %v5896_v57  ;;  %5572 = vmatprep.mubr.bf16.mxu0 %v7306_v37  ;;  %v2201_v4 = vpop.f32.mrf.mxu1  ;;  %v1976_v63 = vpop.f32.mrf.mxu0  ;;  %v5900_v37 = vld [vmem:[%s8808_s2 + $0x220] sm:$0xff]   ;;  %v5901_v57 = vld [vmem:[%s8808_s2 + $0x218] sm:$0xff]  }
 0x32d   : > { %5650 = vmatprep.subr.bf16.mxu0 %v5898_v49  ;;  %v7754_v22 = vadd.f32 %v2185_v7, %v1976_v63 }
 0x32e   : > { %v5335_v16 = vpop.f32.mrf.mxu1  ;;  %v5283_v8 = vpop.f32.mrf.mxu0 }
 0x32f   : > { %v7756_v27 = vadd.f32 %v5331_v31, %v5283_v8 }
 0x330   : > { %5651 = vmatpush3.bf16.msra.mxu0 %v5898_v49  ;;  %v2204_v18 = vpop.f32.mrf.mxu1  ;;  %v1979_v48 = vpop.f32.mrf.mxu0 }
 0x331   : > { %5652 = vmatprep.subr.bf16.mxu0 %v5899_v42  ;;  %v7761_v5 = vadd.f32 %v2188_v35, %v1979_v48 }
 0x332   : > { %v5338_v44 = vpop.f32.mrf.mxu1  ;;  %5625 = vmatmul.mubr.bf16.gmra.mxu1 %v7463_v61  ;;  %v5286_v53 = vpop.f32.mrf.mxu0 }
 0x333   : > { %5573 = vmatmul.mubr.bf16.gmra.mxu0 %v7344_v54  ;;  %5628 = vmatprep.mubr.bf16.mxu1 %v7474_v10  ;;  %v7767_v43 = vadd.f32 %v5334_v55, %v5286_v53 }
 0x334   : > { %5576 = vmatprep.mubr.bf16.mxu0 %v7361_v38  ;;  %5653 = vmatpush3.bf16.msra.mxu0 %v5899_v42  ;;  %v2217_v17 = vpop.f32.mrf.mxu1  ;;  %v1992_v34 = vpop.f32.mrf.mxu0  ;;  %v5902_v38 = vld [vmem:[%s8808_s2 + $0x210] sm:$0xff]   ;;  %v5903_v42 = vld [vmem:[%s8808_s2 + $0x208] sm:$0xff]  }
 0x335   : > { %5654 = vmatprep.subr.bf16.mxu0 %v5900_v37  ;;  %v7772_v11 = vadd.f32 %v2201_v4, %v1992_v34 }
 0x336   : > { %v5339_v61 = vpop.f32.mrf.mxu1  ;;  %v5287_v7 = vpop.f32.mrf.mxu0 }
 0x337   : > { %v7774_v31 = vadd.f32 %v5335_v16, %v5287_v7 }
 0x338   : > { %5655 = vmatpush3.bf16.msra.mxu0 %v5900_v37  ;;  %v2220_v54 = vpop.f32.mrf.mxu1  ;;  %v1995_v10 = vpop.f32.mrf.mxu0 }
 0x339   : > { %5656 = vmatprep.subr.bf16.mxu0 %v5901_v57  ;;  %v7779_v35 = vadd.f32 %v2204_v18, %v1995_v10 }
 0x33a   : > { %v5342_v49 = vpop.f32.mrf.mxu1  ;;  %5629 = vmatmul.mubr.bf16.gmra.mxu1 %v7504_v21  ;;  %v5290_v55 = vpop.f32.mrf.mxu0 }
 0x33b   : > { %5577 = vmatmul.mubr.bf16.gmra.mxu0 %v7411_v58  ;;  %5632 = vmatprep.mubr.bf16.mxu1 %v7512_v1  ;;  %v7785_v12 = vadd.f32 %v5338_v44, %v5290_v55 }
 0x33c   : > { %5580 = vmatprep.mubr.bf16.mxu0 %v7415_v46  ;;  %v2233_v4 = vpop.f32.mrf.mxu1  ;;  %5657 = vmatpush3.bf16.msra.mxu0 %v5901_v57  ;;  %v2008_v63 = vpop.f32.mrf.mxu0  ;;  %v5904_v46 = vld [vmem:[%s8808_s2 + $0x200] sm:$0xff]  }
 0x33d   : > { %5658 = vmatprep.subr.bf16.mxu0 %v5902_v38  ;;  %v7790_v16 = vadd.f32 %v2217_v17, %v2008_v63 }
 0x33e   : > { %v5343_v21 = vpop.f32.mrf.mxu1  ;;  %v5291_v8 = vpop.f32.mrf.mxu0 }
 0x33f   : > { %v7792_v18 = vadd.f32 %v5339_v61, %v5291_v8 }
 0x340   : > { %v2236_v58 = vpop.f32.mrf.mxu1  ;;  %5659 = vmatpush3.bf16.msra.mxu0 %v5902_v38  ;;  %v2011_v1 = vpop.f32.mrf.mxu0 }
 0x341   : > { %5660 = vmatprep.subr.bf16.mxu0 %v5903_v42  ;;  %v7797_v48 = vadd.f32 %v2220_v54, %v2011_v1 }
 0x342   : > { %v5346_v37 = vpop.f32.mrf.mxu1  ;;  %5633 = vmatmul.mubr.bf16.gmra.mxu1 %v7535_v9  ;;  %v5294_v44 = vpop.f32.mrf.mxu0 }
 0x343   : > { %5581 = vmatmul.mubr.bf16.gmra.mxu0 %v7455_v32  ;;  %5636 = vmatprep.mubr.bf16.mxu1 %v7539_v28  ;;  %v7803_v53 = vadd.f32 %v5342_v49, %v5294_v44 }
 0x344   : > { %5584 = vmatprep.mubr.bf16.mxu0 %v7459_v26  ;;  %v7805_v17 = vpop.f32.mrf.mxu1  ;;  %5661 = vmatpush3.bf16.msra.mxu0 %v5903_v42  ;;  %v2024_v34 = vpop.f32.mrf.mxu0 }
 0x345   : > { %5662 = vmatprep.subr.bf16.mxu0 %v5904_v46  ;;  %v7807_v57 = vadd.f32 %v2233_v4, %v2024_v34 }
 0x346   : > { %v5347_v61 = vpop.f32.mrf.mxu1  ;;  %v5295_v7 = vpop.f32.mrf.mxu0 }
 0x347   : > { %v7809_v54 = vadd.f32 %v5343_v21, %v5295_v7  ;;  %v9130_v7 = vld [vmem:[#allocation78_spill] sm:$0xff] }
 0x348   : > { %v7811_v9 = vpop.f32.mrf.mxu1  ;;  %5663 = vmatpush3.bf16.msra.mxu0 %v5904_v46  ;;  %v2027_v32 = vpop.f32.mrf.mxu0 }
 0x349   : > { %v7813_v28 = vadd.f32 %v2236_v58, %v2027_v32  ;;  %v9131_v32 = vrot.slane %v9130_v7, 7 }
 0x34a   : > { %v5350_v26 = vpop.f32.mrf.mxu1  ;;  %5637 = vmatmul.mubr.bf16.gmra.mxu1 %v7551_v14  ;;  %v5298_v10 = vpop.f32.mrf.mxu0 }
 0x34b   : > { %5585 = vmatmul.mubr.bf16.gmra.mxu0 %v7494_v2  ;;  %5640 = vmatprep.mubr.bf16.mxu1 %v7555_v51  ;;  %v7819_v38 = vadd.f32 %v5346_v37, %v5298_v10 }
 0x34c   : > { %5588 = vmatprep.mubr.bf16.mxu0 %v7500_v15  ;;  %v2265_v49 = vpop.f32.mrf.mxu1  ;;  %v7821_v55 = vpop.f32.mrf.mxu0 }
 0x34e   : > { %v5351_v4 = vpop.f32.mrf.mxu1  ;;  %v5299_v63 = vpop.f32.mrf.mxu0 }
 0x34f   : > { %v7823_v42 = vadd.f32 %v5347_v61, %v5299_v63 }
 0x350   : > { %v2268_v21 = vpop.f32.mrf.mxu1  ;;  %v7825_v8 = vpop.f32.mrf.mxu0 }
 0x352   : > { %v5354_v14 = vpop.f32.mrf.mxu1  ;;  %5641 = vmatmul.mubr.bf16.gmra.mxu1 %v7563_v3  ;;  %v5302_v2 = vpop.f32.mrf.mxu0  ;;  %v9129_v3 = vld [vmem:[#allocation6_spill] sm:$0xff] }
 0x353   : > { %5589 = vmatmul.mubr.bf16.gmra.mxu0 %v7523_v47  ;;  %5644 = vmatprep.mubr.bf16.mxu1 %v9128_v56  ;;  %v7831_v15 = vadd.f32 %v5350_v26, %v5302_v2  ;;  %v1195_v47 = vsel %vm1193_vm3, %v9131_v32, %v9129_v3  ;;  %v9132_v26 = vmov 0.0|0.0  }
 0x354   : > { %5592 = vmatprep.mubr.bf16.mxu0 %v7531_v39  ;;  %v2281_v51 = vpop.f32.mrf.mxu1  ;;  %v2056_v58 = vpop.f32.mrf.mxu0 }
 0x355   : > { %v7833_v1 = vadd.f32 %v2265_v49, %v2056_v58  ;;  %v1439_v49 = vpop.permute.xlu0 %1438  ;;  %v1444_v58 = vpop.permute.xlu1 %1443 }
 0x356   : > { %v5355_v46 = vpop.f32.mrf.mxu1  ;;  %v5303_v37 = vpop.f32.mrf.mxu0  ;;  %v1480_v2 = vmul.f32 %v1439_v49, %v1195_v47 }
 0x357   : > { %v7835_v44 = vadd.f32 %v5351_v4, %v5303_v37 }
 0x358   : > { %v2284_v34 = vpop.f32.mrf.mxu1  ;;  %v2059_v61 = vpop.f32.mrf.mxu0 }
 0x359   : > { %v7842_v56 = vadd.f32 %v2268_v21, %v2059_v61  ;;  %v1481_v61 = vmul.f32 %v1444_v58, %v9129_v3 }
 0x35a   : > { %v5358_v39 = vpop.f32.mrf.mxu1  ;;  %5645 = vmatmul.mubr.bf16.gmra.mxu1 %v9132_v26  ;;  %v5306_v10 = vpop.f32.mrf.mxu0 }
 0x35b   : > { %5593 = vmatmul.mubr.bf16.gmra.mxu0 %v7547_v36  ;;  %5728 = vmatprep.mubr.msk.f32.mxu1 %vm5973_vm2, %v9126_v60  ;;  %v7849_v4 = vadd.f32 %v5354_v14, %v5306_v10  ;;  %v1824_v26 = vpack.c.bf16 %v1481_v61, %v1480_v2 }
 0x35c   : > { %5596 = vmatprep.mubr.bf16.mxu0 %v7334_v6  ;;  %v2297_v63 = vpop.f32.mrf.mxu1  ;;  %v2072_v24 = vpop.f32.mrf.mxu0 }
 0x35d   : > { %v7851_v21 = vadd.f32 %v2281_v51, %v2072_v24 }
 0x35e   : > { %v5359_v37 = vpop.f32.mrf.mxu1  ;;  %v5307_v7 = vpop.f32.mrf.mxu0 }
 0x35f   : > { %v7854_v32 = vadd.f32 %v5355_v46, %v5307_v7 }
 0x360   : > { %v2300_v36 = vpop.f32.mrf.mxu1  ;;  %v2075_v60 = vpop.f32.mrf.mxu0 }
 0x361   : > { %v7856_v52 = vadd.f32 %v2284_v34, %v2075_v60 }
 0x362   : > { %v5426_v6 = vpop.f32.mrf.mxu1  ;;  %v5310_v14 = vpop.f32.mrf.mxu0 }
 0x363   : > { %5597 = vmatmul.mubr.bf16.gmra.mxu0 %v1824_v26  ;;  %v7859_v47 = vadd.f32 %v5358_v39, %v5310_v14 }
 0x364   : > { %5664 = vmatprep.mubr.bf16.mxu0 %v7240_v0  ;;  %v2669_v51 = vpop.f32.mrf.mxu1  ;;  %v2088_v10 = vpop.f32.mrf.mxu0 }
 0x365   : > { %v7861_v49 = vadd.f32 %v2297_v63, %v2088_v10 }
 0x366   : > { %v5427_v3 = vpop.f32.mrf.mxu1  ;;  %v5311_v24 = vpop.f32.mrf.mxu0 }
 0x367   : > { %v7863_v46 = vadd.f32 %v5359_v37, %v5311_v24 }
 0x368   : > { %v2672_v58 = vpop.f32.mrf.mxu1  ;;  %v2091_v2 = vpop.f32.mrf.mxu0 }
 0x369   : > { %v7865_v61 = vadd.f32 %v2300_v36, %v2091_v2 }
 0x36a   : > { %v5430_v60 = vpop.f32.mrf.mxu1  ;;  %v5378_v34 = vpop.f32.mrf.mxu0 }
 0x36b   : > { %9133 = vst [vmem:[#allocation31_spill] sm:$0xff] %v7865_v61  ;;  %5665 = vmatmul.mubr.bf16.vlgmr.msra.gmra.mxu0 %v7242_v13  ;;  %v2540_v0 = vadd.f32 %v5378_v34, %v7749_v20 }
 0x36c   : > { %5668 = vmatprep.mubr.bf16.mxu0 %v7245_v50  ;;  %v2685_v39 = vpop.f32.mrf.mxu1  ;;  %v2411_v7 = vpop.f32.mrf.mxu0 }
 0x36d   : > { %v2538_v63 = vadd.f32 %v2411_v7, %v7754_v22  ;;  %v7871_v26 = vadd.f32 %v5426_v6, %v2540_v0 }
 0x36e   : > { %v5431_v37 = vpop.f32.mrf.mxu1  ;;  %v5379_v14 = vpop.f32.mrf.mxu0 }
 0x36f   : > { %v2541_v10 = vadd.f32 %v5379_v14, %v7756_v27  ;;  %v7874_v36 = vadd.f32 %v2669_v51, %v2538_v63 }
 0x370   : > { %v2688_v24 = vpop.f32.mrf.mxu1  ;;  %v2414_v2 = vpop.f32.mrf.mxu0 }
 0x371   : > { %v2539_v13 = vadd.f32 %v2414_v2, %v7761_v5  ;;  %v7877_v61 = vadd.f32 %v5427_v3, %v2541_v10 }
 0x372   : > { %v5434_v20 = vpop.f32.mrf.mxu1 }
 0x373   : > { %v5382_v50 = vpop.f32.mrf.mxu0  ;;  %5669 = vmatmul.mubr.bf16.gmra.mxu0 %v7247_v29  ;;  %v7882_v6 = vadd.f32 %v2672_v58, %v2539_v13 }
 0x374   : > { %v2544_v22 = vadd.f32 %v5382_v50, %v7767_v43  ;;  %5672 = vmatprep.mubr.bf16.mxu0 %v7249_v59  ;;  %v2701_v34 = vpop.f32.mrf.mxu1 }
 0x375   : > { %v2427_v27 = vpop.f32.mrf.mxu0 }
 0x376   : > { %v2542_v51 = vadd.f32 %v2427_v27, %v7772_v11  ;;  %v7885_v0 = vadd.f32 %v5430_v60, %v2544_v22  ;;  %v5435_v7 = vpop.f32.mrf.mxu1 }
 0x377   : > { %v5383_v5 = vpop.f32.mrf.mxu0 }
 0x378   : > { %v2545_v3 = vadd.f32 %v5383_v5, %v7774_v31  ;;  %v7888_v63 = vadd.f32 %v2685_v39, %v2542_v51  ;;  %v2704_v14 = vpop.f32.mrf.mxu1 }
 0x379   : > { %v2430_v29 = vpop.f32.mrf.mxu0 }
 0x37a   : > { %v2543_v43 = vadd.f32 %v2430_v29, %v7779_v35  ;;  %v7891_v10 = vadd.f32 %v5431_v37, %v2545_v3  ;;  %v5438_v59 = vpop.f32.mrf.mxu1 }
 0x37b   : > { %v5386_v58 = vpop.f32.mrf.mxu0  ;;  %5673 = vmatmul.mubr.bf16.gmra.mxu0 %v7251_v41 }
 0x37c   : > { %v2548_v11 = vadd.f32 %v5386_v58, %v7785_v12  ;;  %5676 = vmatprep.mubr.bf16.mxu0 %v7256_v62  ;;  %v7896_v60 = vadd.f32 %v2688_v24, %v2543_v43  ;;  %v2717_v2 = vpop.f32.mrf.mxu1 }
 0x37d   : > { %v2443_v31 = vpop.f32.mrf.mxu0 }
 0x37e   : > { %v2546_v39 = vadd.f32 %v2443_v31, %v7790_v16  ;;  %v7899_v13 = vadd.f32 %v5434_v20, %v2548_v11  ;;  %v5439_v50 = vpop.f32.mrf.mxu1 }
 0x37f   : > { %v5387_v35 = vpop.f32.mrf.mxu0 }
 0x380   : > { %v2549_v37 = vadd.f32 %v5387_v35, %v7792_v18  ;;  %v7902_v22 = vadd.f32 %v2701_v34, %v2546_v39  ;;  %v2720_v27 = vpop.f32.mrf.mxu1 }
 0x381   : > { %v2446_v41 = vpop.f32.mrf.mxu0 }
 0x382   : > { %v2547_v12 = vadd.f32 %v2446_v41, %v7797_v48  ;;  %v7905_v51 = vadd.f32 %v5435_v7, %v2549_v37  ;;  %v5442_v62 = vpop.f32.mrf.mxu1  ;;  %v2253_v37 = vadd.f32 %v7811_v9, %v7825_v8 }
 0x383   : > { %v5390_v24 = vpop.f32.mrf.mxu0  ;;  %5677 = vmatmul.mubr.bf16.gmra.mxu0 %v7258_v40 }
 0x384   : > { %v2552_v16 = vadd.f32 %v5390_v24, %v7803_v53  ;;  %5680 = vmatprep.mubr.bf16.mxu0 %v7260_v19  ;;  %v7910_v20 = vadd.f32 %v2704_v14, %v2547_v12  ;;  %v2733_v5 = vpop.f32.mrf.mxu1 }
 0x385   : > { %v2459_v18 = vpop.f32.mrf.mxu0 }
 0x386   : > { %v2550_v34 = vadd.f32 %v2459_v18, %v7807_v57  ;;  %v7913_v3 = vadd.f32 %v5438_v59, %v2552_v16  ;;  %v5443_v29 = vpop.f32.mrf.mxu1  ;;  %v2250_v57 = vadd.f32 %v7805_v17, %v7821_v55 }
 0x387   : > { %v5391_v48 = vpop.f32.mrf.mxu0 }
 0x388   : > { %v2553_v7 = vadd.f32 %v5391_v48, %v7809_v54  ;;  %v7916_v43 = vadd.f32 %v2717_v2, %v2550_v34  ;;  %v2736_v58 = vpop.f32.mrf.mxu1 }
 0x389   : > { %v2462_v40 = vpop.f32.mrf.mxu0 }
 0x38a   : > { %v2551_v53 = vadd.f32 %v2462_v40, %v7813_v28  ;;  %v7919_v11 = vadd.f32 %v5439_v50, %v2553_v7  ;;  %v5446_v19 = vpop.f32.mrf.mxu1 }
 0x38b   : > { %v5394_v14 = vpop.f32.mrf.mxu0  ;;  %5681 = vmatmul.mubr.bf16.gmra.mxu0 %v7262_v33 }
 0x38c   : > { %v2556_v59 = vadd.f32 %v5394_v14, %v7819_v38  ;;  %5684 = vmatprep.mubr.bf16.mxu0 %v7264_v45  ;;  %v7926_v54 = vadd.f32 %v2720_v27, %v2551_v53  ;;  %v2749_v2 = vpop.f32.mrf.mxu1 }
 0x38d   : > { %v2475_v31 = vpop.f32.mrf.mxu0 }
 0x38e   : > { %v2554_v39 = vadd.f32 %v2475_v31, %v2250_v57  ;;  %v7928_v35 = vadd.f32 %v5442_v62, %v2556_v59  ;;  %v5447_v28 = vpop.f32.mrf.mxu1  ;;  %v9135_v57 = vld [vmem:[#allocation40_spill] sm:$0xff] }
 0x38f   : > { %v5395_v50 = vpop.f32.mrf.mxu0 }
 0x390   : > { %v2557_v33 = vadd.f32 %v5395_v50, %v7823_v42  ;;  %v7933_v41 = vadd.f32 %v2733_v5, %v2554_v39  ;;  %v2752_v17 = vpop.f32.mrf.mxu1 }
 0x391   : > { %v2478_v38 = vpop.f32.mrf.mxu0 }
 0x392   : > { %v2555_v55 = vadd.f32 %v2478_v38, %v2253_v37  ;;  %v7935_v45 = vadd.f32 %v5443_v29, %v2557_v33  ;;  %v5450_v27 = vpop.f32.mrf.mxu1 }
 0x393   : > { %v5398_v12 = vpop.f32.mrf.mxu0  ;;  %5685 = vmatmul.mubr.bf16.gmra.mxu0 %v9117_v30  ;;  %v1769_v30 = vpop.permute.xlu1 %1768 }
 0x394   : > { %v2560_v62 = vadd.f32 %v5398_v12, %v7831_v15  ;;  %5688 = vmatprep.mubr.bf16.mxu0 %v9118_v25  ;;  %v7940_v24 = vadd.f32 %v2736_v58, %v2555_v55  ;;  %v2765_v9 = vpop.f32.mrf.mxu1  ;;  %v1764_v15 = vpop.permute.xlu0 %1763  ;;  %v1806_v59 = vmul.f32 %v1769_v30, %v9135_v57 }
 0x395   : > { %v2491_v8 = vpop.f32.mrf.mxu0 }
 0x396   : > { %v2558_v42 = vadd.f32 %v2491_v8, %v7833_v1  ;;  %v7943_v16 = vadd.f32 %v5446_v19, %v2560_v62  ;;  %v5451_v5 = vpop.f32.mrf.mxu1  ;;  %v9134_v19 = vld [vmem:[#allocation14_spill] sm:$0xff] }
 0x397   : > { %v5399_v18 = vpop.f32.mrf.mxu0 }
 0x398   : > { %v2561_v34 = vadd.f32 %v5399_v18, %v7835_v44  ;;  %v7946_v29 = vadd.f32 %v2749_v2, %v2558_v42  ;;  %v2768_v48 = vpop.f32.mrf.mxu1  ;;  %v1805_v2 = vmul.f32 %v1764_v15, %v9135_v57  ;;  %v9136_v15 = vld [vmem:[#allocation31_spill] sm:$0xff] }
 0x399   : > { %v2494_v7 = vpop.f32.mrf.mxu0 }
 0x39a   : > { %v2559_v25 = vadd.f32 %v2494_v7, %v7842_v56  ;;  %v7949_v58 = vadd.f32 %v5447_v28, %v2561_v34  ;;  %v5454_v40 = vpop.f32.mrf.mxu1  ;;  %v1860_v33 = vpack.c.bf16 %v1806_v59, %v1805_v2 }
 0x39b   : > { %v5402_v53 = vpop.f32.mrf.mxu0  ;;  %5689 = vmatmul.mubr.bf16.gmra.mxu0 %v7658_v23 }
 0x39c   : > { %v2564_v1 = vadd.f32 %v5402_v53, %v7849_v4  ;;  %5692 = vmatprep.mubr.bf16.mxu0 %v9134_v19  ;;  %v7954_v14 = vadd.f32 %v2752_v17, %v2559_v25  ;;  %v2781_v44 = vpop.f32.mrf.mxu1 }
 0x39d   : > { %v2507_v31 = vpop.f32.mrf.mxu0 }
 0x39e   : > { %v2562_v56 = vadd.f32 %v2507_v31, %v7851_v21  ;;  %v7959_v39 = vadd.f32 %v5450_v27, %v2564_v1  ;;  %v5455_v28 = vpop.f32.mrf.mxu1 }
 0x39f   : > { %v5403_v50 = vpop.f32.mrf.mxu0 }
 0x3a0   : > { %v2565_v23 = vadd.f32 %v5403_v50, %v7854_v32  ;;  %v7962_v37 = vadd.f32 %v2765_v9, %v2562_v56  ;;  %v2784_v4 = vpop.f32.mrf.mxu1 }
 0x3a1   : > { %v2510_v17 = vpop.f32.mrf.mxu0 }
 0x3a2   : > { %v2563_v38 = vadd.f32 %v2510_v17, %v7856_v52  ;;  %v7965_v55 = vadd.f32 %v5451_v5, %v2565_v23  ;;  %v5522_v12 = vpop.f32.mrf.mxu1 }
 0x3a3   : > { %v5406_v62 = vpop.f32.mrf.mxu0  ;;  %5693 = vmatmul.mubr.bf16.gmra.mxu0 %v1860_v33 }
 0x3a4   : > { %v2568_v21 = vadd.f32 %v5406_v62, %v7859_v47  ;;  %v7968_v27 = vadd.f32 %v2768_v48, %v2563_v38  ;;  %v3185_v8 = vpop.f32.mrf.mxu1 }
 0x3a5   : > { %v2523_v42 = vpop.f32.mrf.mxu0 }
 0x3a6   : > { %v2566_v32 = vadd.f32 %v2523_v42, %v7861_v49  ;;  %v7971_v9 = vadd.f32 %v5454_v40, %v2568_v21  ;;  %v5523_v18 = vpop.f32.mrf.mxu1 }
 0x3a7   : > { %v5407_v34 = vpop.f32.mrf.mxu0 }
 0x3a8   : > { %v2569_v30 = vadd.f32 %v5407_v34, %v7863_v46  ;;  %v7974_v52 = vadd.f32 %v2781_v44, %v2566_v32  ;;  %v7976_v5 = vpop.f32.mrf.mxu1 }
 0x3a9   : > { %v2526_v7 = vpop.f32.mrf.mxu0 }
 0x3aa   : > { %v2567_v25 = vadd.f32 %v2526_v7, %v9136_v15  ;;  %v7979_v47 = vadd.f32 %v5455_v28, %v2569_v30  ;;  %v5526_v48 = vpop.f32.mrf.mxu1 }
 0x3ab   : > { %v5474_v53 = vpop.f32.mrf.mxu0 }
 0x3ac   : > { %v3056_v1 = vadd.f32 %v5474_v53, %v7871_v26  ;;  %v7982_v49 = vadd.f32 %v2784_v4, %v2567_v25  ;;  %v7984_v40 = vpop.f32.mrf.mxu1 }
 0x3ad   : > { %v2927_v19 = vpop.f32.mrf.mxu0 }
 0x3ae   : > { %v3054_v46 = vadd.f32 %v2927_v19, %v7874_v36  ;;  %v7987_v44 = vadd.f32 %v5522_v12, %v3056_v1  ;;  %v5527_v57 = vpop.f32.mrf.mxu1 }
 0x3af   : > { %v5475_v59 = vpop.f32.mrf.mxu0 }
 0x3b0   : > { %v3057_v2 = vadd.f32 %v5475_v59, %v7877_v61  ;;  %v7990_v31 = vadd.f32 %v3185_v8, %v3054_v46  ;;  %v7992_v56 = vpop.f32.mrf.mxu1  ;;  %v8037_v59 = vld [vmem:[%s8809_s3 + $0x78] sm:$0xff] }
 0x3b1   : > { %v2930_v28 = vpop.f32.mrf.mxu0  ;;  %9137 = vst [vmem:[#allocation30_spill] sm:$0xff] %v8037_v59  ;;  %5697 = vmatpush3.msra.mxu1 %v8037_v59 }
 0x3b2   : > { %v7995_v26 = vadd.f32 %v2930_v28, %v7882_v6  ;;  %v7997_v50 = vadd.f32 %v5523_v18, %v3057_v2  ;;  %v5530_v23 = vpop.f32.mrf.mxu1 }
 0x3b3   : > { %v5478_v4 = vpop.f32.mrf.mxu0 }
 0x3b4   : > { %v3060_v36 = vadd.f32 %v5478_v4, %v7885_v0  ;;  %v8000_v33 = vpop.f32.mrf.mxu1 }
 0x3b5   : > { %v2943_v17 = vpop.f32.mrf.mxu0 }
 0x3b6   : > { %v8003_v38 = vadd.f32 %v2943_v17, %v7888_v63  ;;  %v8005_v61 = vadd.f32 %v5526_v48, %v3060_v36  ;;  %v5531_v12 = vpop.f32.mrf.mxu1  ;;  %v8052_v17 = vld [vmem:[%s8809_s3 + $0x70] sm:$0xff] }
 0x3b7   : > { %v5479_v62 = vpop.f32.mrf.mxu0  ;;  %9139 = vst [vmem:[#allocation33_spill] sm:$0xff] %v8052_v17 }
 0x3b8   : > { %v3061_v21 = vadd.f32 %v5479_v62, %v7891_v10  ;;  %v8008_v6 = vpop.f32.mrf.mxu1 }
 0x3b9   : > { %v2946_v8 = vpop.f32.mrf.mxu0 }
 0x3ba   : > { %v8011_v42 = vadd.f32 %v2946_v8, %v7896_v60  ;;  %v8013_v32 = vadd.f32 %v5527_v57, %v3061_v21  ;;  %v5534_v0 = vpop.f32.mrf.mxu1 }
 0x3bb   : > { %v5482_v18 = vpop.f32.mrf.mxu0 }
 0x3bc   : > { %v3064_v34 = vadd.f32 %v5482_v18, %v7899_v13  ;;  %v8016_v63 = vpop.f32.mrf.mxu1  ;;  %v8067_v18 = vld [vmem:[%s8809_s3 + $0x68] sm:$0xff] }
 0x3bd   : > { %v2959_v30 = vpop.f32.mrf.mxu0  ;;  %9141 = vst [vmem:[#allocation41_spill] sm:$0xff] %v8067_v18 }
 0x3be   : > { %v8019_v7 = vadd.f32 %v2959_v30, %v7902_v22  ;;  %v8021_v15 = vadd.f32 %v5530_v23, %v3064_v34  ;;  %v5535_v10 = vpop.f32.mrf.mxu1  ;;  %v9138_v23 = vmov 0.0  }
 0x3bf   : > { %v5483_v25 = vpop.f32.mrf.mxu0  ;;  %5698 = vmatprep.subr.mxu1 %v9138_v23 }
 0x3c0   : > { %v3065_v48 = vadd.f32 %v5483_v25, %v7905_v51  ;;  %v8024_v60 = vpop.f32.mrf.mxu1  ;;  %5699 = vmatpush3.msra.mxu1 %v8052_v17 }
 0x3c1   : > { %v2962_v53 = vpop.f32.mrf.mxu0  ;;  %5700 = vmatprep.subr.mxu1 %v9138_v23 }
 0x3c2   : > { %v8027_v1 = vadd.f32 %v2962_v53, %v7910_v20  ;;  %v8029_v19 = vadd.f32 %v5531_v12, %v3065_v48  ;;  %v5538_v13 = vpop.f32.mrf.mxu1  ;;  %5701 = vmatpush3.msra.mxu1 %v8067_v18  ;;  %v8082_v53 = vld [vmem:[%s8809_s3 + $0x60] sm:$0xff] }
 0x3c3   : > { %v5486_v46 = vpop.f32.mrf.mxu0  ;;  %5702 = vmatprep.subr.mxu1 %v9138_v23  ;;  %9143 = vst [vmem:[#allocation44_spill] sm:$0xff] %v8082_v53 }
 0x3c4   : > { %v3068_v57 = vadd.f32 %v5486_v46, %v7913_v3  ;;  %v8032_v22 = vpop.f32.mrf.mxu1  ;;  %5703 = vmatpush3.msra.mxu1 %v8082_v53 }
 0x3c5   : > { %v2975_v51 = vpop.f32.mrf.mxu0  ;;  %5704 = vmatprep.subr.mxu1 %v9138_v23 }
 0x3c6   : > { %v8041_v2 = vadd.f32 %v2975_v51, %v7916_v43  ;;  %v8043_v20 = vadd.f32 %v5534_v0, %v3068_v57  ;;  %v5539_v28 = vpop.f32.mrf.mxu1 }
 0x3c7   : > { %v5487_v4 = vpop.f32.mrf.mxu0 }
 0x3c8   : > { %v3069_v3 = vadd.f32 %v5487_v4, %v7919_v11  ;;  %v8047_v36 = vpop.f32.mrf.mxu1 }
 0x3c9   : > { %v2978_v12 = vpop.f32.mrf.mxu0 }
 0x3ca   : > { %v8056_v43 = vadd.f32 %v2978_v12, %v7926_v54  ;;  %v8058_v62 = vadd.f32 %v5535_v10, %v3069_v3  ;;  %v5542_v21 = vpop.f32.mrf.mxu1  ;;  %v8097_v3 = vld [vmem:[%s8809_s3 + $0x58] sm:$0xff] }
 0x3cb   : > { %v5490_v8 = vpop.f32.mrf.mxu0  ;;  %9145 = vst [vmem:[#allocation64_spill] sm:$0xff] %v8097_v3  ;;  %5705 = vmatpush3.msra.mxu1 %v8097_v3 }
 0x3cc   : > { %v3072_v11 = vadd.f32 %v5490_v8, %v7928_v35  ;;  %v8062_v0 = vpop.f32.mrf.mxu1  ;;  %5706 = vmatprep.subr.mxu1 %v9138_v23 }
 0x3cd   : > { %9140 = vst [vmem:[#allocation32_spill] sm:$0xff] %v8062_v0  ;;  %v2991_v34 = vpop.f32.mrf.mxu0 }
 0x3ce   : > { %v8071_v54 = vadd.f32 %v2991_v34, %v7933_v41  ;;  %v8073_v30 = vadd.f32 %v5538_v13, %v3072_v11  ;;  %v5543_v10 = vpop.f32.mrf.mxu1 }
 0x3cf   : > { %v5491_v25 = vpop.f32.mrf.mxu0 }
 0x3d0   : > { %v3073_v35 = vadd.f32 %v5491_v25, %v7935_v45  ;;  %v8077_v48 = vpop.f32.mrf.mxu1  ;;  %v8112_v25 = vld [vmem:[%s8809_s3 + $0x50] sm:$0xff] }
 0x3d1   : > { %9142 = vst [vmem:[#allocation39_spill] sm:$0xff] %v8077_v48  ;;  %v2994_v46 = vpop.f32.mrf.mxu0  ;;  %9148 = vst [vmem:[#allocation79_spill] sm:$0xff] %v8112_v25  ;;  %5707 = vmatpush3.msra.mxu1 %v8112_v25 }
 0x3d2   : > { %v8086_v41 = vadd.f32 %v2994_v46, %v7940_v24  ;;  %v8088_v13 = vadd.f32 %v5539_v28, %v3073_v35  ;;  %v5546_v57 = vpop.f32.mrf.mxu1  ;;  %5708 = vmatprep.subr.mxu1 %v9138_v23 }
 0x3d3   : > { %v5494_v51 = vpop.f32.mrf.mxu0 }
 0x3d4   : > { %v3076_v45 = vadd.f32 %v5494_v51, %v7943_v16  ;;  %v8092_v4 = vpop.f32.mrf.mxu1 }
 0x3d5   : > { %9144 = vst [vmem:[#allocation43_spill] sm:$0xff] %v8092_v4  ;;  %v3007_v12 = vpop.f32.mrf.mxu0 }
 0x3d6   : > { %v8101_v24 = vadd.f32 %v3007_v12, %v7946_v29  ;;  %v8103_v28 = vadd.f32 %v5542_v21, %v3076_v45  ;;  %v5547_v8 = vpop.f32.mrf.mxu1  ;;  %v8127_v12 = vld [vmem:[%s8809_s3 + $0x48] sm:$0xff] }
 0x3d7   : > { %v5495_v11 = vpop.f32.mrf.mxu0  ;;  %9151 = vst [vmem:[#allocation52_spill] sm:$0xff] %v8127_v12  ;;  %5709 = vmatpush3.msra.mxu1 %v8127_v12 }
 0x3d8   : > { %9146 = vst [vmem:[#allocation59_spill] sm:$0xff] %v8101_v24  ;;  %v3077_v16 = vadd.f32 %v5495_v11, %v7949_v58  ;;  %v8107_v34 = vpop.f32.mrf.mxu1  ;;  %5710 = vmatprep.subr.mxu1 %v9138_v23 }
 0x3d9   : > { %9147 = vst [vmem:[#allocation80_spill] sm:$0xff] %v8107_v34  ;;  %v3010_v35 = vpop.f32.mrf.mxu0 }
 0x3da   : > { %v8116_v29 = vadd.f32 %v3010_v35, %v7954_v14  ;;  %v8118_v21 = vadd.f32 %v5543_v10, %v3077_v16  ;;  %v5550_v46 = vpop.f32.mrf.mxu1 }
 0x3db   : > { %v5498_v51 = vpop.f32.mrf.mxu0 }
 0x3dc   : > { %9149 = vst [vmem:[#allocation42_spill] sm:$0xff] %v8116_v29  ;;  %v3080_v58 = vadd.f32 %v5498_v51, %v7959_v39  ;;  %v8122_v45 = vpop.f32.mrf.mxu1  ;;  %v8140_v51 = vld [vmem:[%s8809_s3 + $0x40] sm:$0xff] }
 0x3dd   : > { %9150 = vst [vmem:[#allocation28_spill] sm:$0xff] %v8122_v45  ;;  %v3023_v11 = vpop.f32.mrf.mxu0  ;;  %9153 = vst [vmem:[#allocation77_spill] sm:$0xff] %v8140_v51  ;;  %5711 = vmatpush3.msra.mxu1 %v8140_v51 }
 0x3de   : > { %v8131_v14 = vadd.f32 %v3023_v11, %v7962_v37  ;;  %v8133_v10 = vadd.f32 %v5546_v57, %v3080_v58  ;;  %v5551_v35 = vpop.f32.mrf.mxu1  ;;  %5712 = vmatprep.subr.mxu1 %v9138_v23  ;;  %v8155_v11 = vld [vmem:[%s8809_s3 + $0x38] sm:$0xff] }
 0x3df   : > { %v5499_v16 = vpop.f32.mrf.mxu0  ;;  %9156 = vst [vmem:[#allocation10_spill] sm:$0xff] %v8155_v11  ;;  %5713 = vmatpush3.msra.mxu1 %v8155_v11 }
 0x3e0   : > { %9152 = vst [vmem:[#allocation48_spill] sm:$0xff] %v8131_v14  ;;  %v3081_v39 = vadd.f32 %v5499_v16, %v7965_v55  ;;  %v8150_v55 = vpop.f32.mrf.mxu1  ;;  %5714 = vmatprep.subr.mxu1 %v9138_v23 }
 0x3e1   : > { %v3026_v25 = vpop.f32.mrf.mxu0  ;;  %9155 = vst [vmem:[#allocation11_spill] sm:$0xff] %v8150_v55 }
 0x3e2   : > { %v8144_v12 = vadd.f32 %v3026_v25, %v7968_v27  ;;  %v8146_v37 = vadd.f32 %v5547_v8, %v3081_v39  ;;  %v8165_v39 = vpop.f32.mrf.mxu1 }
 0x3e3   : > { %v5502_v57 = vpop.f32.mrf.mxu0 }
 0x3e4   : > { %9154 = vst [vmem:[#allocation60_spill] sm:$0xff] %v8144_v12  ;;  %v3084_v58 = vadd.f32 %v5502_v57, %v7971_v9  ;;  %v8170_v57 = vld [vmem:[%s8809_s3 + $0x30] sm:$0xff] }
 0x3e5   : > { %v3039_v16 = vpop.f32.mrf.mxu0  ;;  %9158 = vst [vmem:[#allocation47_spill] sm:$0xff] %v8170_v57  ;;  %5715 = vmatpush3.msra.mxu1 %v8170_v57 }
 0x3e6   : > { %v8159_v27 = vadd.f32 %v3039_v16, %v7974_v52  ;;  %v8161_v8 = vadd.f32 %v5550_v46, %v3084_v58  ;;  %5716 = vmatprep.subr.mxu1 %v9138_v23  ;;  %v8182_v16 = vpop.f32.mrf.mxu1 }
 0x3e7   : > { %v5503_v25 = vpop.f32.mrf.mxu0 }
 0x3e8   : > { %9157 = vst [vmem:[#allocation86_spill] sm:$0xff] %v8159_v27  ;;  %v3085_v9 = vadd.f32 %v5503_v25, %v7979_v47  ;;  %v8187_v25 = vld [vmem:[%s8809_s3 + $0x28] sm:$0xff] }
 0x3e9   : > { %v3042_v51 = vpop.f32.mrf.mxu0  ;;  %9160 = vst [vmem:[#allocation17_spill] sm:$0xff] %v8187_v25  ;;  %5717 = vmatpush3.msra.mxu1 %v8187_v25 }
 0x3ea   : > { %v8174_v52 = vadd.f32 %v3042_v51, %v7982_v49  ;;  %v8176_v46 = vadd.f32 %v5551_v35, %v3085_v9  ;;  %5718 = vmatprep.subr.mxu1 %v9138_v23 }
 0x3eb   : > { %v5570_v58 = vpop.f32.mrf.mxu0 }
 0x3ec   : > { %9159 = vst [vmem:[#allocation18_spill] sm:$0xff] %v8174_v52  ;;  %v8180_v47 = vadd.f32 %v5570_v58, %v7987_v44  ;;  %v8197_v44 = vpop.f32.mrf.mxu1 }
 0x3ed   : > { %v3443_v11 = vpop.f32.mrf.mxu0 }
 0x3ee   : > { %v8191_v49 = vadd.f32 %v3443_v11, %v7990_v31  ;;  %v8204_v3 = vpop.f32.mrf.mxu1 }
 0x3ef   : > { %v5571_v35 = vpop.f32.mrf.mxu0 }
 0x3f0   : > { %v8195_v51 = vadd.f32 %v5571_v35, %v7997_v50  ;;  %v8211_v53 = vpop.f32.mrf.mxu1 }
 0x3f1   : > { %v8199_v9 = vpop.f32.mrf.mxu0 }
 0x3f2   : > { %v8215_v18 = vpop.f32.mrf.mxu1 }
 0x3f3   : > { %v5574_v58 = vpop.f32.mrf.mxu0 }
 0x3f4   : > { %v8202_v57 = vadd.f32 %v5574_v58, %v8005_v61  ;;  %v8223_v61 = vld [vmem:[%s8809_s3 + $0x20] sm:$0xff] }
 0x3f5   : > { %v8206_v25 = vpop.f32.mrf.mxu0  ;;  %9161 = vst [vmem:[#allocation83_spill] sm:$0xff] %v8223_v61  ;;  %5719 = vmatpush3.msra.mxu1 %v8223_v61  ;;  %v8249_v61 = vld [vmem:[%s8809_s3 + $0x8] sm:$0xff] }
 0x3f6   : > { %5720 = vmatprep.subr.mxu1 %v9138_v23  ;;  %9164 = vst [vmem:[#allocation51_spill] sm:$0xff] %v8249_v61 }
 0x3f7   : > { %v5575_v31 = vpop.f32.mrf.mxu0 }
 0x3f8   : > { %v8209_v11 = vadd.f32 %v5575_v31, %v8013_v32  ;;  %v8228_v32 = vld [vmem:[%s8809_s3 + $0x18] sm:$0xff] }
 0x3f9   : > { %v8213_v50 = vpop.f32.mrf.mxu0  ;;  %9162 = vst [vmem:[#allocation16_spill] sm:$0xff] %v8228_v32  ;;  %5721 = vmatpush3.msra.mxu1 %v8228_v32  ;;  %v8258_v32 = vld [vmem:[%s8809_s3] sm:$0xff] }
 0x3fa   : > { %5722 = vmatprep.subr.mxu1 %v9138_v23  ;;  %9165 = vst [vmem:[#allocation53_spill] sm:$0xff] %v8258_v32 }
 0x3fb   : > { %v5578_v35 = vpop.f32.mrf.mxu0 }
 0x3fc   : > { %v8218_v17 = vadd.f32 %v5578_v35, %v8021_v15  ;;  %v8237_v15 = vld [vmem:[%s8809_s3 + $0x10] sm:$0xff]  ;;  %v8240_v35 = vpop.f32.mrf.mxu1 }
 0x3fd   : > { %v8230_v58 = vpop.f32.mrf.mxu0  ;;  %9163 = vst [vmem:[#allocation66_spill] sm:$0xff] %v8237_v15  ;;  %5723 = vmatpush3.msra.mxu1 %v8237_v15 }
 0x3fe   : > { %5724 = vmatprep.subr.mxu1 %v9138_v23 }
 0x3ff   : > { %v5579_v31 = vpop.f32.mrf.mxu0  ;;  %5725 = vmatpush3.msra.mxu1 %v8249_v61 }
 0x400   : > { %v8243_v59 = vadd.f32 %v5579_v31, %v8029_v19  ;;  %v8261_v31 = vpop.f32.mrf.mxu1  ;;  %5726 = vmatprep.subr.mxu1 %v9138_v23 }
 0x401   : > { %v8251_v55 = vpop.f32.mrf.mxu0  ;;  %5727 = vmatpush3.msra.mxu1 %v8258_v32 }
 0x402   : > { %5731 = vmatprep.subr.mxu1 %v9138_v23  ;;  %v8271_v27 = vpop.f32.mrf.mxu1 }
 0x403   : > { %v5582_v19 = vpop.f32.mrf.mxu0 }
 0x404   : > { %v8264_v52 = vadd.f32 %v5582_v19, %v8043_v20  ;;  %v8278_v4 = vpop.f32.mrf.mxu1 }
 0x405   : > { %v8267_v45 = vpop.f32.mrf.mxu0 }
 0x406   : > { %v8285_v32 = vpop.f32.mrf.mxu1 }
 0x407   : > { %v5583_v15 = vpop.f32.mrf.mxu0 }
 0x408   : > { %v8274_v34 = vadd.f32 %v5583_v15, %v8058_v62  ;;  %v8292_v15 = vpop.f32.mrf.mxu1 }
 0x409   : > { %v8276_v61 = vpop.f32.mrf.mxu0 }
 0x40b   : > { %v5586_v12 = vpop.f32.mrf.mxu0 }
 0x40c   : > { %v8281_v20 = vadd.f32 %v5586_v12, %v8073_v30  ;;  %v8299_v12 = vpop.f32.mrf.mxu1 }
 0x40d   : > { %v8283_v19 = vpop.f32.mrf.mxu0 }
 0x40e   : > { %9166 = vst [vmem:[#allocation63_spill] sm:$0xff] %v8281_v20 }
 0x40f   : > { %v5587_v14 = vpop.f32.mrf.mxu0 }
 0x410   : > { %v8288_v23 = vadd.f32 %v5587_v14, %v8088_v13  ;;  %v8306_v14 = vpop.f32.mrf.mxu1 }
 0x411   : > { %v8290_v48 = vpop.f32.mrf.mxu0 }
 0x412   : > { %9167 = vst [vmem:[#allocation62_spill] sm:$0xff] %v8288_v23  ;;  %9168 = vst [vmem:[#allocation61_spill] sm:$0xff] %v8290_v48 }
 0x413   : > { %v5590_v62 = vpop.f32.mrf.mxu0 }
 0x414   : > { %v8295_v29 = vadd.f32 %v5590_v62, %v8103_v28  ;;  %v8313_v62 = vpop.f32.mrf.mxu1 }
 0x415   : > { %v8297_v0 = vpop.f32.mrf.mxu0 }
 0x416   : > { %9169 = vst [vmem:[#allocation54_spill] sm:$0xff] %v8295_v29  ;;  %9170 = vst [vmem:[#allocation55_spill] sm:$0xff] %v8297_v0 }
 0x417   : > { %v5591_v30 = vpop.f32.mrf.mxu0 }
 0x418   : > { %v8302_v20 = vadd.f32 %v5591_v30, %v8118_v21  ;;  %v8320_v30 = vpop.f32.mrf.mxu1 }
 0x419   : > { %v8304_v24 = vpop.f32.mrf.mxu0 }
 0x41a   : > { %9171 = vst [vmem:[#allocation65_spill] sm:$0xff] %v8302_v20  ;;  %9172 = vst [vmem:[#allocation56_spill] sm:$0xff] %v8304_v24 }
 0x41b   : > { %v5594_v13 = vpop.f32.mrf.mxu0 }
 0x41c   : > { %v8309_v23 = vadd.f32 %v5594_v13, %v8133_v10  ;;  %v8327_v13 = vpop.f32.mrf.mxu1 }
 0x41d   : > { %v8311_v48 = vpop.f32.mrf.mxu0 }
 0x41e   : > { %9173 = vst [vmem:[#allocation57_spill] sm:$0xff] %v8309_v23  ;;  %9174 = vst [vmem:[#allocation67_spill] sm:$0xff] %v8311_v48 }
 0x41f   : > { %v5595_v28 = vpop.f32.mrf.mxu0 }
 0x420   : > { %v8316_v29 = vadd.f32 %v5595_v28, %v8146_v37  ;;  %v3313_v28 = vadd.f32 %v7976_v5, %v7995_v26 }
 0x421   : > { %v8318_v0 = vpop.f32.mrf.mxu0 }
 0x422   : > { %9175 = vst [vmem:[#allocation68_spill] sm:$0xff] %v8316_v29  ;;  %9176 = vst [vmem:[#allocation20_spill] sm:$0xff] %v8318_v0  ;;  %v8336_v29 = vpop.f32.mrf.mxu1 }
 0x423   : > { %v5598_v21 = vpop.f32.mrf.mxu0 }
 0x424   : > { %v8323_v20 = vadd.f32 %v5598_v21, %v8161_v8  ;;  %v3571_v8 = vadd.f32 %v8199_v9, %v3313_v28  ;;  %v3828_v21 = vadd.f32 %v8182_v16, %v8191_v49  ;;  %v3831_v9 = vadd.f32 %v8197_v44, %v8195_v51 }
 0x425   : > { %v8325_v24 = vpop.f32.mrf.mxu0 }
 0x426   : > { %9177 = vst [vmem:[#allocation19_spill] sm:$0xff] %v8323_v20  ;;  %9178 = vst [vmem:[#allocation26_spill] sm:$0xff] %v8325_v24  ;;  %v3316_v20 = vadd.f32 %v7984_v40, %v8003_v38  ;;  %v3317_v40 = vadd.f32 %v7992_v56, %v8011_v42 }
 0x427   : > { %v5599_v10 = vpop.f32.mrf.mxu0 }
 0x428   : > { %v8330_v23 = vadd.f32 %v5599_v10, %v8176_v46  ;;  %v3830_v46 = vadd.f32 %v8165_v39, %v8180_v47  ;;  %v3829_v10 = vadd.f32 %v8204_v3, %v3571_v8  ;;  %v3574_v26 = vadd.f32 %v8206_v25, %v3316_v20 }
 0x429   : > { %v8332_v48 = vpop.f32.mrf.mxu0  ;;  %v3575_v51 = vadd.f32 %v8213_v50, %v3317_v40 }
 0x42a   : > { %9179 = vst [vmem:[#allocation25_spill] sm:$0xff] %v8330_v23  ;;  %9180 = vst [vmem:[#allocation69_spill] sm:$0xff] %v8332_v48  ;;  %v8346_v23 = vpop.f32.mrf.mxu1  ;;  %v3832_v38 = vadd.f32 %v8215_v18, %v3574_v26  ;;  %v3835_v26 = vadd.f32 %v8240_v35, %v8209_v11 }
 0x42b   : > { %v5666_v37 = vpop.f32.mrf.mxu0  ;;  %v3833_v8 = vadd.f32 %v8261_v31, %v3575_v51 }
 0x42c   : > { %v8353_v16 = vadd.f32 %v5666_v37, %v3830_v46  ;;  %v8360_v39 = vpop.f32.mrf.mxu1  ;;  %v3834_v37 = vadd.f32 %v8211_v53, %v8202_v57 }
 0x42d   : > { %v3959_v0 = vpop.f32.mrf.mxu0 }
 0x42e   : > { %v8348_v5 = vadd.f32 %v3959_v0, %v3828_v21  ;;  %v4159_v56 = vmul.f32 %v8353_v16, %v8353_v16  ;;  %v8381_v21 = vpop.f32.mrf.mxu1 }
 0x42f   : > { %v5667_v24 = vpop.f32.mrf.mxu0 }
 0x430   : > { %v4157_v0 = vmul.f32 %v8348_v5, %v8348_v5  ;;  %v8364_v47 = vadd.f32 %v5667_v24, %v3831_v9  ;;  %v3320_v24 = vadd.f32 %v8000_v33, %v8019_v7  ;;  %v8399_v11 = vpop.f32.mrf.mxu1 }
 0x431   : > { %v3962_v48 = vpop.f32.mrf.mxu0 }
 0x432   : > { %v8355_v49 = vadd.f32 %v3962_v48, %v3829_v10  ;;  %v4160_v50 = vmul.f32 %v8364_v47, %v8364_v47  ;;  %v3578_v9 = vadd.f32 %v8230_v58, %v3320_v24 }
 0x433   : > { %v5670_v3 = vpop.f32.mrf.mxu0 }
 0x434   : > { %v4120_v25 = vadd.f32 %v8355_v49, %v8348_v5  ;;  %v4158_v48 = vmul.f32 %v8355_v49, %v8355_v49  ;;  %v8389_v33 = vadd.f32 %v5670_v3, %v3834_v37 }
 0x435   : > { %v3975_v44 = vpop.f32.mrf.mxu0 }
 0x436   : > { %v4121_v42 = vadd.f32 %v4120_v25, %v8353_v16  ;;  %v4189_v18 = vadd.f32 %v4158_v48, %v4157_v0  ;;  %v8374_v20 = vadd.f32 %v3975_v44, %v3832_v38  ;;  %v3321_v38 = vadd.f32 %v8008_v6, %v8027_v1 }
 0x437   : > { %v5671_v28 = vpop.f32.mrf.mxu0  ;;  %v3836_v0 = vadd.f32 %v8278_v4, %v3578_v9  ;;  %v3325_v9 = vadd.f32 %v8024_v60, %v8056_v43 }
 0x438   : > { %v4190_v46 = vadd.f32 %v4189_v18, %v4159_v56  ;;  %v4122_v10 = vadd.f32 %v4121_v42, %v8364_v47  ;;  %v4161_v57 = vmul.f32 %v8374_v20, %v8374_v20  ;;  %v8401_v35 = vadd.f32 %v5671_v28, %v3835_v26  ;;  %v8417_v28 = vpop.f32.mrf.mxu1 }
 0x439   : > { %v3978_v7 = vpop.f32.mrf.mxu0  ;;  %v3579_v51 = vadd.f32 %v8251_v55, %v3321_v38  ;;  %v4163_v56 = vmul.f32 %v8389_v33, %v8389_v33  ;;  %v3324_v42 = vadd.f32 %v8016_v63, %v8041_v2  ;;  %v3838_v18 = vadd.f32 %v8271_v27, %v8218_v17 }
 0x43a   : > { %v4123_v53 = vadd.f32 %v4122_v10, %v8374_v20  ;;  %v4191_v31 = vadd.f32 %v4190_v46, %v4160_v50  ;;  %v8394_v40 = vadd.f32 %v3978_v7, %v3833_v8  ;;  %v4164_v55 = vmul.f32 %v8401_v35, %v8401_v35 }
 0x43b   : > { %v5674_v25 = vpop.f32.mrf.mxu0  ;;  %v3837_v37 = vadd.f32 %v8292_v15, %v3579_v51  ;;  %v3839_v46 = vadd.f32 %v8285_v32, %v8243_v59  ;;  %v3582_v10 = vadd.f32 %v8267_v45, %v3324_v42  ;;  %v8435_v59 = vpop.f32.mrf.mxu1  ;;  %v3583_v38 = vadd.f32 %v8276_v61, %v3325_v9 }
 0x43c   : > { %v4192_v58 = vadd.f32 %v4191_v31, %v4161_v57  ;;  %v4124_v3 = vadd.f32 %v4123_v53, %v8394_v40  ;;  %v4162_v48 = vmul.f32 %v8394_v40, %v8394_v40  ;;  %v8425_v63 = vadd.f32 %v5674_v25, %v3838_v18 }
 0x43d   : > { %v3991_v44 = vpop.f32.mrf.mxu0  ;;  %v3840_v7 = vadd.f32 %v8306_v14, %v3582_v10  ;;  %v3841_v51 = vadd.f32 %v8320_v30, %v3583_v38 }
 0x43e   : > { %v4125_v6 = vadd.f32 %v4124_v3, %v8389_v33  ;;  %v4193_v1 = vadd.f32 %v4192_v58, %v4162_v48  ;;  %v8410_v4 = vadd.f32 %v3991_v44, %v3836_v0  ;;  %v4167_v25 = vmul.f32 %v8425_v63, %v8425_v63  ;;  %v8453_v44 = vpop.f32.mrf.mxu1 }
 0x43f   : > { %v5675_v24 = vpop.f32.mrf.mxu0  ;;  %v3328_v58 = vadd.f32 %v8032_v22, %v8071_v54  ;;  %v3842_v3 = vadd.f32 %v8299_v12, %v8264_v52 }
 0x440   : > { %v4194_v8 = vadd.f32 %v4193_v1, %v4163_v56  ;;  %v4126_v50 = vadd.f32 %v4125_v6, %v8401_v35  ;;  %v4165_v27 = vmul.f32 %v8410_v4, %v8410_v4  ;;  %v8437_v32 = vadd.f32 %v5675_v24, %v3839_v46  ;;  %v9181_v46 = vld [vmem:[#allocation61_spill] sm:$0xff] }
 0x441   : > { %v3994_v2 = vpop.f32.mrf.mxu0  ;;  %v3843_v1 = vadd.f32 %v8313_v62, %v8274_v34  ;;  %v3586_v42 = vadd.f32 %v8283_v19, %v3328_v58  ;;  %v3329_v24 = vadd.f32 %v8047_v36, %v8086_v41  ;;  %v8471_v34 = vpop.f32.mrf.mxu1  ;;  %v9186_v58 = vld [vmem:[#allocation55_spill] sm:$0xff] }
 0x442   : > { %v4127_v17 = vadd.f32 %v4126_v50, %v8410_v4  ;;  %v4195_v15 = vadd.f32 %v4194_v8, %v4164_v55  ;;  %v8430_v26 = vadd.f32 %v3994_v2, %v3837_v37  ;;  %v4168_v61 = vmul.f32 %v8437_v32, %v8437_v32 }
 0x443   : > { %v5678_v53 = vpop.f32.mrf.mxu0  ;;  %v3844_v37 = vadd.f32 %v8336_v29, %v3586_v42  ;;  %v3587_v10 = vadd.f32 %v9181_v46, %v3329_v24 }
 0x444   : > { %v4196_v45 = vadd.f32 %v4195_v15, %v4165_v27  ;;  %v4128_v57 = vadd.f32 %v4127_v17, %v8430_v26  ;;  %v4166_v31 = vmul.f32 %v8430_v26, %v8430_v26  ;;  %v8461_v22 = vadd.f32 %v5678_v53, %v3842_v3  ;;  %v9182_v27 = vld [vmem:[#allocation59_spill] sm:$0xff]  ;;  %v9183_v15 = vld [vmem:[#allocation32_spill] sm:$0xff] }
 0x445   : > { %v4007_v0 = vpop.f32.mrf.mxu0  ;;  %v3332_v9 = vadd.f32 %v9183_v15, %v9182_v27 }
 0x446   : > { %v4129_v60 = vadd.f32 %v4128_v57, %v8425_v63  ;;  %v4197_v43 = vadd.f32 %v4196_v45, %v4166_v31  ;;  %v8446_v14 = vadd.f32 %v4007_v0, %v3840_v7  ;;  %v4171_v17 = vmul.f32 %v8461_v22, %v8461_v22  ;;  %v9184_v7 = vld [vmem:[#allocation63_spill] sm:$0xff]  ;;  %v8489_v31 = vpop.f32.mrf.mxu1 }
 0x447   : > { %v5679_v48 = vpop.f32.mrf.mxu0  ;;  %v3846_v53 = vadd.f32 %v8327_v13, %v9184_v7  ;;  %v3845_v57 = vadd.f32 %v8360_v39, %v3587_v10  ;;  %v3590_v3 = vadd.f32 %v9186_v58, %v3332_v9  ;;  %v9194_v58 = vld [vmem:[#allocation80_spill] sm:$0xff] }
 0x448   : > { %v4198_v56 = vadd.f32 %v4197_v43, %v4167_v25  ;;  %v4130_v6 = vadd.f32 %v4129_v60, %v8437_v32  ;;  %v4169_v12 = vmul.f32 %v8446_v14, %v8446_v14  ;;  %v8473_v62 = vadd.f32 %v5679_v48, %v3843_v1  ;;  %v9185_v60 = vld [vmem:[#allocation62_spill] sm:$0xff]  ;;  %v9188_v1 = vld [vmem:[#allocation39_spill] sm:$0xff] }
 0x449   : > { %v4010_v54 = vpop.f32.mrf.mxu0  ;;  %v3847_v43 = vadd.f32 %v8346_v23, %v9185_v60  ;;  %v3800_v23 = vpop.f32.mrf.mxu1 }
 0x44a   : > { %v4131_v52 = vadd.f32 %v4130_v6, %v8446_v14  ;;  %v4199_v30 = vadd.f32 %v4198_v56, %v4168_v61  ;;  %v8466_v18 = vadd.f32 %v4010_v54, %v3841_v51  ;;  %v4172_v38 = vmul.f32 %v8473_v62, %v8473_v62  ;;  %v9187_v6 = vld [vmem:[#allocation42_spill] sm:$0xff] }
 0x44b   : > { %v5682_v55 = vpop.f32.mrf.mxu0  ;;  %v3333_v42 = vadd.f32 %v9188_v1, %v9187_v6  ;;  %v3848_v54 = vadd.f32 %v8399_v11, %v3590_v3  ;;  %v5646_v27 = vpop.f32.mrf.mxu1 }
 0x44c   : > { %v4200_v19 = vadd.f32 %v4199_v30, %v4169_v12  ;;  %v4132_v8 = vadd.f32 %v4131_v52, %v8466_v18  ;;  %v4170_v50 = vmul.f32 %v8466_v18, %v8466_v18  ;;  %v8497_v48 = vadd.f32 %v5682_v55, %v3846_v53  ;;  %v9189_v55 = vld [vmem:[#allocation56_spill] sm:$0xff] }
 0x44d   : > { %v4023_v2 = vpop.f32.mrf.mxu0  ;;  %v9191_v53 = vld [vmem:[#allocation48_spill] sm:$0xff]  ;;  %v3813_v1 = vpop.f32.mrf.mxu1 }
 0x44e   : > { %v4133_v36 = vadd.f32 %v4132_v8, %v8461_v22  ;;  %v4201_v41 = vadd.f32 %v4200_v19, %v4170_v50  ;;  %v8482_v29 = vadd.f32 %v4023_v2, %v3844_v37  ;;  %v3591_v19 = vadd.f32 %v9189_v55, %v3333_v42  ;;  %v9190_v2 = vld [vmem:[#allocation54_spill] sm:$0xff] }
 0x44f   : > { %v5683_v45 = vpop.f32.mrf.mxu0  ;;  %v4175_v50 = vmul.f32 %v8497_v48, %v8497_v48 }
 0x450   : > { %v4202_v0 = vadd.f32 %v4201_v41, %v4171_v17  ;;  %v4134_v25 = vadd.f32 %v4133_v36, %v8473_v62  ;;  %v4173_v39 = vmul.f32 %v8482_v29, %v8482_v29  ;;  %v8507_v30 = vadd.f32 %v5683_v45, %v3847_v43  ;;  %v9192_v45 = vld [vmem:[#allocation43_spill] sm:$0xff]  ;;  %v9193_v43 = vld [vmem:[#allocation60_spill] sm:$0xff] }
 0x451   : > { %v4026_v51 = vpop.f32.mrf.mxu0  ;;  %v3850_v17 = vadd.f32 %v8381_v21, %v9190_v2  ;;  %v3849_v41 = vadd.f32 %v8435_v59, %v3591_v19  ;;  %v3337_v3 = vadd.f32 %v9194_v58, %v9193_v43  ;;  %v5647_v2 = vpop.f32.mrf.mxu1  ;;  %v9203_v43 = vld [vmem:[#allocation68_spill] sm:$0xff] }
 0x452   : > { %v4135_v13 = vadd.f32 %v4134_v25, %v8482_v29  ;;  %v4203_v61 = vadd.f32 %v4202_v0, %v4172_v38  ;;  %v8502_v56 = vadd.f32 %v4026_v51, %v3845_v57  ;;  %v4176_v15 = vmul.f32 %v8507_v30, %v8507_v30  ;;  %v9195_v51 = vld [vmem:[#allocation67_spill] sm:$0xff] }
 0x453   : > { %v5686_v52 = vpop.f32.mrf.mxu0  ;;  %v3336_v57 = vadd.f32 %v9192_v45, %v9191_v53  ;;  %v9200_v45 = vld [vmem:[#allocation57_spill] sm:$0xff]  ;;  %v3855_v58 = vadd.f32 %v8489_v31, %v9203_v43 }
 0x454   : > { %v4204_v12 = vadd.f32 %v4203_v61, %v4173_v39  ;;  %v4136_v24 = vadd.f32 %v4135_v13, %v8502_v56  ;;  %v4174_v37 = vmul.f32 %v8502_v56, %v8502_v56  ;;  %v8526_v38 = vadd.f32 %v5686_v52, %v3850_v17  ;;  %v9196_v61 = vld [vmem:[#allocation65_spill] sm:$0xff] }
 0x455   : > { %v4039_v8 = vpop.f32.mrf.mxu0  ;;  %v3594_v13 = vadd.f32 %v9195_v51, %v3336_v57  ;;  %v3851_v6 = vadd.f32 %v8417_v28, %v9196_v61  ;;  %v3854_v57 = vadd.f32 %v8453_v44, %v9200_v45  ;;  %v9204_v51 = vld [vmem:[#allocation26_spill] sm:$0xff]  ;;  %v3816_v61 = vpop.f32.mrf.mxu1 }
 0x456   : > { %v4137_v46 = vadd.f32 %v4136_v24, %v8497_v48  ;;  %v4205_v10 = vadd.f32 %v4204_v12, %v4174_v37  ;;  %v8516_v11 = vadd.f32 %v4039_v8, %v3848_v54  ;;  %v9197_v12 = vld [vmem:[#allocation20_spill] sm:$0xff]  ;;  %v4179_v19 = vmul.f32 %v8526_v38, %v8526_v38 }
 0x457   : > { %v5687_v36 = vpop.f32.mrf.mxu0  ;;  %v3595_v24 = vadd.f32 %v9197_v12, %v3337_v3  ;;  %v3852_v37 = vadd.f32 %v8471_v34, %v3594_v13 }
 0x458   : > { %v4206_v9 = vadd.f32 %v4205_v10, %v4175_v50  ;;  %v4138_v7 = vadd.f32 %v4137_v46, %v8507_v30  ;;  %v4177_v21 = vmul.f32 %v8516_v11, %v8516_v11  ;;  %v8545_v8 = vadd.f32 %v5687_v36, %v3851_v6 }
 0x459   : > { %v4042_v0 = vpop.f32.mrf.mxu0  ;;  %v3853_v10 = vadd.f32 %v3800_v23, %v3595_v24  ;;  %v9201_v23 = vld [vmem:[#allocation18_spill] sm:$0xff] }
 0x45a   : > { %v4139_v25 = vadd.f32 %v4138_v7, %v8516_v11  ;;  %v4207_v60 = vadd.f32 %v4206_v9, %v4176_v15  ;;  %v8531_v59 = vadd.f32 %v4042_v0, %v3849_v41  ;;  %v9198_v9 = vld [vmem:[#allocation86_spill] sm:$0xff]  ;;  %v9199_v7 = vld [vmem:[#allocation28_spill] sm:$0xff]  ;;  %v4180_v36 = vmul.f32 %v8545_v8, %v8545_v8 }
 0x45b   : > { %v5690_v39 = vpop.f32.mrf.mxu0  ;;  %v3340_v34 = vadd.f32 %v9199_v7, %v9198_v9  ;;  %v9206_v9 = vld [vmem:[#allocation19_spill] sm:$0xff] }
 0x45c   : > { %v4208_v42 = vadd.f32 %v4207_v60, %v4177_v21  ;;  %v4140_v54 = vadd.f32 %v4139_v25, %v8531_v59  ;;  %v4178_v52 = vmul.f32 %v8531_v59, %v8531_v59  ;;  %v9202_v21 = vld [vmem:[#allocation11_spill] sm:$0xff]  ;;  %v8565_v6 = vadd.f32 %v5690_v39, %v3854_v57 }
 0x45d   : > { %v4055_v55 = vpop.f32.mrf.mxu0  ;;  %v3341_v60 = vadd.f32 %v9202_v21, %v9201_v23  ;;  %v3598_v13 = vadd.f32 %v9204_v51, %v3340_v34 }
 0x45e   : > { %v4141_v50 = vadd.f32 %v4140_v54, %v8526_v38  ;;  %v4209_v28 = vadd.f32 %v4208_v42, %v4178_v52  ;;  %v8548_v41 = vadd.f32 %v4055_v55, %v3852_v37  ;;  %v9205_v54 = vld [vmem:[#allocation69_spill] sm:$0xff] }
 0x45f   : > { %v5691_v46 = vpop.f32.mrf.mxu0  ;;  %v3599_v52 = vadd.f32 %v9205_v54, %v3341_v60  ;;  %v3856_v24 = vadd.f32 %v3813_v1, %v3598_v13  ;;  %v3858_v1 = vadd.f32 %v5646_v27, %v9206_v9  ;;  %v9213_v9 = vld [vmem:[#allocation64_spill] sm:$0xff] }
 0x460   : > { %v4210_v17 = vadd.f32 %v4209_v28, %v4179_v19  ;;  %v4142_v15 = vadd.f32 %v4141_v50, %v8545_v8  ;;  %v4181_v37 = vmul.f32 %v8548_v41, %v8548_v41  ;;  %v8571_v55 = vadd.f32 %v5691_v46, %v3855_v58  ;;  %v9207_v46 = vld [vmem:[#allocation25_spill] sm:$0xff] }
 0x461   : > { %v4058_v53 = vpop.f32.mrf.mxu0  ;;  %v3857_v19 = vadd.f32 %v3816_v61, %v3599_v52 }
 0x462   : > { %v4143_v0 = vadd.f32 %v4142_v15, %v8548_v41  ;;  %v8558_v25 = vadd.f32 %v4058_v53, %v3853_v10  ;;  %v4211_v44 = vadd.f32 %v4210_v17, %v4180_v36  ;;  %v3859_v53 = vadd.f32 %v5647_v2, %v9207_v46  ;;  %v9215_v46 = vld [vmem:[#allocation52_spill] sm:$0xff] }
 0x463   : > { %v5694_v3 = vpop.f32.mrf.mxu0  ;;  %v4184_v43 = vmul.f32 %v8571_v55, %v8571_v55 }
 0x464   : > { %v4144_v42 = vadd.f32 %v4143_v0, %v8558_v25  ;;  %v4212_v28 = vadd.f32 %v4211_v44, %v4181_v37  ;;  %v4182_v39 = vmul.f32 %v8558_v25, %v8558_v25  ;;  %v8584_v57 = vadd.f32 %v5694_v3, %v3858_v1  ;;  %v9208_v37 = vld [vmem:[#allocation30_spill] sm:$0xff] }
 0x465   : > { %v4071_v12 = vpop.f32.mrf.mxu0  ;;  %v4183_v0 = vmul.f32 %v8565_v6, %v8565_v6 }
 0x466   : > { %v4145_v31 = vadd.f32 %v4144_v42, %v8565_v6  ;;  %v8576_v10 = vadd.f32 %v4071_v12, %v3856_v24  ;;  %v4213_v45 = vadd.f32 %v4212_v28, %v4182_v39  ;;  %v4187_v24 = vmul.f32 %v8584_v57, %v8584_v57  ;;  %v9211_v39 = vld [vmem:[#allocation41_spill] sm:$0xff] }
 0x467   : > { %v5695_v50 = vpop.f32.mrf.mxu0 }
 0x468   : > { %v4146_v17 = vadd.f32 %v4145_v31, %v8571_v55  ;;  %v8589_v23 = vadd.f32 %v5695_v50, %v3859_v53  ;;  %v4214_v60 = vadd.f32 %v4213_v45, %v4183_v0  ;;  %v4185_v3 = vmul.f32 %v8576_v10, %v8576_v10  ;;  %v9210_v50 = vld [vmem:[#allocation33_spill] sm:$0xff] }
 0x469   : > { %v4074_v15 = vpop.f32.mrf.mxu0  ;;  %v9209_v31 = vmov 0.0   ;;  %v9216_v45 = vld [vmem:[#allocation77_spill] sm:$0xff] }
 0x46a   : > { %v4147_v7 = vadd.f32 %v4146_v17, %v8576_v10  ;;  %v8581_v34 = vadd.f32 %v4074_v15, %v3857_v19  ;;  %v4215_v2 = vadd.f32 %v4214_v60, %v4184_v43  ;;  %v4188_v28 = vmul.f32 %v8589_v23, %v8589_v23  ;;  %v9212_v15 = vld [vmem:[#allocation44_spill] sm:$0xff]  ;;  %v9219_v60 = vld [vmem:[#allocation17_spill] sm:$0xff]  ;;  %v9220_v43 = vld [vmem:[#allocation83_spill] sm:$0xff] }
 0x46c   : > { %v4148_v36 = vadd.f32 %v4147_v7, %v8581_v34  ;;  %v4216_v61 = vadd.f32 %v4215_v2, %v4185_v3  ;;  %v4186_v42 = vmul.f32 %v8581_v34, %v8581_v34  ;;  %v9214_v7 = vld [vmem:[#allocation79_spill] sm:$0xff] }
 0x46d   : > { %v9223_v3 = vld [vmem:[#allocation51_spill] sm:$0xff] }
 0x46e   : > { %v4149_v21 = vadd.f32 %v4148_v36, %v8584_v57  ;;  %v4217_v12 = vadd.f32 %v4216_v61, %v4186_v42  ;;  %v9217_v36 = vld [vmem:[#allocation10_spill] sm:$0xff]  ;;  %v9224_v61 = vld [vmem:[#allocation53_spill] sm:$0xff] }
 0x470   : > { %v4150_v27 = vadd.f32 %v4149_v21, %v8589_v23  ;;  %v4218_v19 = vadd.f32 %v4217_v12, %v4187_v24  ;;  %v9218_v21 = vld [vmem:[#allocation47_spill] sm:$0xff] }
 0x472   : > { %v4151_v58 = vrot.slane %v4150_v27, 4  ;;  %v4219_v17 = vadd.f32 %v4218_v19, %v4188_v28 }
 0x474   : > { %v4152_v51 = vadd.f32 %v4151_v58, %v4150_v27  ;;  %v4220_v1 = vrot.slane %v4219_v17, 4  ;;  %v9221_v58 = vld [vmem:[#allocation16_spill] sm:$0xff] }
 0x476   : > { %v4153_v13 = vrot.slane %v4152_v51, 2  ;;  %v4221_v53 = vadd.f32 %v4220_v1, %v4219_v17 }
 0x478   : > { %v4154_v44 = vadd.f32 %v4153_v13, %v4152_v51  ;;  %v4222_v0 = vrot.slane %v4221_v53, 2  ;;  %v9222_v51 = vld [vmem:[#allocation66_spill] sm:$0xff] }
 0x47a   : > { %v4155_v54 = vrot.slane %v4154_v44, 1  ;;  %v4223_v27 = vadd.f32 %v4222_v0, %v4221_v53 }
 0x47c   : > { %v4156_v52 = vadd.f32 %v4155_v54, %v4154_v44  ;;  %v4224_v2 = vrot.slane %v4223_v27, 1 }
 0x47e   : > { %5729 = vmatmul.mubr.f32.vlgmr.msra.gmra.mxu1 %v4156_v52  ;;  %v4225_v13 = vadd.f32 %v4224_v2, %v4223_v27 }
 0x47f   : > { %5732 = vmatpush3.msra.mxu1 %v9208_v37  ;;  %5763 = vmatprep.mubr.msk.f32.mxu1 %vm5973_vm2, %v9209_v31 }
 0x480   : > { %5733 = vmatprep.subr.mxu1 %v9209_v31 }
 0x481   : > { %5734 = vmatpush3.msra.mxu1 %v9210_v50  ;;  %v4118_v50 = vld [vmem:[%s8812_s6] sm:$0x1] }
 0x482   : > { %5735 = vmatprep.subr.mxu1 %v9209_v31 }
 0x483   : > { %5736 = vmatpush3.msra.mxu1 %v9211_v39 }
 0x484   : > { %5737 = vmatprep.subr.mxu1 %v9209_v31 }
 0x485   : > { %5738 = vmatpush3.msra.mxu1 %v9212_v15  ;;  %v9225_v15 = vld [vmem:[#allocation37_spill] sm:$0xff] }
 0x486   : > { %5739 = vmatprep.subr.mxu1 %v9209_v31 }
 0x487   : > { %5740 = vmatpush3.msra.mxu1 %v9213_v9 }
 0x488   : > { %5741 = vmatprep.subr.mxu1 %v9209_v31 }
 0x489   : > { %5742 = vmatpush3.msra.mxu1 %v9214_v7 }
 0x48a   : > { %5743 = vmatprep.subr.mxu1 %v9209_v31 }
 0x48b   : > { %5744 = vmatpush3.msra.mxu1 %v9215_v46 }
 0x48c   : > { %5745 = vmatprep.subr.mxu1 %v9209_v31 }
 0x48d   : > { %5746 = vmatpush3.msra.mxu1 %v9216_v45 }
 0x48e   : > { %5747 = vmatprep.subr.mxu1 %v9209_v31 }
 0x48f   : > { %5748 = vmatpush3.msra.mxu1 %v9217_v36 }
 0x490   : > { %5749 = vmatprep.subr.mxu1 %v9209_v31 }
 0x491   : > { %5750 = vmatpush3.msra.mxu1 %v9218_v21 }
 0x492   : > { %5751 = vmatprep.subr.mxu1 %v9209_v31 }
 0x493   : > { %5752 = vmatpush3.msra.mxu1 %v9219_v60 }
 0x494   : > { %5753 = vmatprep.subr.mxu1 %v9209_v31 }
 0x495   : > { %5754 = vmatpush3.msra.mxu1 %v9220_v43 }
 0x496   : > { %5755 = vmatprep.subr.mxu1 %v9209_v31 }
 0x497   : > { %5756 = vmatpush3.msra.mxu1 %v9221_v58 }
 0x498   : > { %5757 = vmatprep.subr.mxu1 %v9209_v31 }
 0x499   : > { %5758 = vmatpush3.msra.mxu1 %v9222_v51 }
 0x49a   : > { %5759 = vmatprep.subr.mxu1 %v9209_v31 }
 0x49b   : > { %5760 = vmatpush3.msra.mxu1 %v9223_v3 }
 0x49c   : > { %5761 = vmatprep.subr.mxu1 %v9209_v31  ;;  %v4119_v31 = vld [vmem:[%s8813_s7] sm:$0x1] }
 0x49d   : > { %5762 = vmatpush3.msra.mxu1 %v9224_v61 }
 0x49e   : > { %5764 = vmatmul.mubr.f32.vlgmr.msra.gmra.mxu1 %v4225_v13 }
 0x53e   : > { %v4308_v44 = vpop.f32.mrf.mxu1 }
 0x53f   : > { %v4382_v54 = vmul.f32 %v4308_v44, %v4308_v44 }
 0x540   : > { %v5730_v42 = vpop.f32.mrf.mxu1 }
 0x55e   : > { %v4378_v52 = vpop.f32.mrf.mxu1 }
 0x55f   : > { %v4383_v12 = vsub.f32 %v4378_v52, %v4382_v54 }
 0x560   : > { %v5765_v24 = vpop.f32.mrf.mxu1 }
 0x561   : > { %v4384_v37 = vmax.f32 %v4383_v12, 0.0 }
 0x563   : > { %v4385_v19 = vadd.f32 1e-05, %v4384_v37 }
 0x565   : > { %5907 = vrsqrt.f32 %v4385_v19 }
 0x572   : > { %v5908_v28 = vpop.eup %5907 }
 0x573   : > { %v4387_v39 = vmul.f32 %v5908_v28, %v4118_v50 }
 0x575   : > { %v4388_v17 = vmul.f32 %v4387_v39, %v4308_v44  ;;  %v4393_v9 = vrot.slane %v4387_v39, %v9225_v15 }
 0x577   : > { %v4389_v1 = vsub.f32 %v4119_v31, %v4388_v17  ;;  %v4394_v7 = vmul.f32 %v4393_v9, %v8348_v5  ;;  %v4395_v46 = vmul.f32 %v4393_v9, %v8355_v49  ;;  %v4396_v53 = vmul.f32 %v4393_v9, %v8353_v16 }
 0x578   : > { %v4397_v45 = vmul.f32 %v4393_v9, %v8364_v47  ;;  %v4398_v36 = vmul.f32 %v4393_v9, %v8374_v20  ;;  %v4399_v0 = vmul.f32 %v4393_v9, %v8394_v40  ;;  %v4400_v21 = vmul.f32 %v4393_v9, %v8389_v33 }
 0x579   : > { %v4430_v60 = vrot.slane %v4389_v1, %v9225_v15  ;;  %v4401_v27 = vmul.f32 %v4393_v9, %v8401_v35  ;;  %v4402_v43 = vmul.f32 %v4393_v9, %v8410_v4  ;;  %v4403_v5 = vmul.f32 %v4393_v9, %v8430_v26 }
 0x57a   : > { %v4404_v49 = vmul.f32 %v4393_v9, %v8425_v63  ;;  %v4405_v16 = vmul.f32 %v4393_v9, %v8437_v32  ;;  %v4406_v47 = vmul.f32 %v4393_v9, %v8446_v14  ;;  %v4407_v20 = vmul.f32 %v4393_v9, %v8466_v18 }
 0x57b   : > { %v4408_v40 = vmul.f32 %v4393_v9, %v8461_v22  ;;  %v4409_v33 = vmul.f32 %v4393_v9, %v8473_v62  ;;  %v4410_v58 = vmul.f32 %v4393_v9, %v8482_v29  ;;  %v4411_v35 = vmul.f32 %v4393_v9, %v8502_v56 }
 0x57c   : > { %v4412_v4 = vmul.f32 %v4393_v9, %v8497_v48  ;;  %v4413_v26 = vmul.f32 %v4393_v9, %v8507_v30  ;;  %v4414_v63 = vmul.f32 %v4393_v9, %v8516_v11  ;;  %v4415_v32 = vmul.f32 %v4393_v9, %v8531_v59 }
 0x57d   : > { %v4416_v14 = vmul.f32 %v4393_v9, %v8526_v38  ;;  %v4417_v18 = vmul.f32 %v4393_v9, %v8545_v8  ;;  %v4418_v22 = vmul.f32 %v4393_v9, %v8548_v41  ;;  %v4419_v62 = vmul.f32 %v4393_v9, %v8558_v25 }
 0x57e   : > { %v4420_v29 = vmul.f32 %v4393_v9, %v8565_v6  ;;  %v4421_v56 = vmul.f32 %v4393_v9, %v8571_v55  ;;  %v4422_v48 = vmul.f32 %v4393_v9, %v8576_v10  ;;  %v4423_v30 = vmul.f32 %v4393_v9, %v8581_v34 }
 0x57f   : > { %v4424_v11 = vmul.f32 %v4393_v9, %v8584_v57  ;;  %v4425_v59 = vmul.f32 %v4393_v9, %v8589_v23  ;;  %v4432_v38 = vadd.f32 %v4430_v60, %v4394_v7  ;;  %v4433_v2 = vadd.f32 %v4430_v60, %v4395_v46 }
 0x580   : > { %v4434_v8 = vadd.f32 %v4430_v60, %v4396_v53  ;;  %v4435_v41 = vadd.f32 %v4430_v60, %v4397_v45  ;;  %v4436_v51 = vadd.f32 %v4430_v60, %v4398_v36  ;;  %v4437_v25 = vadd.f32 %v4430_v60, %v4399_v0 }
 0x581   : > { %v4438_v3 = vadd.f32 %v4430_v60, %v4400_v21  ;;  %v4439_v6 = vadd.f32 %v4430_v60, %v4401_v27  ;;  %v4440_v13 = vadd.f32 %v4430_v60, %v4402_v43  ;;  %v4441_v55 = vadd.f32 %v4430_v60, %v4403_v5 }
 0x582   : > { %v4442_v61 = vadd.f32 %v4430_v60, %v4404_v49  ;;  %v4443_v10 = vadd.f32 %v4430_v60, %v4405_v16  ;;  %v4444_v44 = vadd.f32 %v4430_v60, %v4406_v47  ;;  %v4445_v34 = vadd.f32 %v4430_v60, %v4407_v20 }
 0x583   : > { %v4446_v57 = vadd.f32 %v4430_v60, %v4408_v40  ;;  %v4447_v23 = vadd.f32 %v4430_v60, %v4409_v33  ;;  %v4448_v42 = vadd.f32 %v4430_v60, %v4410_v58  ;;  %v4449_v54 = vadd.f32 %v4430_v60, %v4411_v35 }
 0x584   : > { %v8679_v52 = vadd.f32 %v4430_v60, %v4412_v4  ;;  %v8681_v12 = vadd.f32 %v4430_v60, %v4413_v26  ;;  %v8683_v24 = vadd.f32 %v4430_v60, %v4414_v63  ;;  %v8685_v37 = vadd.f32 %v4430_v60, %v4415_v32 }
 0x585   : > { %v8687_v19 = vadd.f32 %v4430_v60, %v4416_v14  ;;  %v8689_v50 = vadd.f32 %v4430_v60, %v4417_v18  ;;  %v8691_v28 = vadd.f32 %v4430_v60, %v4418_v22  ;;  %v8693_v39 = vadd.f32 %v4430_v60, %v4419_v62 }
 0x586   : > { %v8695_v31 = vadd.f32 %v4430_v60, %v4420_v29  ;;  %v8697_v17 = vadd.f32 %v4430_v60, %v4421_v56  ;;  %v8699_v15 = vadd.f32 %v4430_v60, %v4422_v48  ;;  %v8701_v9 = vadd.f32 %v4430_v60, %v4423_v30 }
 0x587   : > { %v8703_v1 = vadd.f32 %v4430_v60, %v4424_v11  ;;  %v8705_v7 = vadd.f32 %v4430_v60, %v4425_v59  ;;  %v4464_v46 = vmax.f32 %v4432_v38, 0.0  ;;  %v4465_v53 = vmax.f32 %v4433_v2, 0.0 }
 0x588   : > { %v4466_v45 = vmax.f32 %v4434_v8, 0.0  ;;  %v4467_v36 = vmax.f32 %v4435_v41, 0.0  ;;  %v4468_v0 = vmax.f32 %v4436_v51, 0.0  ;;  %v4469_v21 = vmax.f32 %v4437_v25, 0.0 }
 0x589   : > { %v4470_v27 = vmax.f32 %v4438_v3, 0.0  ;;  %v4471_v43 = vmax.f32 %v4439_v6, 0.0  ;;  %v4472_v5 = vmax.f32 %v4440_v13, 0.0  ;;  %v4473_v49 = vmax.f32 %v4441_v55, 0.0  ;;  %4496 = vst [vmem:[%s8707_s21] sm:$0xff] %v4464_v46  ;;  %4497 = vst [vmem:[%s8707_s21 + $0x8] sm:$0xff] %v4465_v53 }
 0x58a   : > { %v4474_v60 = vmax.f32 %v4442_v61, 0.0  ;;  %v4475_v16 = vmax.f32 %v4443_v10, 0.0  ;;  %v4476_v47 = vmax.f32 %v4444_v44, 0.0  ;;  %v4477_v20 = vmax.f32 %v4445_v34, 0.0  ;;  %4498 = vst [vmem:[%s8707_s21 + $0x10] sm:$0xff] %v4466_v45  ;;  %4499 = vst [vmem:[%s8707_s21 + $0x18] sm:$0xff] %v4467_v36 }
 0x58b   : > { %4500 = vst [vmem:[%s8707_s21 + $0x20] sm:$0xff] %v4468_v0  ;;  %4501 = vst [vmem:[%s8707_s21 + $0x28] sm:$0xff] %v4469_v21  ;;  %v4478_v40 = vmax.f32 %v4446_v57, 0.0  ;;  %v4479_v33 = vmax.f32 %v4447_v23, 0.0  ;;  %v4480_v58 = vmax.f32 %v4448_v42, 0.0  ;;  %v4481_v35 = vmax.f32 %v4449_v54, 0.0 }
 0x58c   : > { %4502 = vst [vmem:[%s8707_s21 + $0x30] sm:$0xff] %v4470_v27  ;;  %4503 = vst [vmem:[%s8707_s21 + $0x38] sm:$0xff] %v4471_v43  ;;  %v4482_v4 = vmax.f32 %v8679_v52, 0.0  ;;  %v4483_v26 = vmax.f32 %v8681_v12, 0.0  ;;  %v4484_v63 = vmax.f32 %v8683_v24, 0.0  ;;  %v4485_v32 = vmax.f32 %v8685_v37, 0.0 }
 0x58d   : > { %4504 = vst [vmem:[%s8707_s21 + $0x40] sm:$0xff] %v4472_v5  ;;  %4505 = vst [vmem:[%s8707_s21 + $0x48] sm:$0xff] %v4473_v49  ;;  %v4486_v14 = vmax.f32 %v8687_v19, 0.0  ;;  %v4487_v18 = vmax.f32 %v8689_v50, 0.0  ;;  %v4488_v22 = vmax.f32 %v8691_v28, 0.0  ;;  %v4489_v62 = vmax.f32 %v8693_v39, 0.0 }
 0x58e   : > { %4506 = vst [vmem:[%s8707_s21 + $0x50] sm:$0xff] %v4474_v60  ;;  %4507 = vst [vmem:[%s8707_s21 + $0x58] sm:$0xff] %v4475_v16  ;;  %v4490_v29 = vmax.f32 %v8695_v31, 0.0  ;;  %v4491_v56 = vmax.f32 %v8697_v17, 0.0  ;;  %v4492_v48 = vmax.f32 %v8699_v15, 0.0  ;;  %v4493_v30 = vmax.f32 %v8701_v9, 0.0 }
 0x58f   : > { %4508 = vst [vmem:[%s8707_s21 + $0x60] sm:$0xff] %v4476_v47  ;;  %4509 = vst [vmem:[%s8707_s21 + $0x68] sm:$0xff] %v4477_v20  ;;  %v4494_v11 = vmax.f32 %v8703_v1, 0.0  ;;  %v4495_v59 = vmax.f32 %v8705_v7, 0.0 }
 0x590   : > { %4510 = vst [vmem:[%s8707_s21 + $0x70] sm:$0xff] %v4478_v40  ;;  %4511 = vst [vmem:[%s8707_s21 + $0x78] sm:$0xff] %v4479_v33 }
 0x591   : > { %4512 = vst [vmem:[%s8707_s21 + $0x80] sm:$0xff] %v4480_v58  ;;  %4513 = vst [vmem:[%s8707_s21 + $0x88] sm:$0xff] %v4481_v35 }
 0x592   : > { %4514 = vst [vmem:[%s8707_s21 + $0x90] sm:$0xff] %v4482_v4  ;;  %4515 = vst [vmem:[%s8707_s21 + $0x98] sm:$0xff] %v4483_v26 }
 0x593   : > { %4516 = vst [vmem:[%s8707_s21 + $0xa0] sm:$0xff] %v4484_v63  ;;  %4517 = vst [vmem:[%s8707_s21 + $0xa8] sm:$0xff] %v4485_v32 }
 0x594   : > { %4518 = vst [vmem:[%s8707_s21 + $0xb0] sm:$0xff] %v4486_v14  ;;  %4519 = vst [vmem:[%s8707_s21 + $0xb8] sm:$0xff] %v4487_v18 }
 0x595   : > { %4520 = vst [vmem:[%s8707_s21 + $0xc0] sm:$0xff] %v4488_v22  ;;  %4521 = vst [vmem:[%s8707_s21 + $0xc8] sm:$0xff] %v4489_v62 }
 0x596   : > { %4522 = vst [vmem:[%s8707_s21 + $0xd0] sm:$0xff] %v4490_v29  ;;  %4523 = vst [vmem:[%s8707_s21 + $0xd8] sm:$0xff] %v4491_v56 }
 0x597   : > { %4524 = vst [vmem:[%s8707_s21 + $0xe0] sm:$0xff] %v4492_v48  ;;  %4525 = vst [vmem:[%s8707_s21 + $0xe8] sm:$0xff] %v4493_v30 }
 0x598   : > { %4526 = vst [vmem:[%s8707_s21 + $0xf0] sm:$0xff] %v4494_v11  ;;  %4527 = vst [vmem:[%s8707_s21 + $0xf8] sm:$0xff] %v4495_v59 }
 0x599   : > { %5922 = shalt.err (!%p5919_p3)
}
 0x59a   : > { %s5923_s18 = scalar_lea.hbm %s8748_s28, 4096  ;;  %s5927_s17 = scalar_lea.hbm %s8816_s10, 8192 }
 0x59b   : > { %p5924_p4 = scmp.ne.s32.totalorder %s8748_s28, %s5923_s18  ;;  %p5928_p9 = scmp.lt.s32.totalorder %s8748_s28, %s8816_s10 }
 0x59c   : > { %p5929_p10 = scmp.lt.s32.totalorder %s5927_s17, %s5923_s18 }
 0x59d   : > { %p5925_p7 = pnand %p5924_p4, %p6071_p5 }
 0x59e   : > { %p5930_p11 = por %p5929_p10, %p5928_p9 }
 0x59f   : > { %p5926_p8 = pneg %p5925_p7 }
 0x5a1   : > { %p5931_p12 = pnand %p5930_p11, %p5926_p8 }
 0x5a3   : > { %5934 = shalt.err (!%p5931_p12)
}
 0x5a4   : > { %s5976_s30 = smov 128   ;;  %s5977_s12 = smov 8  }
 0x5a5   : > { %5767 = dma.vmem_to_hbm [thread:$0]  (%p6071_p5), %s8750_s26, 4096, %s8748_s28, %s8766_s29, %s5976_s30, %s5976_s30, %s5977_s12  }
 0x5a6 PF: > { %p5773_p13 = scmp.ge.s32.totalorder %s5969_s16, 2  ;;  %s4557_s20 = sand.u32 1, %s5957_s13  }
 0x5a7   : > { %s4558_s18 = scalar_lea.sflag [#allocation4], %s4557_s20 }
 0x5a8   : > { %p5770_p0 = pnand %p5773_p13, %p6075_p6 }
 0x5aa   : > { %p5771_p1 = pneg %p5770_p0 }
 0x5ac   : > { %5952 = dma.done.wait (%p5771_p1), %s4558_s18, 4096  }
 0x5ad   : > { %5954 = vsyncadd (%p5771_p1), %s4558_s18, 4294963200  ;;  %p20_p2 = scmp.ge.s32.totalorder %s6058_s19, 4   ;;  %s9226_s13 = smov %s5961_s14 }
 0x5ae   : > { %s9227_s14 = smov %s5965_s15  ;;  %s9228_s15 = smov %s6069_s22 }
 0x5af   : > { %s9229_s16 = smov %s6058_s19  ;;  %22 = sbr.rel (!%p20_p2) target bundleno = 3 (0x3), region = 103 }
 0x5b4   :  { %4563 = vsyncpa [#allocation4], 1 }
 0x5b5   :  { %4565 = vsyncpa [#allocation4 + $0x1], 1 }

</bundles_post_ra>
